<compile_context>
chip_gen: v6e
topology: v6e:2x2x1
jax: 0.10.0
libtpu: 0.0.40
codegen_flags: <defaults>
</compile_context>

<pallas_src>
import functools
import math

import jax
import jax.numpy as jnp
from jax import lax
from jax.experimental import pallas as pl
from jax.experimental.pallas import tpu as pltpu


# ----------------------------------------------------------------------------
# Fused DPC kernel (one batch element per grid step)
# ----------------------------------------------------------------------------
def _dpc_kernel(xp_ref, dw0_ref, db0_ref, pw0_ref, pb0_ref,
                dw_ref, db_ref, pw_ref, pb_ref, pj_ref, pjb_ref,
                o_ref, apad_ref, cat_ref, *, H, W, Cin, C, dils, PT, PL):
    # xp_ref  : (1, H+2*d0, (W+2*d0)*Cin)  lane-packed padded input (branch 0 only)
    # dw0_ref : (3, 3, W*Cin) f32 (lane-tiled)      db0_ref : (1, W*Cin) f32
    # pw0_ref : (W*Cin, W*C) bf16 block-diagonal    pb0_ref : (1, W*C) f32
    # dw_ref  : (4, 3, 3, W*C) f32                  db_ref  : (4, 1, W*C) f32
    # pw_ref  : (4, W*C, W*C) bf16 block-diagonal   pb_ref  : (4, 1, W*C) f32
    # pj_ref  : (5*W*C, W*C) bf16 block-diagonal    pjb_ref : (1, W*C) f32
    # o_ref   : (1, H, W*C)   lane-dense packed (== NHWC) output slab
    # apad_ref: (PT+H+dmax, (PL+W+dmax)*C) f32  shared zero-haloed scratch for b0/b3
    # cat_ref : (H, 5*W*C) bf16  concat buffer for the single projection matmul
    f32, bf16 = jnp.float32, jnp.bfloat16
    d0, d1, d2, d3, d4 = dils
    WCin, WC = W * Cin, W * C
    HA, WA = apad_ref.shape

    # ---- zero ONLY the halo strips (interior is fully overwritten each step) ----
    apad_ref[0:PT, :] = jnp.zeros((PT, WA), f32)                       # top
    apad_ref[PT + H:HA, :] = jnp.zeros((HA - PT - H, WA), f32)         # bottom
    apad_ref[PT:PT + H, 0:PL * C] = jnp.zeros((H, PL * C), f32)        # left
    apad_ref[PT:PT + H, (PL + W) * C:WA] = jnp.zeros((H, WA - (PL + W) * C), f32)

    def depthwise(read, d, Cg, dwt, dbt, r0, l0):
        # 3x3 dilated depthwise conv + bias + ReLU on the lane-packed (H, W*Cg) tile.
        acc = None
        for kh in range(3):
            for kw in range(3):
                patch = read(r0 + kh * d, l0 + kw * d * Cg)            # (H, W*Cg) f32
                term = patch * dwt[kh, kw]                             # lane-tiled weight
                acc = term if acc is None else acc + term
        return jnp.maximum(acc + dbt, 0.0)                             # (H, W*Cg) f32

    def pointwise(hpk, pw_blk, pbt):
        # 1x1 conv as a block-diagonal matmul: packed-in / packed-out, no relayout.
        o = jnp.dot(hpk.astype(bf16), pw_blk, preferred_element_type=f32)
        return jnp.maximum(o + pbt, 0.0)                               # (H, W*Co) f32

    read_x = lambda r, l: xp_ref[0, r:r + H, l:l + WCin]
    read_a = lambda r, l: apad_ref[r:r + H, l:l + WC]

    # ---- branch 0 : DSC(x), Cin -> C, dilation d0 --------------------------------
    h0 = depthwise(read_x, d0, Cin, dw0_ref[...], db0_ref[...], 0, 0)
    b0 = pointwise(h0, pw0_ref[...], pb0_ref[...])                     # (H, W*C) f32
    cat_ref[:, 0:WC] = b0.astype(bf16)
    # aligned dense slab stash (rows at multiple of 8, lanes at multiple of 128)
    apad_ref[PT:PT + H, PL * C:(PL + W) * C] = b0

    # ---- branches 1-3 : DSC(b0), dilations d1, d2, d3 -----------------------------
    b3 = None
    for i, d in enumerate((d1, d2, d3)):
        hi = depthwise(read_a, d, C, dw_ref[i], db_ref[i], PT - d, (PL - d) * C)
        bi = pointwise(hi, pw_ref[i], pb_ref[i])
        cat_ref[:, (i + 1) * WC:(i + 2) * WC] = bi.astype(bf16)
        if i == 2:
            b3 = bi

    # ---- branch 4 : DSC(b3), dilation d4 (reuse the padded scratch) ---------------
    apad_ref[PT:PT + H, PL * C:(PL + W) * C] = b3
    h4 = depthwise(read_a, d4, C, dw_ref[3], db_ref[3], PT - d4, (PL - d4) * C)
    b4 = pointwise(h4, pw_ref[3], pb_ref[3])
    cat_ref[:, 4 * WC:5 * WC] = b4.astype(bf16)

    # ---- projection: ONE matmul over the full concat, then bias + ReLU ------------
    proj = jnp.dot(cat_ref[...], pj_ref[...], preferred_element_type=f32)  # (H, W*C)
    o_ref[0] = jnp.maximum(proj + pjb_ref[...], 0.0)


# ----------------------------------------------------------------------------
# Wrapper-side weight repack helpers (tiny, XLA)
# ----------------------------------------------------------------------------
def _blockdiag(pw, W):
    # pw: (Ci, Co) -> (W*Ci, W*Co) so that packed (H, W*Ci) @ B == per-pixel 1x1 conv.
    Ci, Co = pw.shape
    eye = jnp.eye(W, dtype=pw.dtype)
    return jnp.einsum("wv,io->wivo", eye, pw).reshape(W * Ci, W * Co)


def _proj_blockdiag(pjw, W, C):
    # pjw: torch layout (Co, 5C).  Rows ordered (branch, pixel, channel) to match the
    # concat buffer layout cat[h, i*W*C + w*C + c] = b_i[h, w, c].
    Co, K = pjw.shape
    nb = K // C
    pjw_r = pjw.T.reshape(nb, C, Co)
    eye = jnp.eye(W, dtype=pjw.dtype)
    return jnp.einsum("vw,ico->ivcwo", eye, pjw_r).reshape(nb * W * C, W * Co)


# ----------------------------------------------------------------------------
# Wrapper
# ----------------------------------------------------------------------------
def dpc_forward(x_nchw, params, dilations):
    assert len(dilations) == 5, "DPC expects 5 dilations"
    N, Cin, H, W = x_nchw.shape
    C = params["pw0"].shape[1]
    d0 = int(dilations[0])
    dmax = int(max(dilations[1:]))

    # top / left pads of the shared scratch, rounded up so the interior stash is
    # sublane-aligned (multiple of 8 rows) and lane-aligned (multiple of 128 lanes).
    PT = ((dmax + 7) // 8) * 8
    lane_g = max(1, 128 // math.gcd(C, 128))
    PL = ((dmax + lane_g - 1) // lane_g) * lane_g

    # single entry relayout + single zero-pad of the raw input (branch 0 only);
    # the trailing reshape to the lane-packed (Hp, Wp*Cin) form is free (contiguous).
    Hp0, Wp0 = H + 2 * d0, W + 2 * d0
    x_nhwc = jnp.transpose(x_nchw, (0, 2, 3, 1))
    xp = jnp.pad(x_nhwc, ((0, 0), (d0, d0), (d0, d0), (0, 0))).reshape(N, Hp0, Wp0 * Cin)

    # weight repack: lane-tiled depthwise weights/biases (f32), block-diagonal bf16
    # pointwise / projection weights.
    bf16 = jnp.bfloat16
    dw0_t = jnp.tile(params["dw0"], (1, 1, W))                            # (3,3,W*Cin)
    db0_t = jnp.tile(params["db0"].reshape(1, Cin), (1, W))               # (1,W*Cin)
    pw0_b = _blockdiag(params["pw0"], W).astype(bf16)                     # (W*Cin,W*C)
    pb0_t = jnp.tile(params["pb0"].reshape(1, C), (1, W))                 # (1,W*C)
    dw_t = jnp.tile(params["dw"], (1, 1, 1, W))                           # (4,3,3,W*C)
    db_t = jnp.tile(params["db"].reshape(4, 1, C), (1, 1, W))             # (4,1,W*C)
    pw_b = jax.vmap(lambda p: _blockdiag(p, W))(params["pw"]).astype(bf16)  # (4,W*C,W*C)
    pb_t = jnp.tile(params["pb"], (1, 1, W))                              # (4,1,W*C)
    pj_b = _proj_blockdiag(params["pjw"], W, C).astype(bf16)              # (5*W*C,W*C)
    pjb_t = jnp.tile(params["pjb"].reshape(1, C), (1, W))                 # (1,W*C)

    kernel = functools.partial(_dpc_kernel, H=H, W=W, Cin=Cin, C=C,
                               dils=tuple(int(d) for d in dilations), PT=PT, PL=PL)

    out = pl.pallas_call(
        kernel,
        out_shape=jax.ShapeDtypeStruct((N, H, W * C), jnp.float32),
        grid_spec=pltpu.PrefetchScalarGridSpec(
            num_scalar_prefetch=0,
            grid=(N,),
            in_specs=[
                pl.BlockSpec((1, Hp0, Wp0 * Cin), lambda n: (n, 0, 0)),
                pl.BlockSpec((3, 3, W * Cin), lambda n: (0, 0, 0)),
                pl.BlockSpec((1, W * Cin), lambda n: (0, 0)),
                pl.BlockSpec((W * Cin, W * C), lambda n: (0, 0)),
                pl.BlockSpec((1, W * C), lambda n: (0, 0)),
                pl.BlockSpec((4, 3, 3, W * C), lambda n: (0, 0, 0, 0)),
                pl.BlockSpec((4, 1, W * C), lambda n: (0, 0, 0)),
                pl.BlockSpec((4, W * C, W * C), lambda n: (0, 0, 0)),
                pl.BlockSpec((4, 1, W * C), lambda n: (0, 0, 0)),
                pl.BlockSpec((5 * W * C, W * C), lambda n: (0, 0)),
                pl.BlockSpec((1, W * C), lambda n: (0, 0)),
            ],
            out_specs=pl.BlockSpec((1, H, W * C), lambda n: (n, 0, 0)),
            scratch_shapes=[
                pltpu.VMEM((PT + H + dmax, (PL + W + dmax) * C), jnp.float32),
                pltpu.VMEM((H, 5 * W * C), jnp.bfloat16),
            ],
        ),
        compiler_params=pltpu.CompilerParams(dimension_semantics=("parallel",)),
    )(xp, dw0_t, db0_t, pw0_b, pb0_t, dw_t, db_t, pw_b, pb_t, pj_b, pjb_t)

    # packed (N, H, W*C) == NHWC; free reshape, tiny XLA transpose back to NCHW.
    return jnp.transpose(out.reshape(N, H, W, C), (0, 3, 1, 2))


# ----------------------------------------------------------------------------
# Pure-JAX reference (for correctness check)
# ----------------------------------------------------------------------------
def _ref_dsc(x, dw, db, pw, pb, dil):
    Cg = x.shape[-1]
    h = lax.conv_general_dilated(
        x, dw.reshape(3, 3, 1, Cg), window_strides=(1, 1),
        padding=((dil, dil), (dil, dil)), rhs_dilation=(dil, dil),
        feature_group_count=Cg, dimension_numbers=("NHWC", "HWIO", "NHWC"))
    h = jax.nn.relu(h + db.reshape(1, 1, 1, Cg))
    o = jnp.einsum("nhwc,co->nhwo", h, pw) + pb.reshape(1, 1, 1, -1)
    return jax.nn.relu(o)


def _ref_dpc(x_nchw, p, dils):
    x = jnp.transpose(x_nchw, (0, 2, 3, 1))
    b0 = _ref_dsc(x, p["dw0"], p["db0"], p["pw0"], p["pb0"], dils[0])
    b1 = _ref_dsc(b0, p["dw"][0], p["db"][0], p["pw"][0], p["pb"][0], dils[1])
    b2 = _ref_dsc(b0, p["dw"][1], p["db"][1], p["pw"][1], p["pb"][1], dils[2])
    b3 = _ref_dsc(b0, p["dw"][2], p["db"][2], p["pw"][2], p["pb"][2], dils[3])
    b4 = _ref_dsc(b3, p["dw"][3], p["db"][3], p["pw"][3], p["pb"][3], dils[4])
    cat = jnp.concatenate([b0, b1, b2, b3, b4], axis=-1)          # (N,H,W,5C)
    o = jnp.einsum("nhwk,ok->nhwo", cat, p["pjw"]) + p["pjb"].reshape(1, 1, 1, -1)
    o = jax.nn.relu(o)
    return jnp.transpose(o, (0, 3, 1, 2))


# ----------------------------------------------------------------------------
# Deterministic parameter init.  Layouts match the kernel's source layouts; torch
# weights would be repacked the same way: depthwise (C,1,3,3)->(3,3,C), pointwise
# (Co,Ci,1,1)->(Ci,Co), project kept in torch (Co, 5C) layout.
# ----------------------------------------------------------------------------
def init_dpc_params(key, in_channels, out_channels):
    C = out_channels
    ks = jax.random.split(key, 10)
    return {
        "dw0": 0.1 * jax.random.normal(ks[0], (3, 3, in_channels), jnp.float32),
        "db0": 0.1 * jax.random.normal(ks[1], (1, 1, in_channels), jnp.float32),
        "pw0": 0.1 * jax.random.normal(ks[2], (in_channels, C), jnp.float32),
        "pb0": 0.1 * jax.random.normal(ks[3], (1, C), jnp.float32),
        "dw": 0.1 * jax.random.normal(ks[4], (4, 3, 3, C), jnp.float32),
        "db": 0.1 * jax.random.normal(ks[5], (4, 1, 1, C), jnp.float32),
        "pw": 0.1 * jax.random.normal(ks[6], (4, C, C), jnp.float32),
        "pb": 0.1 * jax.random.normal(ks[7], (4, 1, C), jnp.float32),
        "pjw": 0.1 * jax.random.normal(ks[8], (C, 5 * C), jnp.float32),
        "pjb": 0.1 * jax.random.normal(ks[9], (C, 1), jnp.float32),
    }


if __name__ == "__main__":
    N, Cin, H, W = 2, 8, 16, 16
    out_channels = 16
    dilations = (1, 2, 4, 6, 3)          # 5 dilations as the module requires

    key = jax.random.PRNGKey(0)
    kx, kp = jax.random.split(key)
    x = jax.random.normal(kx, (N, Cin, H, W), jnp.float32)   # NCHW like PyTorch
    params = init_dpc_params(kp, Cin, out_channels)

    out = jax.block_until_ready(dpc_forward(x, params, dilations))
    assert out.shape == (N, out_channels, H, W), out.shape

    ref = jax.block_until_ready(_ref_dpc(x, params, dilations))
    err = float(jnp.max(jnp.abs(out - ref)))
    # bf16 MXU operands with f32 accumulation -> widened tolerance (est. max err ~5e-3)
    assert jnp.allclose(out, ref, rtol=3e-2, atol=3e-2), err

    print("KERNEL_OK")
</pallas_src>

<mosaic_0001>
module attributes {stable_mosaic.version = 11 : i64} {
  func.func @_dpc_kernel(%arg0: i32, %arg1: memref<1x18x144xf32, #tpu.memory_space<vmem>>, %arg2: memref<3x3x128xf32, #tpu.memory_space<vmem>>, %arg3: memref<1x128xf32, #tpu.memory_space<vmem>>, %arg4: memref<128x256xbf16, #tpu.memory_space<vmem>>, %arg5: memref<1x256xf32, #tpu.memory_space<vmem>>, %arg6: memref<4x3x3x256xf32, #tpu.memory_space<vmem>>, %arg7: memref<4x1x256xf32, #tpu.memory_space<vmem>>, %arg8: memref<4x256x256xbf16, #tpu.memory_space<vmem>>, %arg9: memref<4x1x256xf32, #tpu.memory_space<vmem>>, %arg10: memref<1280x256xbf16, #tpu.memory_space<vmem>>, %arg11: memref<1x256xf32, #tpu.memory_space<vmem>>, %arg12: memref<1x16x256xf32, #tpu.memory_space<vmem>>, %arg13: memref<30x480xf32, #tpu.memory_space<vmem>>, %arg14: memref<16x1280xbf16, #tpu.memory_space<vmem>>) attributes {dimension_semantics = [#tpu.dimension_semantics<parallel>], iteration_bounds = array<i64: 2>, scalar_prefetch = 0 : i64, scratch_operands = 2 : i64, tpu.core_type = #tpu.core_type<tc>, window_params = [{transform_indices = @transform_0, window_bounds = array<i64: 1, 18, 144>}, {pipeline_mode = #tpu.pipeline_mode<synchronous>, transform_indices = @transform_1, window_bounds = array<i64: 3, 3, 128>}, {pipeline_mode = #tpu.pipeline_mode<synchronous>, transform_indices = @transform_2, window_bounds = array<i64: 1, 128>}, {pipeline_mode = #tpu.pipeline_mode<synchronous>, transform_indices = @transform_3, window_bounds = array<i64: 128, 256>}, {pipeline_mode = #tpu.pipeline_mode<synchronous>, transform_indices = @transform_4, window_bounds = array<i64: 1, 256>}, {pipeline_mode = #tpu.pipeline_mode<synchronous>, transform_indices = @transform_5, window_bounds = array<i64: 4, 3, 3, 256>}, {pipeline_mode = #tpu.pipeline_mode<synchronous>, transform_indices = @transform_6, window_bounds = array<i64: 4, 1, 256>}, {pipeline_mode = #tpu.pipeline_mode<synchronous>, transform_indices = @transform_7, window_bounds = array<i64: 4, 256, 256>}, {pipeline_mode = #tpu.pipeline_mode<synchronous>, transform_indices = @transform_8, window_bounds = array<i64: 4, 1, 256>}, {pipeline_mode = #tpu.pipeline_mode<synchronous>, transform_indices = @transform_9, window_bounds = array<i64: 1280, 256>}, {pipeline_mode = #tpu.pipeline_mode<synchronous>, transform_indices = @transform_10, window_bounds = array<i64: 1, 256>}, {transform_indices = @transform_11, window_bounds = array<i64: 1, 16, 256>}]} {
    %cst = arith.constant 0.000000e+00 : f32
    %0 = vector.broadcast %cst : f32 to vector<8x480xf32>
    %c0 = arith.constant 0 : index
    %c0_0 = arith.constant 0 : index
    %1 = vector.load %arg13[%c0, %c0_0] : memref<30x480xf32, #tpu.memory_space<vmem>>, vector<8x480xf32>
    tpu.vector_store %arg13[%c0, %c0_0], %0 {strides = array<i32>} : memref<30x480xf32, #tpu.memory_space<vmem>>, vector<8x480xf32>,
    %cst_1 = arith.constant 0.000000e+00 : f32
    %2 = vector.broadcast %cst_1 : f32 to vector<6x480xf32>
    %c24 = arith.constant 24 : index
    %c0_2 = arith.constant 0 : index
    %3 = vector.load %arg13[%c24, %c0_2] : memref<30x480xf32, #tpu.memory_space<vmem>>, vector<6x480xf32>
    tpu.vector_store %arg13[%c24, %c0_2], %2 {strides = array<i32>} : memref<30x480xf32, #tpu.memory_space<vmem>>, vector<6x480xf32>,
    %cst_3 = arith.constant 0.000000e+00 : f32
    %4 = vector.broadcast %cst_3 : f32 to vector<16x128xf32>
    %c8 = arith.constant 8 : index
    %c0_4 = arith.constant 0 : index
    %5 = vector.load %arg13[%c8, %c0_4] : memref<30x480xf32, #tpu.memory_space<vmem>>, vector<16x128xf32>
    tpu.vector_store %arg13[%c8, %c0_4], %4 {strides = array<i32>} : memref<30x480xf32, #tpu.memory_space<vmem>>, vector<16x128xf32>,
    %cst_5 = arith.constant 0.000000e+00 : f32
    %6 = vector.broadcast %cst_5 : f32 to vector<16x96xf32>
    %c8_6 = arith.constant 8 : index
    %c384 = arith.constant 384 : index
    %7 = vector.load %arg13[%c8_6, %c384] : memref<30x480xf32, #tpu.memory_space<vmem>>, vector<16x96xf32>
    tpu.vector_store %arg13[%c8_6, %c384], %6 {strides = array<i32>} : memref<30x480xf32, #tpu.memory_space<vmem>>, vector<16x96xf32>,
    %c0_7 = arith.constant 0 : index
    %c0_8 = arith.constant 0 : index
    %c0_9 = arith.constant 0 : index
    %8 = vector.load %arg2[%c0_7, %c0_8, %c0_9] : memref<3x3x128xf32, #tpu.memory_space<vmem>>, vector<3x3x128xf32>
    %c0_10 = arith.constant 0 : index
    %c0_11 = arith.constant 0 : index
    %9 = vector.load %arg3[%c0_10, %c0_11] : memref<1x128xf32, #tpu.memory_space<vmem>>, vector<1x128xf32>
    %c0_12 = arith.constant 0 : index
    %c0_13 = arith.constant 0 : index
    %c0_14 = arith.constant 0 : index
    %10 = vector.load %arg1[%c0_12, %c0_13, %c0_14] : memref<1x18x144xf32, #tpu.memory_space<vmem>>, vector<1x16x128xf32>
    %11 = vector.shape_cast %10 : vector<1x16x128xf32> to vector<16x128xf32>
    %12 = vector.extract_strided_slice %8 {offsets = [0, 0, 0], sizes = [1, 1, 128], strides = [1, 1, 1]} : vector<3x3x128xf32> to vector<1x1x128xf32>
    %13 = vector.shape_cast %12 : vector<1x1x128xf32> to vector<128xf32>
    %14 = vector.shape_cast %13 : vector<128xf32> to vector<1x128xf32>
    %15 = vector.broadcast %14 : vector<1x128xf32> to vector<16x128xf32>
    %16 = arith.mulf %11, %15 : vector<16x128xf32>
    %c0_15 = arith.constant 0 : index
    %c0_16 = arith.constant 0 : index
    %c8_17 = arith.constant 8 : index
    %17 = vector.load %arg1[%c0_15, %c0_16, %c8_17] : memref<1x18x144xf32, #tpu.memory_space<vmem>>, vector<1x16x128xf32>
    %18 = vector.shape_cast %17 : vector<1x16x128xf32> to vector<16x128xf32>
    %19 = vector.extract_strided_slice %8 {offsets = [0, 1, 0], sizes = [1, 1, 128], strides = [1, 1, 1]} : vector<3x3x128xf32> to vector<1x1x128xf32>
    %20 = vector.shape_cast %19 : vector<1x1x128xf32> to vector<128xf32>
    %21 = vector.shape_cast %20 : vector<128xf32> to vector<1x128xf32>
    %22 = vector.broadcast %21 : vector<1x128xf32> to vector<16x128xf32>
    %23 = arith.mulf %18, %22 : vector<16x128xf32>
    %24 = arith.addf %16, %23 : vector<16x128xf32>
    %c0_18 = arith.constant 0 : index
    %c0_19 = arith.constant 0 : index
    %c16 = arith.constant 16 : index
    %25 = vector.load %arg1[%c0_18, %c0_19, %c16] : memref<1x18x144xf32, #tpu.memory_space<vmem>>, vector<1x16x128xf32>
    %26 = vector.shape_cast %25 : vector<1x16x128xf32> to vector<16x128xf32>
    %27 = vector.extract_strided_slice %8 {offsets = [0, 2, 0], sizes = [1, 1, 128], strides = [1, 1, 1]} : vector<3x3x128xf32> to vector<1x1x128xf32>
    %28 = vector.shape_cast %27 : vector<1x1x128xf32> to vector<128xf32>
    %29 = vector.shape_cast %28 : vector<128xf32> to vector<1x128xf32>
    %30 = vector.broadcast %29 : vector<1x128xf32> to vector<16x128xf32>
    %31 = arith.mulf %26, %30 : vector<16x128xf32>
    %32 = arith.addf %24, %31 : vector<16x128xf32>
    %c0_20 = arith.constant 0 : index
    %c1 = arith.constant 1 : index
    %c0_21 = arith.constant 0 : index
    %33 = vector.load %arg1[%c0_20, %c1, %c0_21] : memref<1x18x144xf32, #tpu.memory_space<vmem>>, vector<1x16x128xf32>
    %34 = vector.shape_cast %33 : vector<1x16x128xf32> to vector<16x128xf32>
    %35 = vector.extract_strided_slice %8 {offsets = [1, 0, 0], sizes = [1, 1, 128], strides = [1, 1, 1]} : vector<3x3x128xf32> to vector<1x1x128xf32>
    %36 = vector.shape_cast %35 : vector<1x1x128xf32> to vector<128xf32>
    %37 = vector.shape_cast %36 : vector<128xf32> to vector<1x128xf32>
    %38 = vector.broadcast %37 : vector<1x128xf32> to vector<16x128xf32>
    %39 = arith.mulf %34, %38 : vector<16x128xf32>
    %40 = arith.addf %32, %39 : vector<16x128xf32>
    %c0_22 = arith.constant 0 : index
    %c1_23 = arith.constant 1 : index
    %c8_24 = arith.constant 8 : index
    %41 = vector.load %arg1[%c0_22, %c1_23, %c8_24] : memref<1x18x144xf32, #tpu.memory_space<vmem>>, vector<1x16x128xf32>
    %42 = vector.shape_cast %41 : vector<1x16x128xf32> to vector<16x128xf32>
    %43 = vector.extract_strided_slice %8 {offsets = [1, 1, 0], sizes = [1, 1, 128], strides = [1, 1, 1]} : vector<3x3x128xf32> to vector<1x1x128xf32>
    %44 = vector.shape_cast %43 : vector<1x1x128xf32> to vector<128xf32>
    %45 = vector.shape_cast %44 : vector<128xf32> to vector<1x128xf32>
    %46 = vector.broadcast %45 : vector<1x128xf32> to vector<16x128xf32>
    %47 = arith.mulf %42, %46 : vector<16x128xf32>
    %48 = arith.addf %40, %47 : vector<16x128xf32>
    %c0_25 = arith.constant 0 : index
    %c1_26 = arith.constant 1 : index
    %c16_27 = arith.constant 16 : index
    %49 = vector.load %arg1[%c0_25, %c1_26, %c16_27] : memref<1x18x144xf32, #tpu.memory_space<vmem>>, vector<1x16x128xf32>
    %50 = vector.shape_cast %49 : vector<1x16x128xf32> to vector<16x128xf32>
    %51 = vector.extract_strided_slice %8 {offsets = [1, 2, 0], sizes = [1, 1, 128], strides = [1, 1, 1]} : vector<3x3x128xf32> to vector<1x1x128xf32>
    %52 = vector.shape_cast %51 : vector<1x1x128xf32> to vector<128xf32>
    %53 = vector.shape_cast %52 : vector<128xf32> to vector<1x128xf32>
    %54 = vector.broadcast %53 : vector<1x128xf32> to vector<16x128xf32>
    %55 = arith.mulf %50, %54 : vector<16x128xf32>
    %56 = arith.addf %48, %55 : vector<16x128xf32>
    %c0_28 = arith.constant 0 : index
    %c2 = arith.constant 2 : index
    %c0_29 = arith.constant 0 : index
    %57 = vector.load %arg1[%c0_28, %c2, %c0_29] : memref<1x18x144xf32, #tpu.memory_space<vmem>>, vector<1x16x128xf32>
    %58 = vector.shape_cast %57 : vector<1x16x128xf32> to vector<16x128xf32>
    %59 = vector.extract_strided_slice %8 {offsets = [2, 0, 0], sizes = [1, 1, 128], strides = [1, 1, 1]} : vector<3x3x128xf32> to vector<1x1x128xf32>
    %60 = vector.shape_cast %59 : vector<1x1x128xf32> to vector<128xf32>
    %61 = vector.shape_cast %60 : vector<128xf32> to vector<1x128xf32>
    %62 = vector.broadcast %61 : vector<1x128xf32> to vector<16x128xf32>
    %63 = arith.mulf %58, %62 : vector<16x128xf32>
    %64 = arith.addf %56, %63 : vector<16x128xf32>
    %c0_30 = arith.constant 0 : index
    %c2_31 = arith.constant 2 : index
    %c8_32 = arith.constant 8 : index
    %65 = vector.load %arg1[%c0_30, %c2_31, %c8_32] : memref<1x18x144xf32, #tpu.memory_space<vmem>>, vector<1x16x128xf32>
    %66 = vector.shape_cast %65 : vector<1x16x128xf32> to vector<16x128xf32>
    %67 = vector.extract_strided_slice %8 {offsets = [2, 1, 0], sizes = [1, 1, 128], strides = [1, 1, 1]} : vector<3x3x128xf32> to vector<1x1x128xf32>
    %68 = vector.shape_cast %67 : vector<1x1x128xf32> to vector<128xf32>
    %69 = vector.shape_cast %68 : vector<128xf32> to vector<1x128xf32>
    %70 = vector.broadcast %69 : vector<1x128xf32> to vector<16x128xf32>
    %71 = arith.mulf %66, %70 : vector<16x128xf32>
    %72 = arith.addf %64, %71 : vector<16x128xf32>
    %c0_33 = arith.constant 0 : index
    %c2_34 = arith.constant 2 : index
    %c16_35 = arith.constant 16 : index
    %73 = vector.load %arg1[%c0_33, %c2_34, %c16_35] : memref<1x18x144xf32, #tpu.memory_space<vmem>>, vector<1x16x128xf32>
    %74 = vector.shape_cast %73 : vector<1x16x128xf32> to vector<16x128xf32>
    %75 = vector.extract_strided_slice %8 {offsets = [2, 2, 0], sizes = [1, 1, 128], strides = [1, 1, 1]} : vector<3x3x128xf32> to vector<1x1x128xf32>
    %76 = vector.shape_cast %75 : vector<1x1x128xf32> to vector<128xf32>
    %77 = vector.shape_cast %76 : vector<128xf32> to vector<1x128xf32>
    %78 = vector.broadcast %77 : vector<1x128xf32> to vector<16x128xf32>
    %79 = arith.mulf %74, %78 : vector<16x128xf32>
    %80 = arith.addf %72, %79 : vector<16x128xf32>
    %81 = vector.broadcast %9 : vector<1x128xf32> to vector<16x128xf32>
    %82 = arith.addf %80, %81 : vector<16x128xf32>
    %cst_36 = arith.constant 0.000000e+00 : f32
    %83 = vector.broadcast %cst_36 : f32 to vector<16x128xf32>
    %84 = arith.maximumf %82, %83 : vector<16x128xf32>
    %c0_37 = arith.constant 0 : index
    %c0_38 = arith.constant 0 : index
    %85 = vector.load %arg4[%c0_37, %c0_38] : memref<128x256xbf16, #tpu.memory_space<vmem>>, vector<128x256xbf16>
    %c0_39 = arith.constant 0 : index
    %c0_40 = arith.constant 0 : index
    %86 = vector.load %arg5[%c0_39, %c0_40] : memref<1x256xf32, #tpu.memory_space<vmem>>, vector<1x256xf32>
    %87 = arith.truncf %84 : vector<16x128xf32> to vector<16x128xbf16>
    %cst_41 = arith.constant dense<0.000000e+00> : vector<16x256xf32>
    %88 = tpu.matmul %87, %85, %cst_41 {dimension_numbers = #tpu.dot_dimension_numbers<[1], [0], [0], [1], [0, 0, 1, 1], [], []>} : vector<16x128xbf16>, vector<128x256xbf16>, vector<16x256xf32> -> vector<16x256xf32>
    %89 = vector.broadcast %86 : vector<1x256xf32> to vector<16x256xf32>
    %90 = arith.addf %88, %89 : vector<16x256xf32>
    %cst_42 = arith.constant 0.000000e+00 : f32
    %91 = vector.broadcast %cst_42 : f32 to vector<16x256xf32>
    %92 = arith.maximumf %90, %91 : vector<16x256xf32>
    %93 = arith.truncf %92 : vector<16x256xf32> to vector<16x256xbf16>
    %c0_43 = arith.constant 0 : index
    %c0_44 = arith.constant 0 : index
    %94 = vector.load %arg14[%c0_43, %c0_44] : memref<16x1280xbf16, #tpu.memory_space<vmem>>, vector<16x256xbf16>
    tpu.vector_store %arg14[%c0_43, %c0_44], %93 {strides = array<i32>} : memref<16x1280xbf16, #tpu.memory_space<vmem>>, vector<16x256xbf16>,
    %c8_45 = arith.constant 8 : index
    %c128 = arith.constant 128 : index
    %95 = vector.load %arg13[%c8_45, %c128] : memref<30x480xf32, #tpu.memory_space<vmem>>, vector<16x256xf32>
    tpu.vector_store %arg13[%c8_45, %c128], %92 {strides = array<i32>} : memref<30x480xf32, #tpu.memory_space<vmem>>, vector<16x256xf32>,
    %c0_46 = arith.constant 0 : index
    %c0_47 = arith.constant 0 : index
    %c0_48 = arith.constant 0 : index
    %c0_49 = arith.constant 0 : index
    %96 = vector.load %arg6[%c0_46, %c0_47, %c0_48, %c0_49] : memref<4x3x3x256xf32, #tpu.memory_space<vmem>>, vector<1x3x3x256xf32>
    %97 = vector.shape_cast %96 : vector<1x3x3x256xf32> to vector<3x3x256xf32>
    %c0_50 = arith.constant 0 : index
    %c0_51 = arith.constant 0 : index
    %c0_52 = arith.constant 0 : index
    %98 = vector.load %arg7[%c0_50, %c0_51, %c0_52] : memref<4x1x256xf32, #tpu.memory_space<vmem>>, vector<1x1x256xf32>
    %99 = vector.shape_cast %98 : vector<1x1x256xf32> to vector<1x256xf32>
    %c6 = arith.constant 6 : index
    %c96 = arith.constant 96 : index
    %100 = vector.load %arg13[%c6, %c96] : memref<30x480xf32, #tpu.memory_space<vmem>>, vector<16x256xf32>
    %101 = vector.extract_strided_slice %97 {offsets = [0, 0, 0], sizes = [1, 1, 256], strides = [1, 1, 1]} : vector<3x3x256xf32> to vector<1x1x256xf32>
    %102 = vector.shape_cast %101 : vector<1x1x256xf32> to vector<256xf32>
    %103 = vector.shape_cast %102 : vector<256xf32> to vector<1x256xf32>
    %104 = vector.broadcast %103 : vector<1x256xf32> to vector<16x256xf32>
    %105 = arith.mulf %100, %104 : vector<16x256xf32>
    %c6_53 = arith.constant 6 : index
    %c128_54 = arith.constant 128 : index
    %106 = vector.load %arg13[%c6_53, %c128_54] : memref<30x480xf32, #tpu.memory_space<vmem>>, vector<16x256xf32>
    %107 = vector.extract_strided_slice %97 {offsets = [0, 1, 0], sizes = [1, 1, 256], strides = [1, 1, 1]} : vector<3x3x256xf32> to vector<1x1x256xf32>
    %108 = vector.shape_cast %107 : vector<1x1x256xf32> to vector<256xf32>
    %109 = vector.shape_cast %108 : vector<256xf32> to vector<1x256xf32>
    %110 = vector.broadcast %109 : vector<1x256xf32> to vector<16x256xf32>
    %111 = arith.mulf %106, %110 : vector<16x256xf32>
    %112 = arith.addf %105, %111 : vector<16x256xf32>
    %c6_55 = arith.constant 6 : index
    %c160 = arith.constant 160 : index
    %113 = vector.load %arg13[%c6_55, %c160] : memref<30x480xf32, #tpu.memory_space<vmem>>, vector<16x256xf32>
    %114 = vector.extract_strided_slice %97 {offsets = [0, 2, 0], sizes = [1, 1, 256], strides = [1, 1, 1]} : vector<3x3x256xf32> to vector<1x1x256xf32>
    %115 = vector.shape_cast %114 : vector<1x1x256xf32> to vector<256xf32>
    %116 = vector.shape_cast %115 : vector<256xf32> to vector<1x256xf32>
    %117 = vector.broadcast %116 : vector<1x256xf32> to vector<16x256xf32>
    %118 = arith.mulf %113, %117 : vector<16x256xf32>
    %119 = arith.addf %112, %118 : vector<16x256xf32>
    %c8_56 = arith.constant 8 : index
    %c96_57 = arith.constant 96 : index
    %120 = vector.load %arg13[%c8_56, %c96_57] : memref<30x480xf32, #tpu.memory_space<vmem>>, vector<16x256xf32>
    %121 = vector.extract_strided_slice %97 {offsets = [1, 0, 0], sizes = [1, 1, 256], strides = [1, 1, 1]} : vector<3x3x256xf32> to vector<1x1x256xf32>
    %122 = vector.shape_cast %121 : vector<1x1x256xf32> to vector<256xf32>
    %123 = vector.shape_cast %122 : vector<256xf32> to vector<1x256xf32>
    %124 = vector.broadcast %123 : vector<1x256xf32> to vector<16x256xf32>
    %125 = arith.mulf %120, %124 : vector<16x256xf32>
    %126 = arith.addf %119, %125 : vector<16x256xf32>
    %c8_58 = arith.constant 8 : index
    %c128_59 = arith.constant 128 : index
    %127 = vector.load %arg13[%c8_58, %c128_59] : memref<30x480xf32, #tpu.memory_space<vmem>>, vector<16x256xf32>
    %128 = vector.extract_strided_slice %97 {offsets = [1, 1, 0], sizes = [1, 1, 256], strides = [1, 1, 1]} : vector<3x3x256xf32> to vector<1x1x256xf32>
    %129 = vector.shape_cast %128 : vector<1x1x256xf32> to vector<256xf32>
    %130 = vector.shape_cast %129 : vector<256xf32> to vector<1x256xf32>
    %131 = vector.broadcast %130 : vector<1x256xf32> to vector<16x256xf32>
    %132 = arith.mulf %127, %131 : vector<16x256xf32>
    %133 = arith.addf %126, %132 : vector<16x256xf32>
    %c8_60 = arith.constant 8 : index
    %c160_61 = arith.constant 160 : index
    %134 = vector.load %arg13[%c8_60, %c160_61] : memref<30x480xf32, #tpu.memory_space<vmem>>, vector<16x256xf32>
    %135 = vector.extract_strided_slice %97 {offsets = [1, 2, 0], sizes = [1, 1, 256], strides = [1, 1, 1]} : vector<3x3x256xf32> to vector<1x1x256xf32>
    %136 = vector.shape_cast %135 : vector<1x1x256xf32> to vector<256xf32>
    %137 = vector.shape_cast %136 : vector<256xf32> to vector<1x256xf32>
    %138 = vector.broadcast %137 : vector<1x256xf32> to vector<16x256xf32>
    %139 = arith.mulf %134, %138 : vector<16x256xf32>
    %140 = arith.addf %133, %139 : vector<16x256xf32>
    %c10 = arith.constant 10 : index
    %c96_62 = arith.constant 96 : index
    %141 = vector.load %arg13[%c10, %c96_62] : memref<30x480xf32, #tpu.memory_space<vmem>>, vector<16x256xf32>
    %142 = vector.extract_strided_slice %97 {offsets = [2, 0, 0], sizes = [1, 1, 256], strides = [1, 1, 1]} : vector<3x3x256xf32> to vector<1x1x256xf32>
    %143 = vector.shape_cast %142 : vector<1x1x256xf32> to vector<256xf32>
    %144 = vector.shape_cast %143 : vector<256xf32> to vector<1x256xf32>
    %145 = vector.broadcast %144 : vector<1x256xf32> to vector<16x256xf32>
    %146 = arith.mulf %141, %145 : vector<16x256xf32>
    %147 = arith.addf %140, %146 : vector<16x256xf32>
    %c10_63 = arith.constant 10 : index
    %c128_64 = arith.constant 128 : index
    %148 = vector.load %arg13[%c10_63, %c128_64] : memref<30x480xf32, #tpu.memory_space<vmem>>, vector<16x256xf32>
    %149 = vector.extract_strided_slice %97 {offsets = [2, 1, 0], sizes = [1, 1, 256], strides = [1, 1, 1]} : vector<3x3x256xf32> to vector<1x1x256xf32>
    %150 = vector.shape_cast %149 : vector<1x1x256xf32> to vector<256xf32>
    %151 = vector.shape_cast %150 : vector<256xf32> to vector<1x256xf32>
    %152 = vector.broadcast %151 : vector<1x256xf32> to vector<16x256xf32>
    %153 = arith.mulf %148, %152 : vector<16x256xf32>
    %154 = arith.addf %147, %153 : vector<16x256xf32>
    %c10_65 = arith.constant 10 : index
    %c160_66 = arith.constant 160 : index
    %155 = vector.load %arg13[%c10_65, %c160_66] : memref<30x480xf32, #tpu.memory_space<vmem>>, vector<16x256xf32>
    %156 = vector.extract_strided_slice %97 {offsets = [2, 2, 0], sizes = [1, 1, 256], strides = [1, 1, 1]} : vector<3x3x256xf32> to vector<1x1x256xf32>
    %157 = vector.shape_cast %156 : vector<1x1x256xf32> to vector<256xf32>
    %158 = vector.shape_cast %157 : vector<256xf32> to vector<1x256xf32>
    %159 = vector.broadcast %158 : vector<1x256xf32> to vector<16x256xf32>
    %160 = arith.mulf %155, %159 : vector<16x256xf32>
    %161 = arith.addf %154, %160 : vector<16x256xf32>
    %162 = vector.broadcast %99 : vector<1x256xf32> to vector<16x256xf32>
    %163 = arith.addf %161, %162 : vector<16x256xf32>
    %cst_67 = arith.constant 0.000000e+00 : f32
    %164 = vector.broadcast %cst_67 : f32 to vector<16x256xf32>
    %165 = arith.maximumf %163, %164 : vector<16x256xf32>
    %c0_68 = arith.constant 0 : index
    %c0_69 = arith.constant 0 : index
    %c0_70 = arith.constant 0 : index
    %166 = vector.load %arg8[%c0_68, %c0_69, %c0_70] : memref<4x256x256xbf16, #tpu.memory_space<vmem>>, vector<1x256x256xbf16>
    %167 = vector.shape_cast %166 : vector<1x256x256xbf16> to vector<256x256xbf16>
    %c0_71 = arith.constant 0 : index
    %c0_72 = arith.constant 0 : index
    %c0_73 = arith.constant 0 : index
    %168 = vector.load %arg9[%c0_71, %c0_72, %c0_73] : memref<4x1x256xf32, #tpu.memory_space<vmem>>, vector<1x1x256xf32>
    %169 = vector.shape_cast %168 : vector<1x1x256xf32> to vector<1x256xf32>
    %170 = arith.truncf %165 : vector<16x256xf32> to vector<16x256xbf16>
    %cst_74 = arith.constant dense<0.000000e+00> : vector<16x256xf32>
    %171 = tpu.matmul %170, %167, %cst_74 {dimension_numbers = #tpu.dot_dimension_numbers<[1], [0], [0], [1], [0, 0, 1, 1], [], []>} : vector<16x256xbf16>, vector<256x256xbf16>, vector<16x256xf32> -> vector<16x256xf32>
    %172 = vector.broadcast %169 : vector<1x256xf32> to vector<16x256xf32>
    %173 = arith.addf %171, %172 : vector<16x256xf32>
    %cst_75 = arith.constant 0.000000e+00 : f32
    %174 = vector.broadcast %cst_75 : f32 to vector<16x256xf32>
    %175 = arith.maximumf %173, %174 : vector<16x256xf32>
    %176 = arith.truncf %175 : vector<16x256xf32> to vector<16x256xbf16>
    %c0_76 = arith.constant 0 : index
    %c256 = arith.constant 256 : index
    %177 = vector.load %arg14[%c0_76, %c256] : memref<16x1280xbf16, #tpu.memory_space<vmem>>, vector<16x256xbf16>
    tpu.vector_store %arg14[%c0_76, %c256], %176 {strides = array<i32>} : memref<16x1280xbf16, #tpu.memory_space<vmem>>, vector<16x256xbf16>,
    %c1_77 = arith.constant 1 : index
    %c0_78 = arith.constant 0 : index
    %c0_79 = arith.constant 0 : index
    %c0_80 = arith.constant 0 : index
    %178 = vector.load %arg6[%c1_77, %c0_78, %c0_79, %c0_80] : memref<4x3x3x256xf32, #tpu.memory_space<vmem>>, vector<1x3x3x256xf32>
    %179 = vector.shape_cast %178 : vector<1x3x3x256xf32> to vector<3x3x256xf32>
    %c1_81 = arith.constant 1 : index
    %c0_82 = arith.constant 0 : index
    %c0_83 = arith.constant 0 : index
    %180 = vector.load %arg7[%c1_81, %c0_82, %c0_83] : memref<4x1x256xf32, #tpu.memory_space<vmem>>, vector<1x1x256xf32>
    %181 = vector.shape_cast %180 : vector<1x1x256xf32> to vector<1x256xf32>
    %c4 = arith.constant 4 : index
    %c64 = arith.constant 64 : index
    %182 = vector.load %arg13[%c4, %c64] : memref<30x480xf32, #tpu.memory_space<vmem>>, vector<16x256xf32>
    %183 = vector.extract_strided_slice %179 {offsets = [0, 0, 0], sizes = [1, 1, 256], strides = [1, 1, 1]} : vector<3x3x256xf32> to vector<1x1x256xf32>
    %184 = vector.shape_cast %183 : vector<1x1x256xf32> to vector<256xf32>
    %185 = vector.shape_cast %184 : vector<256xf32> to vector<1x256xf32>
    %186 = vector.broadcast %185 : vector<1x256xf32> to vector<16x256xf32>
    %187 = arith.mulf %182, %186 : vector<16x256xf32>
    %c4_84 = arith.constant 4 : index
    %c128_85 = arith.constant 128 : index
    %188 = vector.load %arg13[%c4_84, %c128_85] : memref<30x480xf32, #tpu.memory_space<vmem>>, vector<16x256xf32>
    %189 = vector.extract_strided_slice %179 {offsets = [0, 1, 0], sizes = [1, 1, 256], strides = [1, 1, 1]} : vector<3x3x256xf32> to vector<1x1x256xf32>
    %190 = vector.shape_cast %189 : vector<1x1x256xf32> to vector<256xf32>
    %191 = vector.shape_cast %190 : vector<256xf32> to vector<1x256xf32>
    %192 = vector.broadcast %191 : vector<1x256xf32> to vector<16x256xf32>
    %193 = arith.mulf %188, %192 : vector<16x256xf32>
    %194 = arith.addf %187, %193 : vector<16x256xf32>
    %c4_86 = arith.constant 4 : index
    %c192 = arith.constant 192 : index
    %195 = vector.load %arg13[%c4_86, %c192] : memref<30x480xf32, #tpu.memory_space<vmem>>, vector<16x256xf32>
    %196 = vector.extract_strided_slice %179 {offsets = [0, 2, 0], sizes = [1, 1, 256], strides = [1, 1, 1]} : vector<3x3x256xf32> to vector<1x1x256xf32>
    %197 = vector.shape_cast %196 : vector<1x1x256xf32> to vector<256xf32>
    %198 = vector.shape_cast %197 : vector<256xf32> to vector<1x256xf32>
    %199 = vector.broadcast %198 : vector<1x256xf32> to vector<16x256xf32>
    %200 = arith.mulf %195, %199 : vector<16x256xf32>
    %201 = arith.addf %194, %200 : vector<16x256xf32>
    %c8_87 = arith.constant 8 : index
    %c64_88 = arith.constant 64 : index
    %202 = vector.load %arg13[%c8_87, %c64_88] : memref<30x480xf32, #tpu.memory_space<vmem>>, vector<16x256xf32>
    %203 = vector.extract_strided_slice %179 {offsets = [1, 0, 0], sizes = [1, 1, 256], strides = [1, 1, 1]} : vector<3x3x256xf32> to vector<1x1x256xf32>
    %204 = vector.shape_cast %203 : vector<1x1x256xf32> to vector<256xf32>
    %205 = vector.shape_cast %204 : vector<256xf32> to vector<1x256xf32>
    %206 = vector.broadcast %205 : vector<1x256xf32> to vector<16x256xf32>
    %207 = arith.mulf %202, %206 : vector<16x256xf32>
    %208 = arith.addf %201, %207 : vector<16x256xf32>
    %c8_89 = arith.constant 8 : index
    %c128_90 = arith.constant 128 : index
    %209 = vector.load %arg13[%c8_89, %c128_90] : memref<30x480xf32, #tpu.memory_space<vmem>>, vector<16x256xf32>
    %210 = vector.extract_strided_slice %179 {offsets = [1, 1, 0], sizes = [1, 1, 256], strides = [1, 1, 1]} : vector<3x3x256xf32> to vector<1x1x256xf32>
    %211 = vector.shape_cast %210 : vector<1x1x256xf32> to vector<256xf32>
    %212 = vector.shape_cast %211 : vector<256xf32> to vector<1x256xf32>
    %213 = vector.broadcast %212 : vector<1x256xf32> to vector<16x256xf32>
    %214 = arith.mulf %209, %213 : vector<16x256xf32>
    %215 = arith.addf %208, %214 : vector<16x256xf32>
    %c8_91 = arith.constant 8 : index
    %c192_92 = arith.constant 192 : index
    %216 = vector.load %arg13[%c8_91, %c192_92] : memref<30x480xf32, #tpu.memory_space<vmem>>, vector<16x256xf32>
    %217 = vector.extract_strided_slice %179 {offsets = [1, 2, 0], sizes = [1, 1, 256], strides = [1, 1, 1]} : vector<3x3x256xf32> to vector<1x1x256xf32>
    %218 = vector.shape_cast %217 : vector<1x1x256xf32> to vector<256xf32>
    %219 = vector.shape_cast %218 : vector<256xf32> to vector<1x256xf32>
    %220 = vector.broadcast %219 : vector<1x256xf32> to vector<16x256xf32>
    %221 = arith.mulf %216, %220 : vector<16x256xf32>
    %222 = arith.addf %215, %221 : vector<16x256xf32>
    %c12 = arith.constant 12 : index
    %c64_93 = arith.constant 64 : index
    %223 = vector.load %arg13[%c12, %c64_93] : memref<30x480xf32, #tpu.memory_space<vmem>>, vector<16x256xf32>
    %224 = vector.extract_strided_slice %179 {offsets = [2, 0, 0], sizes = [1, 1, 256], strides = [1, 1, 1]} : vector<3x3x256xf32> to vector<1x1x256xf32>
    %225 = vector.shape_cast %224 : vector<1x1x256xf32> to vector<256xf32>
    %226 = vector.shape_cast %225 : vector<256xf32> to vector<1x256xf32>
    %227 = vector.broadcast %226 : vector<1x256xf32> to vector<16x256xf32>
    %228 = arith.mulf %223, %227 : vector<16x256xf32>
    %229 = arith.addf %222, %228 : vector<16x256xf32>
    %c12_94 = arith.constant 12 : index
    %c128_95 = arith.constant 128 : index
    %230 = vector.load %arg13[%c12_94, %c128_95] : memref<30x480xf32, #tpu.memory_space<vmem>>, vector<16x256xf32>
    %231 = vector.extract_strided_slice %179 {offsets = [2, 1, 0], sizes = [1, 1, 256], strides = [1, 1, 1]} : vector<3x3x256xf32> to vector<1x1x256xf32>
    %232 = vector.shape_cast %231 : vector<1x1x256xf32> to vector<256xf32>
    %233 = vector.shape_cast %232 : vector<256xf32> to vector<1x256xf32>
    %234 = vector.broadcast %233 : vector<1x256xf32> to vector<16x256xf32>
    %235 = arith.mulf %230, %234 : vector<16x256xf32>
    %236 = arith.addf %229, %235 : vector<16x256xf32>
    %c12_96 = arith.constant 12 : index
    %c192_97 = arith.constant 192 : index
    %237 = vector.load %arg13[%c12_96, %c192_97] : memref<30x480xf32, #tpu.memory_space<vmem>>, vector<16x256xf32>
    %238 = vector.extract_strided_slice %179 {offsets = [2, 2, 0], sizes = [1, 1, 256], strides = [1, 1, 1]} : vector<3x3x256xf32> to vector<1x1x256xf32>
    %239 = vector.shape_cast %238 : vector<1x1x256xf32> to vector<256xf32>
    %240 = vector.shape_cast %239 : vector<256xf32> to vector<1x256xf32>
    %241 = vector.broadcast %240 : vector<1x256xf32> to vector<16x256xf32>
    %242 = arith.mulf %237, %241 : vector<16x256xf32>
    %243 = arith.addf %236, %242 : vector<16x256xf32>
    %244 = vector.broadcast %181 : vector<1x256xf32> to vector<16x256xf32>
    %245 = arith.addf %243, %244 : vector<16x256xf32>
    %cst_98 = arith.constant 0.000000e+00 : f32
    %246 = vector.broadcast %cst_98 : f32 to vector<16x256xf32>
    %247 = arith.maximumf %245, %246 : vector<16x256xf32>
    %c1_99 = arith.constant 1 : index
    %c0_100 = arith.constant 0 : index
    %c0_101 = arith.constant 0 : index
    %248 = vector.load %arg8[%c1_99, %c0_100, %c0_101] : memref<4x256x256xbf16, #tpu.memory_space<vmem>>, vector<1x256x256xbf16>
    %249 = vector.shape_cast %248 : vector<1x256x256xbf16> to vector<256x256xbf16>
    %c1_102 = arith.constant 1 : index
    %c0_103 = arith.constant 0 : index
    %c0_104 = arith.constant 0 : index
    %250 = vector.load %arg9[%c1_102, %c0_103, %c0_104] : memref<4x1x256xf32, #tpu.memory_space<vmem>>, vector<1x1x256xf32>
    %251 = vector.shape_cast %250 : vector<1x1x256xf32> to vector<1x256xf32>
    %252 = arith.truncf %247 : vector<16x256xf32> to vector<16x256xbf16>
    %cst_105 = arith.constant dense<0.000000e+00> : vector<16x256xf32>
    %253 = tpu.matmul %252, %249, %cst_105 {dimension_numbers = #tpu.dot_dimension_numbers<[1], [0], [0], [1], [0, 0, 1, 1], [], []>} : vector<16x256xbf16>, vector<256x256xbf16>, vector<16x256xf32> -> vector<16x256xf32>
    %254 = vector.broadcast %251 : vector<1x256xf32> to vector<16x256xf32>
    %255 = arith.addf %253, %254 : vector<16x256xf32>
    %cst_106 = arith.constant 0.000000e+00 : f32
    %256 = vector.broadcast %cst_106 : f32 to vector<16x256xf32>
    %257 = arith.maximumf %255, %256 : vector<16x256xf32>
    %258 = arith.truncf %257 : vector<16x256xf32> to vector<16x256xbf16>
    %c0_107 = arith.constant 0 : index
    %c512 = arith.constant 512 : index
    %259 = vector.load %arg14[%c0_107, %c512] : memref<16x1280xbf16, #tpu.memory_space<vmem>>, vector<16x256xbf16>
    tpu.vector_store %arg14[%c0_107, %c512], %258 {strides = array<i32>} : memref<16x1280xbf16, #tpu.memory_space<vmem>>, vector<16x256xbf16>,
    %c2_108 = arith.constant 2 : index
    %c0_109 = arith.constant 0 : index
    %c0_110 = arith.constant 0 : index
    %c0_111 = arith.constant 0 : index
    %260 = vector.load %arg6[%c2_108, %c0_109, %c0_110, %c0_111] : memref<4x3x3x256xf32, #tpu.memory_space<vmem>>, vector<1x3x3x256xf32>
    %261 = vector.shape_cast %260 : vector<1x3x3x256xf32> to vector<3x3x256xf32>
    %c2_112 = arith.constant 2 : index
    %c0_113 = arith.constant 0 : index
    %c0_114 = arith.constant 0 : index
    %262 = vector.load %arg7[%c2_112, %c0_113, %c0_114] : memref<4x1x256xf32, #tpu.memory_space<vmem>>, vector<1x1x256xf32>
    %263 = vector.shape_cast %262 : vector<1x1x256xf32> to vector<1x256xf32>
    %c2_115 = arith.constant 2 : index
    %c32 = arith.constant 32 : index
    %264 = vector.load %arg13[%c2_115, %c32] : memref<30x480xf32, #tpu.memory_space<vmem>>, vector<16x256xf32>
    %265 = vector.extract_strided_slice %261 {offsets = [0, 0, 0], sizes = [1, 1, 256], strides = [1, 1, 1]} : vector<3x3x256xf32> to vector<1x1x256xf32>
    %266 = vector.shape_cast %265 : vector<1x1x256xf32> to vector<256xf32>
    %267 = vector.shape_cast %266 : vector<256xf32> to vector<1x256xf32>
    %268 = vector.broadcast %267 : vector<1x256xf32> to vector<16x256xf32>
    %269 = arith.mulf %264, %268 : vector<16x256xf32>
    %c2_116 = arith.constant 2 : index
    %c128_117 = arith.constant 128 : index
    %270 = vector.load %arg13[%c2_116, %c128_117] : memref<30x480xf32, #tpu.memory_space<vmem>>, vector<16x256xf32>
    %271 = vector.extract_strided_slice %261 {offsets = [0, 1, 0], sizes = [1, 1, 256], strides = [1, 1, 1]} : vector<3x3x256xf32> to vector<1x1x256xf32>
    %272 = vector.shape_cast %271 : vector<1x1x256xf32> to vector<256xf32>
    %273 = vector.shape_cast %272 : vector<256xf32> to vector<1x256xf32>
    %274 = vector.broadcast %273 : vector<1x256xf32> to vector<16x256xf32>
    %275 = arith.mulf %270, %274 : vector<16x256xf32>
    %276 = arith.addf %269, %275 : vector<16x256xf32>
    %c2_118 = arith.constant 2 : index
    %c224 = arith.constant 224 : index
    %277 = vector.load %arg13[%c2_118, %c224] : memref<30x480xf32, #tpu.memory_space<vmem>>, vector<16x256xf32>
    %278 = vector.extract_strided_slice %261 {offsets = [0, 2, 0], sizes = [1, 1, 256], strides = [1, 1, 1]} : vector<3x3x256xf32> to vector<1x1x256xf32>
    %279 = vector.shape_cast %278 : vector<1x1x256xf32> to vector<256xf32>
    %280 = vector.shape_cast %279 : vector<256xf32> to vector<1x256xf32>
    %281 = vector.broadcast %280 : vector<1x256xf32> to vector<16x256xf32>
    %282 = arith.mulf %277, %281 : vector<16x256xf32>
    %283 = arith.addf %276, %282 : vector<16x256xf32>
    %c8_119 = arith.constant 8 : index
    %c32_120 = arith.constant 32 : index
    %284 = vector.load %arg13[%c8_119, %c32_120] : memref<30x480xf32, #tpu.memory_space<vmem>>, vector<16x256xf32>
    %285 = vector.extract_strided_slice %261 {offsets = [1, 0, 0], sizes = [1, 1, 256], strides = [1, 1, 1]} : vector<3x3x256xf32> to vector<1x1x256xf32>
    %286 = vector.shape_cast %285 : vector<1x1x256xf32> to vector<256xf32>
    %287 = vector.shape_cast %286 : vector<256xf32> to vector<1x256xf32>
    %288 = vector.broadcast %287 : vector<1x256xf32> to vector<16x256xf32>
    %289 = arith.mulf %284, %288 : vector<16x256xf32>
    %290 = arith.addf %283, %289 : vector<16x256xf32>
    %c8_121 = arith.constant 8 : index
    %c128_122 = arith.constant 128 : index
    %291 = vector.load %arg13[%c8_121, %c128_122] : memref<30x480xf32, #tpu.memory_space<vmem>>, vector<16x256xf32>
    %292 = vector.extract_strided_slice %261 {offsets = [1, 1, 0], sizes = [1, 1, 256], strides = [1, 1, 1]} : vector<3x3x256xf32> to vector<1x1x256xf32>
    %293 = vector.shape_cast %292 : vector<1x1x256xf32> to vector<256xf32>
    %294 = vector.shape_cast %293 : vector<256xf32> to vector<1x256xf32>
    %295 = vector.broadcast %294 : vector<1x256xf32> to vector<16x256xf32>
    %296 = arith.mulf %291, %295 : vector<16x256xf32>
    %297 = arith.addf %290, %296 : vector<16x256xf32>
    %c8_123 = arith.constant 8 : index
    %c224_124 = arith.constant 224 : index
    %298 = vector.load %arg13[%c8_123, %c224_124] : memref<30x480xf32, #tpu.memory_space<vmem>>, vector<16x256xf32>
    %299 = vector.extract_strided_slice %261 {offsets = [1, 2, 0], sizes = [1, 1, 256], strides = [1, 1, 1]} : vector<3x3x256xf32> to vector<1x1x256xf32>
    %300 = vector.shape_cast %299 : vector<1x1x256xf32> to vector<256xf32>
    %301 = vector.shape_cast %300 : vector<256xf32> to vector<1x256xf32>
    %302 = vector.broadcast %301 : vector<1x256xf32> to vector<16x256xf32>
    %303 = arith.mulf %298, %302 : vector<16x256xf32>
    %304 = arith.addf %297, %303 : vector<16x256xf32>
    %c14 = arith.constant 14 : index
    %c32_125 = arith.constant 32 : index
    %305 = vector.load %arg13[%c14, %c32_125] : memref<30x480xf32, #tpu.memory_space<vmem>>, vector<16x256xf32>
    %306 = vector.extract_strided_slice %261 {offsets = [2, 0, 0], sizes = [1, 1, 256], strides = [1, 1, 1]} : vector<3x3x256xf32> to vector<1x1x256xf32>
    %307 = vector.shape_cast %306 : vector<1x1x256xf32> to vector<256xf32>
    %308 = vector.shape_cast %307 : vector<256xf32> to vector<1x256xf32>
    %309 = vector.broadcast %308 : vector<1x256xf32> to vector<16x256xf32>
    %310 = arith.mulf %305, %309 : vector<16x256xf32>
    %311 = arith.addf %304, %310 : vector<16x256xf32>
    %c14_126 = arith.constant 14 : index
    %c128_127 = arith.constant 128 : index
    %312 = vector.load %arg13[%c14_126, %c128_127] : memref<30x480xf32, #tpu.memory_space<vmem>>, vector<16x256xf32>
    %313 = vector.extract_strided_slice %261 {offsets = [2, 1, 0], sizes = [1, 1, 256], strides = [1, 1, 1]} : vector<3x3x256xf32> to vector<1x1x256xf32>
    %314 = vector.shape_cast %313 : vector<1x1x256xf32> to vector<256xf32>
    %315 = vector.shape_cast %314 : vector<256xf32> to vector<1x256xf32>
    %316 = vector.broadcast %315 : vector<1x256xf32> to vector<16x256xf32>
    %317 = arith.mulf %312, %316 : vector<16x256xf32>
    %318 = arith.addf %311, %317 : vector<16x256xf32>
    %c14_128 = arith.constant 14 : index
    %c224_129 = arith.constant 224 : index
    %319 = vector.load %arg13[%c14_128, %c224_129] : memref<30x480xf32, #tpu.memory_space<vmem>>, vector<16x256xf32>
    %320 = vector.extract_strided_slice %261 {offsets = [2, 2, 0], sizes = [1, 1, 256], strides = [1, 1, 1]} : vector<3x3x256xf32> to vector<1x1x256xf32>
    %321 = vector.shape_cast %320 : vector<1x1x256xf32> to vector<256xf32>
    %322 = vector.shape_cast %321 : vector<256xf32> to vector<1x256xf32>
    %323 = vector.broadcast %322 : vector<1x256xf32> to vector<16x256xf32>
    %324 = arith.mulf %319, %323 : vector<16x256xf32>
    %325 = arith.addf %318, %324 : vector<16x256xf32>
    %326 = vector.broadcast %263 : vector<1x256xf32> to vector<16x256xf32>
    %327 = arith.addf %325, %326 : vector<16x256xf32>
    %cst_130 = arith.constant 0.000000e+00 : f32
    %328 = vector.broadcast %cst_130 : f32 to vector<16x256xf32>
    %329 = arith.maximumf %327, %328 : vector<16x256xf32>
    %c2_131 = arith.constant 2 : index
    %c0_132 = arith.constant 0 : index
    %c0_133 = arith.constant 0 : index
    %330 = vector.load %arg8[%c2_131, %c0_132, %c0_133] : memref<4x256x256xbf16, #tpu.memory_space<vmem>>, vector<1x256x256xbf16>
    %331 = vector.shape_cast %330 : vector<1x256x256xbf16> to vector<256x256xbf16>
    %c2_134 = arith.constant 2 : index
    %c0_135 = arith.constant 0 : index
    %c0_136 = arith.constant 0 : index
    %332 = vector.load %arg9[%c2_134, %c0_135, %c0_136] : memref<4x1x256xf32, #tpu.memory_space<vmem>>, vector<1x1x256xf32>
    %333 = vector.shape_cast %332 : vector<1x1x256xf32> to vector<1x256xf32>
    %334 = arith.truncf %329 : vector<16x256xf32> to vector<16x256xbf16>
    %cst_137 = arith.constant dense<0.000000e+00> : vector<16x256xf32>
    %335 = tpu.matmul %334, %331, %cst_137 {dimension_numbers = #tpu.dot_dimension_numbers<[1], [0], [0], [1], [0, 0, 1, 1], [], []>} : vector<16x256xbf16>, vector<256x256xbf16>, vector<16x256xf32> -> vector<16x256xf32>
    %336 = vector.broadcast %333 : vector<1x256xf32> to vector<16x256xf32>
    %337 = arith.addf %335, %336 : vector<16x256xf32>
    %cst_138 = arith.constant 0.000000e+00 : f32
    %338 = vector.broadcast %cst_138 : f32 to vector<16x256xf32>
    %339 = arith.maximumf %337, %338 : vector<16x256xf32>
    %340 = arith.truncf %339 : vector<16x256xf32> to vector<16x256xbf16>
    %c0_139 = arith.constant 0 : index
    %c768 = arith.constant 768 : index
    %341 = vector.load %arg14[%c0_139, %c768] : memref<16x1280xbf16, #tpu.memory_space<vmem>>, vector<16x256xbf16>
    tpu.vector_store %arg14[%c0_139, %c768], %340 {strides = array<i32>} : memref<16x1280xbf16, #tpu.memory_space<vmem>>, vector<16x256xbf16>,
    %c8_140 = arith.constant 8 : index
    %c128_141 = arith.constant 128 : index
    %342 = vector.load %arg13[%c8_140, %c128_141] : memref<30x480xf32, #tpu.memory_space<vmem>>, vector<16x256xf32>
    tpu.vector_store %arg13[%c8_140, %c128_141], %339 {strides = array<i32>} : memref<30x480xf32, #tpu.memory_space<vmem>>, vector<16x256xf32>,
    %c3 = arith.constant 3 : index
    %c0_142 = arith.constant 0 : index
    %c0_143 = arith.constant 0 : index
    %c0_144 = arith.constant 0 : index
    %343 = vector.load %arg6[%c3, %c0_142, %c0_143, %c0_144] : memref<4x3x3x256xf32, #tpu.memory_space<vmem>>, vector<1x3x3x256xf32>
    %344 = vector.shape_cast %343 : vector<1x3x3x256xf32> to vector<3x3x256xf32>
    %c3_145 = arith.constant 3 : index
    %c0_146 = arith.constant 0 : index
    %c0_147 = arith.constant 0 : index
    %345 = vector.load %arg7[%c3_145, %c0_146, %c0_147] : memref<4x1x256xf32, #tpu.memory_space<vmem>>, vector<1x1x256xf32>
    %346 = vector.shape_cast %345 : vector<1x1x256xf32> to vector<1x256xf32>
    %c5 = arith.constant 5 : index
    %c80 = arith.constant 80 : index
    %347 = vector.load %arg13[%c5, %c80] : memref<30x480xf32, #tpu.memory_space<vmem>>, vector<16x256xf32>
    %348 = vector.extract_strided_slice %344 {offsets = [0, 0, 0], sizes = [1, 1, 256], strides = [1, 1, 1]} : vector<3x3x256xf32> to vector<1x1x256xf32>
    %349 = vector.shape_cast %348 : vector<1x1x256xf32> to vector<256xf32>
    %350 = vector.shape_cast %349 : vector<256xf32> to vector<1x256xf32>
    %351 = vector.broadcast %350 : vector<1x256xf32> to vector<16x256xf32>
    %352 = arith.mulf %347, %351 : vector<16x256xf32>
    %c5_148 = arith.constant 5 : index
    %c128_149 = arith.constant 128 : index
    %353 = vector.load %arg13[%c5_148, %c128_149] : memref<30x480xf32, #tpu.memory_space<vmem>>, vector<16x256xf32>
    %354 = vector.extract_strided_slice %344 {offsets = [0, 1, 0], sizes = [1, 1, 256], strides = [1, 1, 1]} : vector<3x3x256xf32> to vector<1x1x256xf32>
    %355 = vector.shape_cast %354 : vector<1x1x256xf32> to vector<256xf32>
    %356 = vector.shape_cast %355 : vector<256xf32> to vector<1x256xf32>
    %357 = vector.broadcast %356 : vector<1x256xf32> to vector<16x256xf32>
    %358 = arith.mulf %353, %357 : vector<16x256xf32>
    %359 = arith.addf %352, %358 : vector<16x256xf32>
    %c5_150 = arith.constant 5 : index
    %c176 = arith.constant 176 : index
    %360 = vector.load %arg13[%c5_150, %c176] : memref<30x480xf32, #tpu.memory_space<vmem>>, vector<16x256xf32>
    %361 = vector.extract_strided_slice %344 {offsets = [0, 2, 0], sizes = [1, 1, 256], strides = [1, 1, 1]} : vector<3x3x256xf32> to vector<1x1x256xf32>
    %362 = vector.shape_cast %361 : vector<1x1x256xf32> to vector<256xf32>
    %363 = vector.shape_cast %362 : vector<256xf32> to vector<1x256xf32>
    %364 = vector.broadcast %363 : vector<1x256xf32> to vector<16x256xf32>
    %365 = arith.mulf %360, %364 : vector<16x256xf32>
    %366 = arith.addf %359, %365 : vector<16x256xf32>
    %c8_151 = arith.constant 8 : index
    %c80_152 = arith.constant 80 : index
    %367 = vector.load %arg13[%c8_151, %c80_152] : memref<30x480xf32, #tpu.memory_space<vmem>>, vector<16x256xf32>
    %368 = vector.extract_strided_slice %344 {offsets = [1, 0, 0], sizes = [1, 1, 256], strides = [1, 1, 1]} : vector<3x3x256xf32> to vector<1x1x256xf32>
    %369 = vector.shape_cast %368 : vector<1x1x256xf32> to vector<256xf32>
    %370 = vector.shape_cast %369 : vector<256xf32> to vector<1x256xf32>
    %371 = vector.broadcast %370 : vector<1x256xf32> to vector<16x256xf32>
    %372 = arith.mulf %367, %371 : vector<16x256xf32>
    %373 = arith.addf %366, %372 : vector<16x256xf32>
    %c8_153 = arith.constant 8 : index
    %c128_154 = arith.constant 128 : index
    %374 = vector.load %arg13[%c8_153, %c128_154] : memref<30x480xf32, #tpu.memory_space<vmem>>, vector<16x256xf32>
    %375 = vector.extract_strided_slice %344 {offsets = [1, 1, 0], sizes = [1, 1, 256], strides = [1, 1, 1]} : vector<3x3x256xf32> to vector<1x1x256xf32>
    %376 = vector.shape_cast %375 : vector<1x1x256xf32> to vector<256xf32>
    %377 = vector.shape_cast %376 : vector<256xf32> to vector<1x256xf32>
    %378 = vector.broadcast %377 : vector<1x256xf32> to vector<16x256xf32>
    %379 = arith.mulf %374, %378 : vector<16x256xf32>
    %380 = arith.addf %373, %379 : vector<16x256xf32>
    %c8_155 = arith.constant 8 : index
    %c176_156 = arith.constant 176 : index
    %381 = vector.load %arg13[%c8_155, %c176_156] : memref<30x480xf32, #tpu.memory_space<vmem>>, vector<16x256xf32>
    %382 = vector.extract_strided_slice %344 {offsets = [1, 2, 0], sizes = [1, 1, 256], strides = [1, 1, 1]} : vector<3x3x256xf32> to vector<1x1x256xf32>
    %383 = vector.shape_cast %382 : vector<1x1x256xf32> to vector<256xf32>
    %384 = vector.shape_cast %383 : vector<256xf32> to vector<1x256xf32>
    %385 = vector.broadcast %384 : vector<1x256xf32> to vector<16x256xf32>
    %386 = arith.mulf %381, %385 : vector<16x256xf32>
    %387 = arith.addf %380, %386 : vector<16x256xf32>
    %c11 = arith.constant 11 : index
    %c80_157 = arith.constant 80 : index
    %388 = vector.load %arg13[%c11, %c80_157] : memref<30x480xf32, #tpu.memory_space<vmem>>, vector<16x256xf32>
    %389 = vector.extract_strided_slice %344 {offsets = [2, 0, 0], sizes = [1, 1, 256], strides = [1, 1, 1]} : vector<3x3x256xf32> to vector<1x1x256xf32>
    %390 = vector.shape_cast %389 : vector<1x1x256xf32> to vector<256xf32>
    %391 = vector.shape_cast %390 : vector<256xf32> to vector<1x256xf32>
    %392 = vector.broadcast %391 : vector<1x256xf32> to vector<16x256xf32>
    %393 = arith.mulf %388, %392 : vector<16x256xf32>
    %394 = arith.addf %387, %393 : vector<16x256xf32>
    %c11_158 = arith.constant 11 : index
    %c128_159 = arith.constant 128 : index
    %395 = vector.load %arg13[%c11_158, %c128_159] : memref<30x480xf32, #tpu.memory_space<vmem>>, vector<16x256xf32>
    %396 = vector.extract_strided_slice %344 {offsets = [2, 1, 0], sizes = [1, 1, 256], strides = [1, 1, 1]} : vector<3x3x256xf32> to vector<1x1x256xf32>
    %397 = vector.shape_cast %396 : vector<1x1x256xf32> to vector<256xf32>
    %398 = vector.shape_cast %397 : vector<256xf32> to vector<1x256xf32>
    %399 = vector.broadcast %398 : vector<1x256xf32> to vector<16x256xf32>
    %400 = arith.mulf %395, %399 : vector<16x256xf32>
    %401 = arith.addf %394, %400 : vector<16x256xf32>
    %c11_160 = arith.constant 11 : index
    %c176_161 = arith.constant 176 : index
    %402 = vector.load %arg13[%c11_160, %c176_161] : memref<30x480xf32, #tpu.memory_space<vmem>>, vector<16x256xf32>
    %403 = vector.extract_strided_slice %344 {offsets = [2, 2, 0], sizes = [1, 1, 256], strides = [1, 1, 1]} : vector<3x3x256xf32> to vector<1x1x256xf32>
    %404 = vector.shape_cast %403 : vector<1x1x256xf32> to vector<256xf32>
    %405 = vector.shape_cast %404 : vector<256xf32> to vector<1x256xf32>
    %406 = vector.broadcast %405 : vector<1x256xf32> to vector<16x256xf32>
    %407 = arith.mulf %402, %406 : vector<16x256xf32>
    %408 = arith.addf %401, %407 : vector<16x256xf32>
    %409 = vector.broadcast %346 : vector<1x256xf32> to vector<16x256xf32>
    %410 = arith.addf %408, %409 : vector<16x256xf32>
    %cst_162 = arith.constant 0.000000e+00 : f32
    %411 = vector.broadcast %cst_162 : f32 to vector<16x256xf32>
    %412 = arith.maximumf %410, %411 : vector<16x256xf32>
    %c3_163 = arith.constant 3 : index
    %c0_164 = arith.constant 0 : index
    %c0_165 = arith.constant 0 : index
    %413 = vector.load %arg8[%c3_163, %c0_164, %c0_165] : memref<4x256x256xbf16, #tpu.memory_space<vmem>>, vector<1x256x256xbf16>
    %414 = vector.shape_cast %413 : vector<1x256x256xbf16> to vector<256x256xbf16>
    %c3_166 = arith.constant 3 : index
    %c0_167 = arith.constant 0 : index
    %c0_168 = arith.constant 0 : index
    %415 = vector.load %arg9[%c3_166, %c0_167, %c0_168] : memref<4x1x256xf32, #tpu.memory_space<vmem>>, vector<1x1x256xf32>
    %416 = vector.shape_cast %415 : vector<1x1x256xf32> to vector<1x256xf32>
    %417 = arith.truncf %412 : vector<16x256xf32> to vector<16x256xbf16>
    %cst_169 = arith.constant dense<0.000000e+00> : vector<16x256xf32>
    %418 = tpu.matmul %417, %414, %cst_169 {dimension_numbers = #tpu.dot_dimension_numbers<[1], [0], [0], [1], [0, 0, 1, 1], [], []>} : vector<16x256xbf16>, vector<256x256xbf16>, vector<16x256xf32> -> vector<16x256xf32>
    %419 = vector.broadcast %416 : vector<1x256xf32> to vector<16x256xf32>
    %420 = arith.addf %418, %419 : vector<16x256xf32>
    %cst_170 = arith.constant 0.000000e+00 : f32
    %421 = vector.broadcast %cst_170 : f32 to vector<16x256xf32>
    %422 = arith.maximumf %420, %421 : vector<16x256xf32>
    %423 = arith.truncf %422 : vector<16x256xf32> to vector<16x256xbf16>
    %c0_171 = arith.constant 0 : index
    %c1024 = arith.constant 1024 : index
    %424 = vector.load %arg14[%c0_171, %c1024] : memref<16x1280xbf16, #tpu.memory_space<vmem>>, vector<16x256xbf16>
    tpu.vector_store %arg14[%c0_171, %c1024], %423 {strides = array<i32>} : memref<16x1280xbf16, #tpu.memory_space<vmem>>, vector<16x256xbf16>,
    %c0_172 = arith.constant 0 : index
    %c0_173 = arith.constant 0 : index
    %425 = vector.load %arg14[%c0_172, %c0_173] : memref<16x1280xbf16, #tpu.memory_space<vmem>>, vector<16x1280xbf16>
    %c0_174 = arith.constant 0 : index
    %c0_175 = arith.constant 0 : index
    %426 = vector.load %arg10[%c0_174, %c0_175] : memref<1280x256xbf16, #tpu.memory_space<vmem>>, vector<1280x256xbf16>
    %cst_176 = arith.constant dense<0.000000e+00> : vector<16x256xf32>
    %427 = tpu.matmul %425, %426, %cst_176 {dimension_numbers = #tpu.dot_dimension_numbers<[1], [0], [0], [1], [0, 0, 1, 1], [], []>} : vector<16x1280xbf16>, vector<1280x256xbf16>, vector<16x256xf32> -> vector<16x256xf32>
    %c0_177 = arith.constant 0 : index
    %c0_178 = arith.constant 0 : index
    %428 = vector.load %arg11[%c0_177, %c0_178] : memref<1x256xf32, #tpu.memory_space<vmem>>, vector<1x256xf32>
    %429 = vector.broadcast %428 : vector<1x256xf32> to vector<16x256xf32>
    %430 = arith.addf %427, %429 : vector<16x256xf32>
    %cst_179 = arith.constant 0.000000e+00 : f32
    %431 = vector.broadcast %cst_179 : f32 to vector<16x256xf32>
    %432 = arith.maximumf %430, %431 : vector<16x256xf32>
    %c0_180 = arith.constant 0 : index
    %c0_181 = arith.constant 0 : index
    %c0_182 = arith.constant 0 : index
    %433 = vector.load %arg12[%c0_180, %c0_181, %c0_182] : memref<1x16x256xf32, #tpu.memory_space<vmem>>, vector<1x16x256xf32>
    %434 = vector.shape_cast %433 : vector<1x16x256xf32> to vector<16x256xf32>
    %435 = vector.shape_cast %432 : vector<16x256xf32> to vector<1x16x256xf32>
    tpu.vector_store %arg12[%c0_180, %c0_181, %c0_182], %435 {strides = array<i32>} : memref<1x16x256xf32, #tpu.memory_space<vmem>>, vector<1x16x256xf32>,
    return
  }
  func.func @transform_0(%arg0: i32) -> (i32, i32, i32) {
    %c0_i32 = arith.constant 0 : i32
    %c0_i32_0 = arith.constant 0 : i32
    %c0_i32_1 = arith.constant 0 : i32
    return %arg0, %c0_i32, %c0_i32_0 : i32, i32, i32
  }
  func.func @transform_1(%arg0: i32) -> (i32, i32, i32) {
    %c0_i32 = arith.constant 0 : i32
    %c0_i32_0 = arith.constant 0 : i32
    %c0_i32_1 = arith.constant 0 : i32
    %c0_i32_2 = arith.constant 0 : i32
    return %c0_i32, %c0_i32_0, %c0_i32_1 : i32, i32, i32
  }
  func.func @transform_2(%arg0: i32) -> (i32, i32) {
    %c0_i32 = arith.constant 0 : i32
    %c0_i32_0 = arith.constant 0 : i32
    %c0_i32_1 = arith.constant 0 : i32
    return %c0_i32, %c0_i32_0 : i32, i32
  }
  func.func @transform_3(%arg0: i32) -> (i32, i32) {
    %c0_i32 = arith.constant 0 : i32
    %c0_i32_0 = arith.constant 0 : i32
    %c0_i32_1 = arith.constant 0 : i32
    return %c0_i32, %c0_i32_0 : i32, i32
  }
  func.func @transform_4(%arg0: i32) -> (i32, i32) {
    %c0_i32 = arith.constant 0 : i32
    %c0_i32_0 = arith.constant 0 : i32
    %c0_i32_1 = arith.constant 0 : i32
    return %c0_i32, %c0_i32_0 : i32, i32
  }
  func.func @transform_5(%arg0: i32) -> (i32, i32, i32, i32) {
    %c0_i32 = arith.constant 0 : i32
    %c0_i32_0 = arith.constant 0 : i32
    %c0_i32_1 = arith.constant 0 : i32
    %c0_i32_2 = arith.constant 0 : i32
    %c0_i32_3 = arith.constant 0 : i32
    return %c0_i32, %c0_i32_0, %c0_i32_1, %c0_i32_2 : i32, i32, i32, i32
  }
  func.func @transform_6(%arg0: i32) -> (i32, i32, i32) {
    %c0_i32 = arith.constant 0 : i32
    %c0_i32_0 = arith.constant 0 : i32
    %c0_i32_1 = arith.constant 0 : i32
    %c0_i32_2 = arith.constant 0 : i32
    return %c0_i32, %c0_i32_0, %c0_i32_1 : i32, i32, i32
  }
  func.func @transform_7(%arg0: i32) -> (i32, i32, i32) {
    %c0_i32 = arith.constant 0 : i32
    %c0_i32_0 = arith.constant 0 : i32
    %c0_i32_1 = arith.constant 0 : i32
    %c0_i32_2 = arith.constant 0 : i32
    return %c0_i32, %c0_i32_0, %c0_i32_1 : i32, i32, i32
  }
  func.func @transform_8(%arg0: i32) -> (i32, i32, i32) {
    %c0_i32 = arith.constant 0 : i32
    %c0_i32_0 = arith.constant 0 : i32
    %c0_i32_1 = arith.constant 0 : i32
    %c0_i32_2 = arith.constant 0 : i32
    return %c0_i32, %c0_i32_0, %c0_i32_1 : i32, i32, i32
  }
  func.func @transform_9(%arg0: i32) -> (i32, i32) {
    %c0_i32 = arith.constant 0 : i32
    %c0_i32_0 = arith.constant 0 : i32
    %c0_i32_1 = arith.constant 0 : i32
    return %c0_i32, %c0_i32_0 : i32, i32
  }
  func.func @transform_10(%arg0: i32) -> (i32, i32) {
    %c0_i32 = arith.constant 0 : i32
    %c0_i32_0 = arith.constant 0 : i32
    %c0_i32_1 = arith.constant 0 : i32
    return %c0_i32, %c0_i32_0 : i32, i32
  }
  func.func @transform_11(%arg0: i32) -> (i32, i32, i32) {
    %c0_i32 = arith.constant 0 : i32
    %c0_i32_0 = arith.constant 0 : i32
    %c0_i32_1 = arith.constant 0 : i32
    return %arg0, %c0_i32, %c0_i32_0 : i32, i32, i32
  }
}

</mosaic_0001>

<bundles_post_ra>
// kernel: tpu_custom_call.1
= control target key start
LH: loop header
LB: loop body
LE: loop exit
PB: predicated region body
PF: predicated region fallthrough
CT: control target
= control target key end

     0   :  { %16 = vsyncpa [#allocation5], 0  ;;  %s9889_s0 = inlined_call_operand.vmem [shape: f32[2,18,144], index: 0, kind: input, shape index: {}]   ;;  %s9890_s1 = inlined_call_operand.vmem [shape: f32[3,3,128], index: 1, kind: input, shape index: {}]   ;;  %s9891_s2 = inlined_call_operand.vmem [shape: f32[1,128], index: 2, kind: input, shape index: {}]   ;;  %s9892_s3 = inlined_call_operand.vmem [shape: bf16[128,256], index: 3, kind: input, shape index: {}]   ;;  %s9893_s4 = inlined_call_operand.vmem [shape: f32[1,256], index: 4, kind: input, shape index: {}]   ;;  %s9894_s5 = inlined_call_operand.vmem [shape: f32[4,3,3,256], index: 5, kind: input, shape index: {}]   ;;  %s9895_s6 = inlined_call_operand.vmem [shape: f32[4,1,256], index: 6, kind: input, shape index: {}]   ;;  %s9896_s7 = inlined_call_operand.hbm [shape: bf16[4,256,256], index: 7, kind: input, shape index: {}]   ;;  %s9897_s8 = inlined_call_operand.vmem [shape: f32[4,1,256], index: 8, kind: input, shape index: {}]   ;;  %s9898_s9 = inlined_call_operand.hbm [shape: bf16[1280,256], index: 9, kind: input, shape index: {}]   ;;  %s9899_s10 = inlined_call_operand.vmem [shape: f32[1,256], index: 10, kind: input, shape index: {}]   ;;  %s9900_s11 = inlined_call_operand.hbm [shape: f32[2,16,256], index: 11, kind: output, shape index: {}]  }
   0x1   :  { %17 = vsyncpa [#allocation8], 0 }
   0x2   :  { %18 = vsyncpa [#allocation6], 0 }
   0x3   :  { %20 = vsyncpa [#allocation6 + $0x1], 0  ;;  %s7403_s17 = smov 0   ;;  %s7405_s18 = smov 0  }
   0x4   :  { %s7407_s19 = smov 0   ;;  %s7409_s20 = smov 0  }
   0x5 LB: > { %s7424_s21 = sadd.s32 4294967295, %s7324_s20   ;;  %s6280_s22 = sadd.s32 4294967294, %s7324_s20   ;;  %s7324_s20 = sphi %s7409_s20, %s10071_s20   ;;  %s7320_s19 = sphi %s7407_s19, %s10070_s19   ;;  %s7316_s18 = sphi %s7405_s18, %s10069_s18   ;;  %s7312_s17 = sphi %s7403_s17, %s10068_s17  }
   0x6   : > { %s7428_s23 = sadd.s32 1, %s7324_s20   ;;  %s269_s24 = sadd.s32 1, %s7320_s19 }
   0x7   : > { %s266_s25 = ssub.s32 %s7324_s20, %s7428_s23  ;;  %p279_p0 = scmp.ne.s32.totalorder %s7320_s19, %s7316_s18 }
   0x8   : > { %p267_p1 = scmp.eq.s32.totalorder %s266_s25, 0  ;;  %p280_p2 = scmp.eq.s32.totalorder %s7424_s21, 1 }
   0x9   : > { %p285_p3 = scmp.ne.s32.totalorder %s7316_s18, %s7312_s17  ;;  %p286_p4 = scmp.eq.s32.totalorder %s6280_s22, 1 }
   0xa   : > { %s7439_s26 = scalar_select %p267_p1, %s7320_s19, %s269_s24  }
   0xb   : > { %p7441_p5 = por %p280_p2, %p279_p0  ;;  %p7445_p6 = por %p286_p4, %p285_p3 }
   0xc   : > { %9958 = sst [smem:[#allocation13_spill]] %s7439_s26  ;;  %p6281_p7 = scmp.ge.s32.totalorder %s7324_s20, 1 }
   0xd   : > { %s9960_s28 = scalar_select %p7445_p6, 1, 0 }
   0xe   : > { %p293_p8 = scmp.lt.s32.totalorder %s7324_s20, 3  ;;  %p9901_p9 = scmp.eq.s32.totalorder %s7424_s21, 0 }
   0xf   : > { %s7326_s30 = smov [#allocation4]   ;;  %s7327_s14 = smov [#allocation7]  }
  0x10   : > { %p7452_p10 = pnand %p6281_p7, %p293_p8  ;;  %s323_s12 = sshll.u32 %s7326_s30, 4  ;;  %s324_s12 = int_to_ptr.vmem [resolvable:$true] %s323_s12 }
  0x11   : > { %s339_s15 = sshll.u32 %s7327_s14, 4  ;;  %s7215_s16 = scalar_lea.vmem %s324_s12, 16384  ;;  %s340_s15 = int_to_ptr.vmem [resolvable:$true] %s339_s15 }
  0x12   : > { %p6667_p11 = pneg %p7452_p10  ;;  %p7216_p0 = scmp.ne.s32.totalorder %s324_s12, %s7215_s16 }
  0x13   : > { %p7223_p3 = scmp.lt.s32.totalorder %s324_s12, %s324_s12  ;;  %p7224_p4 = scmp.lt.s32.totalorder %s7215_s16, %s7215_s16 }
  0x14   : > { %p7460_p12 = pnand %p9901_p9, %p6667_p11 }
  0x15   : > { %p7225_p7 = por %p7224_p4, %p7223_p3 }
  0x16   : > { %p7206_p13 = pneg %p7460_p12 }
  0x18   : > { %p7218_p1 = pnand %p7216_p0, %p7206_p13 }
  0x1a   : > { %p7219_p2 = pneg %p7218_p1 }
  0x1c   : > { %p7226_p8 = pnand %p7225_p7, %p7219_p2 }
  0x1e   : > { %7229 = shalt.err (!%p7226_p8)
}
  0x1f   : > { %s7328_s22 = smov 128   ;;  %s7329_s24 = smov 8  }
  0x20   : > { %6670 = dma.hbm_to_vmem [thread:$0]  (!%p7460_p12), %s9896_s7, 16384, %s324_s12, [#allocation5], %s7328_s22, %s7328_s22, %s7329_s24  }
  0x21   : > { %s7241_s14 = scalar_lea.vmem %s340_s15, 20480  ;;  %p7249_p9 = scmp.lt.s32.totalorder %s340_s15, %s340_s15 }
  0x22   : > { %p7242_p11 = scmp.ne.s32.totalorder %s340_s15, %s7241_s14  ;;  %p7250_p6 = scmp.lt.s32.totalorder %s7241_s14, %s7241_s14 }
  0x24   : > { %p7244_p0 = pnand %p7242_p11, %p7206_p13  ;;  %p7251_p3 = por %p7250_p6, %p7249_p9 }
  0x26   : > { %p7245_p1 = pneg %p7244_p0 }
  0x28   : > { %p7252_p2 = pnand %p7251_p3, %p7245_p1 }
  0x2a   : > { %7255 = shalt.err (!%p7252_p2)
}
  0x2b   : > { %6673 = dma.hbm_to_vmem [thread:$0]  (!%p7460_p12), %s9898_s9, 20480, %s340_s15, [#allocation8], %s7328_s22, %s7328_s22, %s7329_s24  }
  0x2c   : > { %366 = sbr.rel (%p7452_p10) target bundleno = 1884 (0x75c), region = 64 }
  0x31   : > { %p9963_p4 = scmp.eq.s32.totalorder %s7424_s21, 0 }
  0x33   : > { %7299 = dma.done.wait (%p9963_p4), [#allocation5], 16384   ;;  %p9964_p13 = pmov %p9963_p4 }
  0x34   : > { %p9965_p7 = pmov %p9963_p4 }
  0x35   : > { %7301 = vsyncadd (%p9964_p13), [#allocation5], 4294950912 }
  0x36   : > { %7303 = dma.done.wait (%p9965_p7), [#allocation8], 20480   ;;  %p9966_p6 = pmov %p9963_p4 }
  0x37   : > { %v436_v0 = vlaneseq  ;;  %v430_v4 = vld [vmem:[%s9890_s1] sm:$0x7]  ;;  %v431_v5 = vld [vmem:[%s9890_s1 + $0x4] sm:$0x7]  ;;  %s7330_s15 = smov 8   ;;  %s9957_s25 = smov 16  }
  0x38   : > { %7305 = vsyncadd (%p9966_p6), [#allocation8], 4294946816  ;;  %v7513_v10 = vld [vmem:[%s9890_s1 + $0x8] sm:$0x7]  ;;  %p410_p9 = scmp.lt.s32.totalorder %s7424_s21, 1  ;;  %vm518_vm0 = vcmask 1046528  }
  0x39   : > { %v7492_v1 = vshrl.u32 %v436_v0, 7  ;;  %s7332_s12 = smov 120   ;;  %v6731_v43 = vld [vmem:[%s9892_s3 + $0x74] ss:$8 sps:$4 sm:$0xff]   ;;  %v6733_v45 = vld [vmem:[%s9892_s3 + $0x70] ss:$8 sps:$4 sm:$0xff]  }
  0x3a   : > { %s411_s30 = scalar_select %p410_p9, %s7424_s21, 1  ;;  %849 = vmatprep.subr.bf16.mxu0 %v6731_v43  ;;  %v6734_v55 = vld [vmem:[%s9892_s3 + $0x64] ss:$8 sps:$4 sm:$0xff]   ;;  %v6736_v57 = vld [vmem:[%s9892_s3 + $0x60] ss:$8 sps:$4 sm:$0xff]   ;;  %vm630_vm1 = vcmask 1045504  }
  0x3b   : > { %v7495_v2 = vsub.s32 1, %v7492_v1  ;;  %v7498_v3 = vsub.s32 2, %v7492_v1  ;;  %v7525_v13 = vsub.s32 0, %v7492_v1  ;;  %850 = vmatpush1.bf16.msra.mxu0 %v6733_v45  ;;  %v6743_v43 = vld [vmem:[%s9892_s3 + $0x34] ss:$8 sps:$4 sm:$0xff]   ;;  %vm419_vm2 = vcmask 785408  }
  0x3c   : > { %s6656_s14 = smul.u32 48, %s411_s30  ;;  %s7333_s30 = smov 112   ;;  %851 = vmatprep.subr.bf16.mxu0 %v6734_v55  ;;  %vm468_vm3 = vcmask 982016   ;;  %vm499_vm4 = vcmask 916480   ;;  %vm424_vm5 = vcmask 783360   ;;  %vm1055_vm6 = vcmask 261120  }
  0x3d   : > { %9967 = vst [vmem:[#allocation14_spill] sm:$0xff] %v7495_v2  ;;  %9968 = vst [vmem:[#allocation15_spill] sm:$0xff] %v7498_v3  ;;  %v447_v6 = vrot.slane %v430_v4, %v7495_v2  ;;  %v533_v7 = vrot.slane %v431_v5, %v7495_v2  ;;  %v478_v8 = vrot.slane %v430_v4, %v7498_v3  ;;  %s7336_s13 = smov 32   ;;  %vm1402_vm7 = vcmask 1043456   ;;  %s7340_s26 = smov 80  }
  0x3e   : > { %v577_v9 = vrot.slane %v431_v5, %v7498_v3  ;;  %v645_v11 = vrot.slane %v7513_v10, %v7495_v2  ;;  %v689_v12 = vrot.slane %v7513_v10, %v7498_v3  ;;  %9969 = vst [vmem:[#allocation16_spill] sm:$0xff] %v7525_v13  ;;  %s7530_s29 = scalar_lea.vmem %s9889_s0, %s6656_s14  ;;  %v7533_v14 = vrot.slane %v430_v4, %v7525_v13  ;;  %s407_s22 = sand.u32 1, %s7316_s18  }
  0x3f   : > { %449 = vrot.lane.b32.xlu0 %v447_v6, %s7330_s15  ;;  %535 = vrot.lane.b32.xlu1 %v533_v7, %s7330_s15  ;;  %v434_v15 = vld [vmem:[%s7530_s29] sm:$0xff]  ;;  %v511_v17 = vrot.slane %v431_v5, %v7525_v13  ;;  %v7541_v18 = vld [vmem:[%s7530_s29 + $0x10] sm:$0xff]  ;;  %v623_v58 = vrot.slane %v7513_v10, %v7525_v13  ;;  %vm3066_vm8 = vcmask 1041408   ;;  %vm1096_vm9 = vcmask 523264   ;;  %s9848_s14 = scalar_lea.sflag [#allocation6], %s407_s22  ;;  %s7341_s16 = smov [#allocation9]  }
  0x40   : > { %v7537_v16 = vmul.f32 %v7533_v14, %v434_v15  ;;  %v506_v20 = vld [vmem:[%s7530_s29] sm:$0xfe]  ;;  %v442_v22 = vld [vmem:[%s7530_s29 + $0x8] sm:$0xff]  ;;  %v7550_v25 = vld [vmem:[%s7530_s29 + $0x20] sm:$0x1]  ;;  %852 = vmatpush1.bf16.msra.mxu0 %v6736_v57  ;;  %vm1705_vm10 = vcmask 1044480  }
  0x41   : > { %v7544_v19 = vmul.f32 %v511_v17, %v7541_v18  ;;  %v512_v21 = vmul.f32 %v511_v17, %v506_v20  ;;  %v514_v28 = vmul.f32 %v511_v17, %v7550_v25  ;;  %v7557_v31 = vld [vmem:[%s7530_s29 + $0x18] sm:$0xff]  ;;  %v528_v36 = vld [vmem:[%s7530_s29 + $0x8] sm:$0xfe]  ;;  %v529_v44 = vld [vmem:[%s7530_s29 + $0x28] sm:$0x1]  ;;  %vm3998_vm11 = vcmask 392192  }
  0x42   : > { %v6737_v6 = vld [vmem:[%s9892_s3 + $0x54] ss:$8 sps:$4 sm:$0xff]   ;;  %v7602_v7 = vld [vmem:[%s7530_s29] sm:$0xfc]  ;;  %v7617_v17 = vld [vmem:[%s7530_s29 + $0x20] sm:$0x3] }
  0x43   : > { %480 = vrot.lane.b32.xlu0 %v478_v8, %s9957_s25  ;;  %579 = vrot.lane.b32.xlu1 %v577_v9, %s9957_s25  ;;  %v519_v23 = vrot.slane %v512_v21, 1  ;;  %v520_v24 = vrot.slane %v7544_v19, 1  ;;  %v522_v56 = vrot.slane %v514_v28, 1  ;;  %v6739_v9 = vld [vmem:[%s9892_s3 + $0x50] ss:$8 sps:$4 sm:$0xff]   ;;  %v624_v19 = vmul.f32 %v623_v58, %v7602_v7 }
  0x44   : > { %853 = vmatprep.subr.bf16.mxu0 %v6737_v6  ;;  %vm3894_vm12 = vcmask 654336   ;;  %vm4643_vm13 = vsmask.f32 5376 }
  0x45   : > { %v7553_v27 = vsel %vm518_vm0, %v519_v23, %v520_v24  ;;  %v7605_v8 = vsel %vm518_vm0, %v520_v24, %v522_v56  ;;  %v626_v23 = vmul.f32 %v623_v58, %v7617_v17  ;;  %854 = vmatpush1.bf16.msra.mxu0 %v6739_v9 }
  0x47   : > { %647 = vrot.lane.b32.xlu0 %v645_v11, %s7330_s15  ;;  %691 = vrot.lane.b32.xlu1 %v689_v12, %s9957_s25  ;;  %s7339_s15 = smov 48  }
  0xb1   : > { %v450_v26 = vpop.permute.xlu0 %449  ;;  %v536_v35 = vpop.permute.xlu1 %535 }
  0xb2   : > { %v453_v29 = vmul.f32 %v450_v26, %v442_v22  ;;  %v452_v30 = vmul.f32 %v450_v26, %v434_v15  ;;  %v455_v33 = vmul.f32 %v450_v26, %v7557_v31  ;;  %v454_v34 = vmul.f32 %v450_v26, %v7541_v18 }
  0xb3   : > { %v539_v39 = vmul.f32 %v536_v35, %v528_v36  ;;  %v541_v40 = vmul.f32 %v536_v35, %v7557_v31  ;;  %v538_v41 = vmul.f32 %v536_v35, %v506_v20  ;;  %v540_v42 = vmul.f32 %v536_v35, %v7541_v18 }
  0xb4   : > { %462 = vrot.lane.b32.xlu1 %v453_v29, %s7332_s12  ;;  %460 = vrot.lane.b32.xlu0 %v452_v30, %s7332_s12  ;;  %v543_v53 = vmul.f32 %v536_v35, %v529_v44  ;;  %v542_v54 = vmul.f32 %v536_v35, %v7550_v25  ;;  %v631_v29 = vrot.slane %v624_v19, 2  ;;  %v6740_v30 = vld [vmem:[%s9892_s3 + $0x44] ss:$8 sps:$4 sm:$0xff]   ;;  %v6742_v35 = vld [vmem:[%s9892_s3 + $0x40] ss:$8 sps:$4 sm:$0xff]  }
  0xb5   : > { %v481_v32 = vpop.permute.xlu0 %480  ;;  %v553_v46 = vrot.slane %v539_v39, 1  ;;  %v554_v47 = vrot.slane %v541_v40, 1  ;;  %v550_v48 = vrot.slane %v538_v41, 1  ;;  %v551_v49 = vrot.slane %v540_v42, 1  ;;  %v580_v50 = vpop.permute.xlu1 %579  ;;  %855 = vmatprep.subr.bf16.mxu0 %v6740_v30 }
  0xb6   : > { %v484_v37 = vmul.f32 %v481_v32, %v442_v22  ;;  %v483_v38 = vmul.f32 %v481_v32, %v434_v15  ;;  %v486_v51 = vmul.f32 %v481_v32, %v7557_v31  ;;  %v485_v52 = vmul.f32 %v481_v32, %v7541_v18  ;;  %v7614_v15 = vld [vmem:[%s7530_s29 + $0x8] sm:$0xfc]  ;;  %856 = vmatpush1.bf16.msra.mxu0 %v6742_v35 }
  0xb7   : > { %v583_v59 = vmul.f32 %v580_v50, %v528_v36  ;;  %v7591_v60 = vmul.f32 %v580_v50, %v7557_v31  ;;  %v555_v61 = vsel %vm518_vm0, %v553_v46, %v554_v47  ;;  %v552_v62 = vsel %vm518_vm0, %v550_v48, %v551_v49  ;;  %v6745_v46 = vld [vmem:[%s9892_s3 + $0x30] ss:$8 sps:$4 sm:$0xff]   ;;  %857 = vmatprep.subr.bf16.mxu0 %v6743_v43  ;;  %v7726_v35 = vld [vmem:[%s9894_s5 + $0x8] sm:$0x77] }
  0xb8   : > { %466 = vrot.lane.b32.xlu1 %v455_v33, %s7332_s12  ;;  %464 = vrot.lane.b32.xlu0 %v454_v34, %s7332_s12  ;;  %v582_v63 = vmul.f32 %v580_v50, %v506_v20  ;;  %v7596_v0 = vmul.f32 %v580_v50, %v7541_v18  ;;  %v558_v4 = vrot.slane %v543_v53, 1  ;;  %v556_v5 = vrot.slane %v542_v54, 1  ;;  %v6746_v54 = vld [vmem:[%s9892_s3 + $0x24] ss:$8 sps:$4 sm:$0xff]  }
  0xb9   : > { %v597_v10 = vrot.slane %v583_v59, 1  ;;  %v598_v11 = vrot.slane %v7591_v60, 1  ;;  %v648_v12 = vpop.permute.xlu0 %647  ;;  %v625_v22 = vmul.f32 %v623_v58, %v7541_v18  ;;  %v587_v28 = vmul.f32 %v580_v50, %v529_v44  ;;  %v692_v53 = vpop.permute.xlu1 %691  ;;  %v6748_v59 = vld [vmem:[%s9892_s3 + $0x20] ss:$8 sps:$4 sm:$0xff]  }
  0xba   : > { %v594_v20 = vrot.slane %v582_v63, 1  ;;  %v595_v21 = vrot.slane %v7596_v0, 1  ;;  %v559_v24 = vsel %vm518_vm0, %v554_v47, %v558_v4  ;;  %v557_v26 = vsel %vm518_vm0, %v551_v49, %v556_v5  ;;  %858 = vmatpush1.bf16.msra.mxu0 %v6745_v46  ;;  %v6749_v5 = vld [vmem:[%s9892_s3 + $0x14] ss:$8 sps:$4 sm:$0xff]  }
  0xbb   : > { %v586_v32 = vmul.f32 %v580_v50, %v7550_v25  ;;  %v651_v33 = vmul.f32 %v648_v12, %v7614_v15  ;;  %v632_v34 = vrot.slane %v625_v22, 2  ;;  %v634_v36 = vrot.slane %v626_v23, 2  ;;  %v641_v50 = vld [vmem:[%s7530_s29 + $0x28] sm:$0x3]  ;;  %859 = vmatprep.subr.bf16.mxu0 %v6746_v54  ;;  %s6288_s29 = sshll.u32 %s407_s22, 5 }
  0xbc   : > { %493 = vrot.lane.b32.xlu1 %v484_v37, %s7333_s30  ;;  %491 = vrot.lane.b32.xlu0 %v483_v38, %s7333_s30  ;;  %v599_v37 = vsel %vm518_vm0, %v597_v10, %v598_v11  ;;  %v7637_v38 = vmul.f32 %v648_v12, %v7557_v31  ;;  %v650_v25 = vmul.f32 %v648_v12, %v7602_v7  ;;  %v602_v44 = vrot.slane %v587_v28, 1  ;;  %v6751_v10 = vld [vmem:[%s9892_s3 + $0x10] ss:$8 sps:$4 sm:$0xff]   ;;  %v6754_v23 = vld [vmem:[%s9892_s3] ss:$8 sps:$4 sm:$0xff]   ;;  %s409_s24 = scalar_lea.vmem [#allocation9], %s6288_s29 }
  0xbd   : > { %v596_v39 = vsel %vm518_vm0, %v594_v20, %v595_v21  ;;  %v7642_v40 = vmul.f32 %v648_v12, %v7541_v18  ;;  %v7645_v41 = vsel %vm630_vm1, %v631_v29, %v632_v34  ;;  %v7648_v42 = vsel %vm630_vm1, %v632_v34, %v634_v36  ;;  %s7260_s29 = sshll.u32 %s7341_s16, 4  ;;  %s7261_s29 = int_to_ptr.vmem [resolvable:$false] %s7260_s29 }
  0xbe   : > { %v600_v45 = vrot.slane %v586_v32, 1  ;;  %v7334_v47 = vmov 0.0   ;;  %v665_v48 = vrot.slane %v651_v33, 2  ;;  %v666_v49 = vrot.slane %v7637_v38, 2  ;;  %860 = vmatpush1.bf16.msra.mxu0 %v6748_v59  ;;  %s7262_s25 = scalar_lea.vmem %s7261_s29, 1024 }
  0xbf   : > { %417 = vst [vmem:[#allocation2 + $0x8] sm:$0xff] %v7334_v47  ;;  %416 = vst [vmem:[#allocation2] sm:$0xff] %v7334_v47  ;;  %v603_v55 = vsel %vm518_vm0, %v598_v11, %v602_v44  ;;  %v655_v57 = vmul.f32 %v648_v12, %v641_v50  ;;  %v654_v58 = vmul.f32 %v648_v12, %v7617_v17  ;;  %861 = vmatprep.subr.bf16.mxu0 %v6749_v5 }
  0xc0   : > { %497 = vrot.lane.b32.xlu1 %v486_v51, %s7333_s30  ;;  %495 = vrot.lane.b32.xlu0 %v485_v52, %s7333_s30  ;;  %418 = vst [vmem:[#allocation2 + $0x10] sm:$0xff] %v7334_v47  ;;  %421 = vst [vmem:[#allocation2 + $0x60] sm:$0x3f] %v7334_v47  ;;  %v662_v51 = vrot.slane %v650_v25, 2  ;;  %v663_v52 = vrot.slane %v7642_v40, 2  ;;  %v601_v56 = vsel %vm518_vm0, %v595_v21, %v600_v45  ;;  %v7761_v54 = vsub.s32 5, %v7492_v1 }
  0xc1   : > { %422 = vst [vmem:[#allocation2 + $0x68] sm:$0x3f] %v7334_v47  ;;  %423 = vst [vmem:[#allocation2 + $0x70] sm:$0x3f] %v7334_v47  ;;  %v667_v60 = vsel %vm630_vm1, %v665_v48, %v666_v49  ;;  %v697_v63 = vmul.f32 %v692_v53, %v7557_v31  ;;  %v694_v0 = vmul.f32 %v692_v53, %v7602_v7  ;;  %v670_v6 = vrot.slane %v655_v57, 2 }
  0xc2   : > { %426 = vst [vmem:[#allocation2 + $0x20] sm:$0xff] %v7334_v47  ;;  %427 = vst [vmem:[#allocation2 + $0x40] sm:$0xff] %v7334_v47  ;;  %v696_v4 = vmul.f32 %v692_v53, %v7541_v18  ;;  %v668_v9 = vrot.slane %v654_v58, 2  ;;  %862 = vmatpush1.bf16.msra.mxu0 %v6751_v10  ;;  %v699_v21 = vmul.f32 %v692_v53, %v641_v50  ;;  %v7739_v40 = vld [vmem:[%s9894_s5 + $0x10] sm:$0x77] }
  0xc3   : > { %420 = vst.msk [vmem:[#allocation2 + $0x18] sm:$0xff] %vm419_vm2, %v7334_v47  ;;  %428 = vst.msk [vmem:[#allocation2 + $0x38] sm:$0xff] %vm419_vm2, %v7334_v47  ;;  %v710_v7 = vrot.slane %v697_v63, 2  ;;  %v706_v11 = vrot.slane %v694_v0, 2  ;;  %v671_v19 = vsel %vm630_vm1, %v666_v49, %v670_v6  ;;  %v698_v22 = vmul.f32 %v692_v53, %v7617_v17 }
  0xc4   : > { %562 = vrot.lane.b32.xlu1 %v555_v61, %s7332_s12  ;;  %560 = vrot.lane.b32.xlu0 %v552_v62, %s7332_s12  ;;  %v695_v61 = vmul.f32 %v692_v53, %v7614_v15  ;;  %v664_v62 = vsel %vm630_vm1, %v662_v51, %v663_v52  ;;  %429 = vst.msk [vmem:[#allocation2 + $0x58] sm:$0xff] %vm419_vm2, %v7334_v47  ;;  %v707_v12 = vrot.slane %v696_v4, 2  ;;  %v6752_v15 = vld [vmem:[%s9892_s3 + $0x4] ss:$8 sps:$4 sm:$0xff]   ;;  %v7335_v17 = vmov 0   ;;  %9972 = vst [vmem:[#allocation19_spill] sm:$0xff] %v7761_v54 }
  0xc5   : > { %v669_v20 = vsel %vm630_vm1, %v663_v52, %v668_v9  ;;  %863 = vmatprep.subr.bf16.mxu0 %v6752_v15  ;;  %881 = vmatprep.mubr.bf16.mxu0 %v7335_v17  ;;  %v714_v30 = vrot.slane %v699_v21, 2  ;;  %v712_v32 = vrot.slane %v698_v22, 2  ;;  %v1514_v44 = vrot.slane %v7739_v40, %v7498_v3  ;;  %425 = vst.msk [vmem:[#allocation2 + $0x78] sm:$0x3f] %vm424_vm5, %v7334_v47  ;;  %v6290_v47 = vld [vmem:[%s9891_s2] ss:$0 sm:$0xff] }
  0xc6   : > { %v709_v31 = vrot.slane %v695_v61, 2  ;;  %v708_v29 = vsel %vm630_vm1, %v706_v11, %v707_v12  ;;  %864 = vmatpush1.bf16.msra.mxu0 %v6754_v23  ;;  %v7752_v49 = vsub.s32 4, %v7492_v1  ;;  %v7783_v0 = vld [vmem:[#allocation2 + $0x8] sm:$0xc0]  ;;  %v441_v15 = vmul.f32 %v7533_v14, %v7541_v18 }
  0xc7   : > { %v715_v36 = vsel %vm630_vm1, %v710_v7, %v714_v30  ;;  %v1524_v51 = vrot.slane %v1514_v44, %v7498_v3  ;;  %v7785_v4 = vld [vmem:[#allocation2 + $0x10] sm:$0xc0] }
  0xc8   : > { %566 = vrot.lane.b32.xlu1 %v559_v24, %s7332_s12  ;;  %564 = vrot.lane.b32.xlu0 %v557_v26, %s7332_s12  ;;  %v914_v24 = vld [vmem:[%s9894_s5] sm:$0x77]  ;;  %v7715_v26 = vsub.s32 6, %v7492_v1  ;;  %v711_v28 = vsel %vm630_vm1, %v709_v31, %v710_v7  ;;  %9971 = vst [vmem:[#allocation18_spill] sm:$0xff] %v7752_v49  ;;  %v1132_v59 = vrot.slane %v7726_v35, %v7752_v49 }
  0xc9   : > { %v1034_v33 = vrot.slane %v914_v24, %v7498_v3  ;;  %v931_v50 = vrot.slane %v914_v24, %v7525_v13  ;;  %v935_v53 = vrot.slane %v914_v24, %v7752_v49  ;;  %v968_v57 = vrot.slane %v914_v24, %v7495_v2 }
  0xca   : > { %9970 = vst [vmem:[#allocation17_spill] sm:$0xff] %v7715_v26  ;;  %v1038_v34 = vrot.slane %v914_v24, %v7715_v26  ;;  %v1265_v43 = vrot.slane %v7726_v35, %v7715_v26  ;;  %v1518_v48 = vrot.slane %v7739_v40, %v7715_v26 }
  0xcb   : > { %v1044_v38 = vrot.slane %v1034_v33, %v7498_v3  ;;  %v945_v58 = vrot.slane %v935_v53, %v7525_v13  ;;  %v7777_v61 = vrot.slane %v968_v57, %v7495_v2 }
  0xcc   : > { %606 = vrot.lane.b32.xlu1 %v599_v37, %s7333_s30  ;;  %604 = vrot.lane.b32.xlu0 %v596_v39, %s7333_s30  ;;  %v713_v37 = vsel %vm630_vm1, %v707_v12, %v712_v32  ;;  %v1048_v25 = vrot.slane %v1038_v34, %v7498_v3  ;;  %v1261_v39 = vrot.slane %v7726_v35, %v7498_v3 }
  0xcd   : > { %v1275_v46 = vrot.slane %v1265_v43, %v7498_v3  ;;  %v1528_v52 = vrot.slane %v1518_v48, %v7498_v3  ;;  %v983_v5 = vmul.f32 %v7777_v61, %v7783_v0 }
  0xce   : > { %v1271_v45 = vrot.slane %v1261_v39, %v7498_v3 }
  0xd0   : > { %610 = vrot.lane.b32.xlu1 %v603_v55, %s7333_s30  ;;  %608 = vrot.lane.b32.xlu0 %v601_v56, %s7333_s30  ;;  %v941_v55 = vrot.slane %v931_v50, %v7525_v13  ;;  %v1128_v56 = vrot.slane %v7726_v35, %v7525_v13 }
  0xd2   : > { %v1138_v1 = vrot.slane %v1128_v56, %v7525_v13 }
  0xd4   : > { %674 = vrot.lane.b32.xlu1 %v667_v60, %s7332_s12  ;;  %672 = vrot.lane.b32.xlu0 %v664_v62, %s7332_s12  ;;  %v972_v60 = vrot.slane %v914_v24, %v7761_v54  ;;  %v1142_v62 = vrot.slane %v1132_v59, %v7525_v13 }
  0xd6   : > { %v7781_v63 = vrot.slane %v972_v60, %v7495_v2 }
  0xd8   : > { %678 = vrot.lane.b32.xlu1 %v671_v19, %s7332_s12  ;;  %676 = vrot.lane.b32.xlu0 %v669_v20, %s7332_s12  ;;  %v984_v6 = vmul.f32 %v7781_v63, %v7785_v4  ;;  %s7338_s12 = smov 64  }
  0xdc   : > { %718 = vrot.lane.b32.xlu1 %v711_v28, %s7333_s30  ;;  %716 = vrot.lane.b32.xlu0 %v708_v29, %s7333_s30 }
  0xe0   : > { %722 = vrot.lane.b32.xlu1 %v715_v36, %s7333_s30  ;;  %720 = vrot.lane.b32.xlu0 %v713_v37, %s7333_s30  ;;  %s7337_s30 = smov 96  }
  0xe4   : > { %1051 = vrot.lane.b32.xlu0 %v1044_v38, %s7336_s13  ;;  %1053 = vrot.lane.b32.xlu1 %v1048_v25, %s7336_s13 }
  0xe8   : > { %1278 = vrot.lane.b32.xlu0 %v1271_v45, %s7336_s13  ;;  %1280 = vrot.lane.b32.xlu1 %v1275_v46, %s7336_s13 }
  0xec   : > { %1531 = vrot.lane.b32.xlu0 %v1524_v51, %s7336_s13  ;;  %1533 = vrot.lane.b32.xlu1 %v1528_v52, %s7336_s13 }
  0xf0   : > { %948 = vrot.lane.b32.xlu0 %v941_v55, %s7337_s30  ;;  %950 = vrot.lane.b32.xlu1 %v945_v58, %s7337_s30 }
  0xf4   : > { %1145 = vrot.lane.b32.xlu0 %v1138_v1, %s7337_s30  ;;  %1147 = vrot.lane.b32.xlu1 %v1142_v62, %s7337_s30 }
  0xf8   : > { %995 = vrot.lane.b32.xlu0 %v983_v5, %s7337_s30  ;;  %997 = vrot.lane.b32.xlu1 %v984_v6, %s7337_s30 }
 0x126   : > { %v463_v9 = vpop.permute.xlu1 %462  ;;  %v461_v10 = vpop.permute.xlu0 %460 }
 0x127   : > { %v469_v11 = vsel %vm468_vm3, %v461_v10, %v463_v9 }
 0x128   : > { %v473_v12 = vadd.f32 %v469_v11, %v7537_v16  ;;  %v7823_v11 = vld [vmem:[#allocation2 + $0x38] sm:$0xff] }
 0x12a   : > { %v467_v31 = vpop.permute.xlu1 %466  ;;  %v465_v7 = vpop.permute.xlu0 %464 }
 0x12b   : > { %v470_v21 = vsel %vm468_vm3, %v465_v7, %v467_v31 }
 0x12c   : > { %v474_v24 = vadd.f32 %v470_v21, %v441_v15  ;;  %v1028_v21 = vld [vmem:[#allocation2 + $0x18] sm:$0xc0] }
 0x12e   : > { %v494_v19 = vpop.permute.xlu1 %493  ;;  %v492_v20 = vpop.permute.xlu0 %491 }
 0x12f   : > { %v500_v22 = vsel %vm499_vm4, %v492_v20, %v494_v19 }
 0x130   : > { %v504_v23 = vadd.f32 %v500_v22, %v473_v12 }
 0x132   : > { %v498_v28 = vpop.permute.xlu1 %497  ;;  %v496_v29 = vpop.permute.xlu0 %495  ;;  %v526_v17 = vadd.f32 %v7553_v27, %v504_v23 }
 0x133   : > { %v501_v30 = vsel %vm499_vm4, %v496_v29, %v498_v28 }
 0x134   : > { %v505_v32 = vadd.f32 %v501_v30, %v474_v24  ;;  %v1359_v30 = vrot.slane %v7739_v40, %v7525_v13 }
 0x136   : > { %v563_v33 = vpop.permute.xlu1 %562  ;;  %v561_v16 = vpop.permute.xlu0 %560  ;;  %v527_v34 = vadd.f32 %v7605_v8, %v505_v32 }
 0x137   : > { %v568_v36 = vsel %vm468_vm3, %v561_v16, %v563_v33  ;;  %v1030_v33 = vld [vmem:[#allocation2 + $0x58] sm:$0x3f] }
 0x138   : > { %v572_v37 = vadd.f32 %v568_v36, %v526_v17  ;;  %v7852_v36 = vld [vmem:[%s9894_s5 + $0x40] sm:$0x77] }
 0x13a   : > { %v567_v14 = vpop.permute.xlu1 %566  ;;  %v565_v18 = vpop.permute.xlu0 %564 }
 0x13b   : > { %v569_v39 = vsel %vm468_vm3, %v565_v18, %v567_v14  ;;  %v1369_v14 = vrot.slane %v1359_v30, %v7525_v13 }
 0x13c   : > { %v573_v27 = vadd.f32 %v569_v39, %v527_v34  ;;  %v1363_v39 = vrot.slane %v7739_v40, %v7752_v49 }
 0x13e   : > { %v607_v38 = vpop.permute.xlu1 %606  ;;  %v605_v25 = vpop.permute.xlu0 %604 }
 0x13f   : > { %v612_v43 = vsel %vm499_vm4, %v605_v25, %v607_v38  ;;  %v3419_v25 = vrot.slane %v7852_v36, %v7715_v26 }
 0x140   : > { %v616_v44 = vadd.f32 %v612_v43, %v572_v37 }
 0x141   : > { %v3429_v43 = vrot.slane %v3419_v25, %v7498_v3 }
 0x142   : > { %v611_v45 = vpop.permute.xlu1 %610  ;;  %v609_v46 = vpop.permute.xlu0 %608  ;;  %v638_v48 = vadd.f32 %v7645_v41, %v616_v44  ;;  %v917_v44 = vld [vmem:[%s9895_s6] sm:$0x3] }
 0x143   : > { %v613_v50 = vsel %vm499_vm4, %v609_v46, %v611_v45  ;;  %v1618_v46 = vrot.slane %v917_v44, %v7525_v13 }
 0x144   : > { %v617_v8 = vadd.f32 %v613_v50, %v573_v27  ;;  %v1373_v27 = vrot.slane %v1363_v39, %v7525_v13 }
 0x146   : > { %v675_v51 = vpop.permute.xlu1 %674  ;;  %v673_v52 = vpop.permute.xlu0 %672  ;;  %v639_v53 = vadd.f32 %v7648_v42, %v617_v8  ;;  %v7820_v42 = vld [vmem:[%s9894_s5 + $0x30] sm:$0x77]  ;;  %v3415_v8 = vrot.slane %v7852_v36, %v7498_v3 }
 0x147   : > { %v680_v57 = vsel %vm468_vm3, %v673_v52, %v675_v51  ;;  %v2937_v12 = vrot.slane %v7820_v42, %v7498_v3  ;;  %v2941_v16 = vrot.slane %v7820_v42, %v7715_v26 }
 0x148   : > { %v684_v58 = vadd.f32 %v680_v57, %v638_v48  ;;  %v2834_v48 = vrot.slane %v7820_v42, %v7525_v13 }
 0x149   : > { %v2947_v17 = vrot.slane %v2937_v12, %v7498_v3  ;;  %v2951_v37 = vrot.slane %v2941_v16, %v7498_v3 }
 0x14a   : > { %v679_v55 = vpop.permute.xlu1 %678  ;;  %v677_v56 = vpop.permute.xlu0 %676  ;;  %v2844_v52 = vrot.slane %v2834_v48, %v7525_v13 }
 0x14b   : > { %v681_v1 = vsel %vm468_vm3, %v677_v56, %v679_v55  ;;  %v3425_v55 = vrot.slane %v3415_v8, %v7498_v3 }
 0x14c   : > { %v685_v5 = vadd.f32 %v681_v1, %v639_v53  ;;  %v2871_v53 = vrot.slane %v7820_v42, %v7495_v2 }
 0x14e   : > { %v719_v59 = vpop.permute.xlu1 %718  ;;  %v717_v60 = vpop.permute.xlu0 %716  ;;  %v7890_v57 = vrot.slane %v2871_v53, %v7495_v2 }
 0x14f   : > { %v724_v41 = vsel %vm499_vm4, %v717_v60, %v719_v59  ;;  %v2838_v59 = vrot.slane %v7820_v42, %v7752_v49  ;;  %v7896_v60 = vld [vmem:[#allocation2 + $0x8] sm:$0xfc] }
 0x150   : > { %v728_v62 = vadd.f32 %v724_v41, %v684_v58  ;;  %v1622_v58 = vrot.slane %v917_v44, %v7495_v2  ;;  %v2886_v41 = vmul.f32 %v7890_v57, %v7896_v60 }
 0x152   : > { %v723_v6 = vpop.permute.xlu1 %722  ;;  %v721_v9 = vpop.permute.xlu0 %720  ;;  %v736_v31 = vadd.f32 %v6290_v47, %v728_v62  ;;  %v2848_v62 = vrot.slane %v2838_v59, %v7525_v13 }
 0x153   : > { %v725_v10 = vsel %vm499_vm4, %v721_v9, %v723_v6  ;;  %v1509_v6 = vld [vmem:[#allocation2 + $0x38] sm:$0xfc] }
 0x154   : > { %v729_v7 = vadd.f32 %v725_v10, %v685_v5  ;;  %v738_v24 = vmax.f32 %v736_v31, 0.0  ;;  %v7911_v9 = vld [vmem:[#allocation2 + $0x58] sm:$0xff] }
 0x156   : > { %v737_v15 = vadd.f32 %v6290_v47, %v729_v7  ;;  %v7827_v19 = vpop.permute.xlu0 %1051  ;;  %v1054_v20 = vpop.permute.xlu1 %1053 }
 0x157   : > { %v1060_v22 = vmul.f32 %v7827_v19, %v7783_v0  ;;  %v1065_v23 = vmul.f32 %v1054_v20, %v7823_v11  ;;  %v1062_v29 = vmul.f32 %v1054_v20, %v1028_v21  ;;  %v7840_v0 = vld [vmem:[%s9894_s5 + $0x38] sm:$0x77]  ;;  %v1068_v34 = vmul.f32 %v1054_v20, %v1030_v33 }
 0x158   : > { %v739_v28 = vmax.f32 %v737_v15, 0.0  ;;  %v3163_v18 = vrot.slane %v7840_v0, %v7498_v3  ;;  %v3167_v45 = vrot.slane %v7840_v0, %v7715_v26  ;;  %v3029_v51 = vrot.slane %v7840_v0, %v7525_v13  ;;  %v1510_v21 = vld [vmem:[#allocation2 + $0x78] sm:$0x3] }
 0x159   : > { %1078 = vrot.lane.b32.xlu0 %v1060_v22, %s7338_s12  ;;  %1088 = vrot.lane.b32.xlu1 %v1065_v23, %s7338_s12  ;;  %v3033_v47 = vrot.slane %v7840_v0, %v7752_v49  ;;  %v7909_v5 = vsel %vm1055_vm6, %v7827_v19, %v1054_v20 }
 0x15a   : > { %v757_v32 = vpack.c.bf16 %v739_v28, %v738_v24  ;;  %v3173_v38 = vrot.slane %v3163_v18, %v7498_v3  ;;  %v3177_v50 = vrot.slane %v3167_v45, %v7498_v3  ;;  %v3039_v56 = vrot.slane %v3029_v51, %v7525_v13  ;;  %v7898_v1 = vpop.permute.xlu1 %1280  ;;  %v7946_v18 = vpop.permute.xlu0 %1278  ;;  %v2931_v51 = vld [vmem:[#allocation2 + $0x18] sm:$0xfc] }
 0x15b   : > { %v1061_v31 = vmul.f32 %v7909_v5, %v7785_v4  ;;  %v3043_v7 = vrot.slane %v3033_v47, %v7525_v13  ;;  %v1288_v15 = vmul.f32 %v7898_v1, %v7823_v11  ;;  %v1291_v20 = vmul.f32 %v7898_v1, %v7911_v9  ;;  %v756_v47 = vld [vmem:[%s9893_s4] sm:$0x3] }
 0x15c   : > { %882 = vmatmul.mubr.bf16.vlgmr.msra.gmra.mxu0 %v757_v32 }
 0x15d   : > { %1082 = vrot.lane.b32.xlu0 %v1062_v29, %s7338_s12  ;;  %2954 = vrot.lane.b32.xlu1 %v2947_v17, %s7337_s30  ;;  %v1300_v23 = vrot.slane %v1288_v15, 2  ;;  %v1305_v4 = vrot.slane %v1291_v20, 2  ;;  %v2875_v29 = vrot.slane %v7820_v42, %v7761_v54 }
 0x15e   : > { %v7913_v10 = vpop.permute.xlu1 %1533 }
 0x15f   : > { %v1541_v12 = vmul.f32 %v7913_v10, %v1509_v6  ;;  %v1544_v24 = vmul.f32 %v7913_v10, %v7911_v9  ;;  %v1547_v28 = vmul.f32 %v7913_v10, %v1510_v21  ;;  %v1306_v17 = vsel %vm630_vm1, %v1300_v23, %v1305_v4 }
 0x160   : > { %v7938_v33 = vrot.slane %v2875_v29, %v7495_v2  ;;  %v762_v6 = vrot.slane %v756_v47, %v7525_v13  ;;  %v1195_v29 = vrot.slane %v7726_v35, %v7495_v2 }
 0x161   : > { %1094 = vrot.lane.b32.xlu0 %v1068_v34, %s7338_s12  ;;  %1376 = vrot.lane.b32.xlu1 %v1369_v14, %s7337_s30  ;;  %v1559_v22 = vrot.slane %v1541_v12, 4  ;;  %v1564_v30 = vrot.slane %v1544_v24, 4  ;;  %v1570_v32 = vrot.slane %v1547_v28, 4  ;;  %v2823_v34 = vld [vmem:[#allocation2 + $0x10] sm:$0xfc] }
 0x162   : > { %v2887_v42 = vmul.f32 %v7938_v33, %v2823_v34  ;;  %v7952_v25 = vpop.permute.xlu1 %950 }
 0x163   : > { %v1571_v16 = vsel %vm1402_vm7, %v1564_v30, %v1570_v32  ;;  %v1565_v14 = vsel %vm1402_vm7, %v1559_v22, %v1564_v30  ;;  %v1439_v32 = vrot.slane %v7739_v40, %v7495_v2 }
 0x165   : > { %2956 = vrot.lane.b32.xlu0 %v2951_v37, %s7337_s30  ;;  %3180 = vrot.lane.b32.xlu1 %v3173_v38, %s7337_s30  ;;  %v7948_v37 = vpop.permute.xlu0 %1531 }
 0x169   : > { %3434 = vrot.lane.b32.xlu1 %v3429_v43, %s7337_s30  ;;  %1378 = vrot.lane.b32.xlu0 %v1373_v27, %s7337_s30  ;;  %v7950_v38 = vpop.permute.xlu0 %948  ;;  %v7956_v43 = vpop.permute.xlu1 %1147 }
 0x16d   : > { %1623 = vrot.lane.b32.xlu1 %v1618_v46, %s7337_s30  ;;  %3182 = vrot.lane.b32.xlu0 %v3177_v50, %s7337_s30  ;;  %v7954_v39 = vpop.permute.xlu0 %1145  ;;  %v7960_v27 = vpop.permute.xlu1 %997 }
 0x171   : > { %2851 = vrot.lane.b32.xlu1 %v2844_v52, %s7336_s13  ;;  %3432 = vrot.lane.b32.xlu0 %v3425_v55, %s7337_s30  ;;  %v7958_v44 = vpop.permute.xlu0 %995 }
 0x175   : > { %3046 = vrot.lane.b32.xlu1 %v3039_v56, %s7336_s13  ;;  %1625 = vrot.lane.b32.xlu0 %v1622_v58, %s7337_s30 }
 0x179   : > { %2898 = vrot.lane.b32.xlu1 %v2886_v41, %s7336_s13  ;;  %2853 = vrot.lane.b32.xlu0 %v2848_v62, %s7336_s13  ;;  %v2933_v41 = vld [vmem:[#allocation2 + $0x58] sm:$0x3] }
 0x17d   : > { %1080 = vrot.lane.b32.xlu1 %v1061_v31, %s7338_s12  ;;  %3048 = vrot.lane.b32.xlu0 %v3043_v7, %s7336_s13  ;;  %v766_v31 = vrot.slane %v756_v47, %v7495_v2 }
 0x181   : > { %1576 = vrot.lane.b32.xlu0 %v1559_v22, %s7338_s12  ;;  %1311 = vrot.lane.b32.xlu1 %v1300_v23, %s7338_s12 }
 0x185   : > { %1317 = vrot.lane.b32.xlu0 %v1306_v17, %s7338_s12  ;;  %1323 = vrot.lane.b32.xlu1 %v1305_v4, %s7338_s12 }
 0x189   : > { %1588 = vrot.lane.b32.xlu0 %v1571_v16, %s7338_s12  ;;  %1582 = vrot.lane.b32.xlu1 %v1565_v14, %s7338_s12 }
 0x18d   : > { %2900 = vrot.lane.b32.xlu0 %v2887_v42, %s7336_s13  ;;  %v8016_v42 = vrot.slane %v1195_v29, %v7495_v2 }
 0x1cb   : > { %v7962_v45 = vpop.permute.xlu0 %1078  ;;  %v7966_v48 = vpop.permute.xlu1 %1088 }
 0x1cf   : > { %v7964_v46 = vpop.permute.xlu0 %1082  ;;  %v7970_v8 = vpop.permute.xlu1 %2954 }
 0x1d0   : > { %v2962_v59 = vmul.f32 %v7970_v8, %v7896_v60 }
 0x1d3   : > { %v7968_v50 = vpop.permute.xlu0 %1094 }
 0x1d7   : > { %v2957_v52 = vpop.permute.xlu0 %2956 }
 0x1d8   : > { %v2964_v53 = vmul.f32 %v2957_v52, %v2931_v51  ;;  %v7974_v55 = vsel %vm419_vm2, %v7970_v8, %v2957_v52  ;;  %v2967_v58 = vmul.f32 %v2957_v52, %v7823_v11  ;;  %v2970_v62 = vmul.f32 %v2957_v52, %v2933_v41 }
 0x1d9   : > { %v2963_v56 = vmul.f32 %v7974_v55, %v2823_v34  ;;  %v8021_v51 = vrot.slane %v1439_v32, %v7495_v2 }
 0x1da   : > { %2984 = vrot.lane.b32.xlu0 %v2964_v53, %s7338_s12 }
 0x1db   : > { %2982 = vrot.lane.b32.xlu1 %v2963_v56, %s7338_s12 }
 0x1de   : > { %2990 = vrot.lane.b32.xlu0 %v2967_v58, %s7338_s12 }
 0x1df   : > { %2980 = vrot.lane.b32.xlu1 %v2962_v59, %s7338_s12 }
 0x1e2   : > { %2996 = vrot.lane.b32.xlu0 %v2970_v62, %s7338_s12 }
 0x21c   : > { %v883_v7 = vpop.f32.mrf.mxu0 }
 0x21d   : > { %v884_v12 = vadd.f32 %v883_v7, %v762_v6 }
 0x21e   : > { %v885_v15 = vpop.f32.mrf.mxu0 }
 0x21f   : > { %v7990_v60 = vmax.f32 %v884_v12, 0.0  ;;  %v886_v20 = vadd.f32 %v885_v15, %v766_v31 }
 0x220   : > { %v887_v21 = vpop.f32.mrf.mxu0 }
 0x221   : > { %910 = vst [vmem:[#allocation2 + $0x28] sm:$0xff] %v7990_v60  ;;  %v7993_v22 = vmax.f32 %v886_v20, 0.0  ;;  %v888_v23 = vadd.f32 %v887_v21, %v762_v6  ;;  %v985_v4 = vmul.f32 %v7777_v61, %v7990_v60  ;;  %v1063_v28 = vmul.f32 %v7827_v19, %v7990_v60 }
 0x222   : > { %v889_v24 = vpop.f32.mrf.mxu0  ;;  %v2965_v34 = vmul.f32 %v7970_v8, %v7990_v60  ;;  %v2888_v14 = vmul.f32 %v7890_v57, %v7990_v60  ;;  %v8036_v59 = vmul.f32 %v8016_v42, %v7990_v60  ;;  %v1286_v6 = vmul.f32 %v7946_v18, %v7990_v60 }
 0x223   : > { %911 = vst [vmem:[#allocation2 + $0x30] sm:$0xff] %v7993_v22  ;;  %v8002_v17 = vmax.f32 %v888_v23, 0.0  ;;  %v890_v30 = vadd.f32 %v889_v24, %v766_v31  ;;  %999 = vrot.lane.b32.xlu0 %v985_v4, %s7337_s30  ;;  %1084 = vrot.lane.b32.xlu1 %v1063_v28, %s7338_s12  ;;  %v1064_v53 = vmul.f32 %v7909_v5, %v7993_v22 }
 0x224   : > { %v986_v58 = vmul.f32 %v7781_v63, %v7993_v22  ;;  %v1218_v47 = vrot.slane %v8036_v59, 2  ;;  %v1443_v31 = vrot.slane %v7739_v40, %v7761_v54  ;;  %v1298_v12 = vrot.slane %v1286_v6, 2 }
 0x225   : > { %912 = vst [vmem:[#allocation2 + $0x48] sm:$0xff] %v8002_v17  ;;  %v8009_v16 = vmax.f32 %v890_v30, 0.0  ;;  %v2889_v21 = vmul.f32 %v7938_v33, %v7993_v22  ;;  %v1199_v40 = vrot.slane %v7726_v35, %v7761_v54  ;;  %v2966_v23 = vmul.f32 %v7974_v55, %v7993_v22 }
 0x226   : > { %v8064_v20 = vrot.slane %v1443_v31, %v7495_v2  ;;  %v8085_v35 = vsel %vm1055_vm6, %v7948_v37, %v7913_v10 }
 0x227   : > { %913 = vst [vmem:[#allocation2 + $0x50] sm:$0xff] %v8009_v16  ;;  %2986 = vrot.lane.b32.xlu0 %v2965_v34, %s7338_s12  ;;  %2902 = vrot.lane.b32.xlu1 %v2888_v14, %s7336_s13  ;;  %v1209_v29 = vrot.slane %v1199_v40, %v7495_v2 }
 0x228   : > { %v8024_v52 = vld [vmem:[#allocation2 + $0x28] sm:$0xfc]  ;;  %v1457_v59 = vmul.f32 %v8064_v20, %v8009_v16 }
 0x229   : > { %v8030_v56 = vmul.f32 %v8021_v51, %v8024_v52  ;;  %v8043_v62 = vmul.f32 %v7948_v37, %v8024_v52  ;;  %v8100_v10 = vmul.f32 %v1209_v29, %v7993_v22 }
 0x22a   : > { %v8060_v15 = vld [vmem:[#allocation2 + $0x30] sm:$0xfc] }
 0x22b   : > { %1086 = vrot.lane.b32.xlu0 %v1064_v53, %s7338_s12  ;;  %1001 = vrot.lane.b32.xlu1 %v986_v58, %s7337_s30  ;;  %v1466_v41 = vrot.slane %v8030_v56, 4  ;;  %v1557_v7 = vrot.slane %v8043_v62, 4  ;;  %v8076_v24 = vmul.f32 %v8064_v20, %v8060_v15  ;;  %v8091_v32 = vmul.f32 %v8085_v35, %v8060_v15 }
 0x22c   : > { %v8072_v4 = vld [vmem:[#allocation2 + $0x48] sm:$0x3f]  ;;  %v1282_v53 = vsel %vm1055_vm6, %v7946_v18, %v7898_v1  ;;  %v1219_v58 = vrot.slane %v8100_v10, 2  ;;  %v1289_v1 = vmul.f32 %v7946_v18, %v8002_v17  ;;  %v1456_v18 = vmul.f32 %v8021_v51, %v8002_v17 }
 0x22d   : > { %v987_v28 = vmul.f32 %v7777_v61, %v8072_v4  ;;  %v9903_v30 = vrot.slane %v8076_v24, 4  ;;  %v1066_v61 = vmul.f32 %v7827_v19, %v8072_v4  ;;  %v9902_v34 = vrot.slane %v8091_v32, 4  ;;  %v2828_v14 = vld [vmem:[#allocation2 + $0x48] sm:$0x3] }
 0x22e   : > { %v8112_v19 = vmul.f32 %v1282_v53, %v7993_v22  ;;  %v2890_v6 = vmul.f32 %v7890_v57, %v2828_v14  ;;  %v2829_v40 = vld [vmem:[#allocation2 + $0x50] sm:$0x3] }
 0x22f   : > { %1476 = vrot.lane.b32.xlu0 %v1466_v41, %s7337_s30  ;;  %1224 = vrot.lane.b32.xlu1 %v1218_v47, %s7337_s30  ;;  %v2891_v57 = vmul.f32 %v7938_v33, %v2829_v40 }
 0x230   : > { %v1299_v31 = vrot.slane %v8112_v19, 2  ;;  %v9978_v19 = vrot.slane %v8076_v24, 4  ;;  %v3101_v24 = vrot.slane %v7840_v0, %v7761_v54 }
 0x233   : > { %1572 = vrot.lane.b32.xlu0 %v1557_v7, %s7338_s12  ;;  %1307 = vrot.lane.b32.xlu1 %v1298_v12, %s7338_s12 }
 0x237   : > { %2904 = vrot.lane.b32.xlu0 %v2889_v21, %s7336_s13  ;;  %2988 = vrot.lane.b32.xlu1 %v2966_v23, %s7338_s12  ;;  %v2968_v21 = vmul.f32 %v7970_v8, %v2828_v14  ;;  %v8126_v23 = vld [vmem:[#allocation2 + $0x50] sm:$0x3f]  ;;  %v8136_v8 = vld [vmem:[#allocation2 + $0x68] sm:$0x3]  ;;  %v8138_v14 = vpop.permute.xlu0 %1378 }
 0x238   : > { %v1067_v33 = vmul.f32 %v7909_v5, %v8126_v23  ;;  %v1542_v5 = vmul.f32 %v7948_v37, %v8002_v17 }
 0x23b   : > { %1003 = vrot.lane.b32.xlu0 %v987_v28, %s7337_s30  ;;  %1478 = vrot.lane.b32.xlu1 %v9903_v30, %s7337_s30  ;;  %v988_v28 = vmul.f32 %v7781_v63, %v8126_v23  ;;  %v1212_v63 = vmul.f32 %v8016_v42, %v8002_v17  ;;  %v8156_v30 = vpop.permute.xlu0 %3182 }
 0x23f   : > { %1090 = vrot.lane.b32.xlu0 %v1066_v61, %s7338_s12  ;;  %1574 = vrot.lane.b32.xlu1 %v9902_v34, %s7338_s12  ;;  %v1301_v61 = vrot.slane %v1289_v1, 2  ;;  %v1458_v1 = vmul.f32 %v8021_v51, %v8136_v8  ;;  %v1220_v34 = vrot.slane %v1212_v63, 2  ;;  %v1545_v51 = vmul.f32 %v7948_v37, %v8136_v8 }
 0x240   : > { %v1290_v37 = vmul.f32 %v1282_v53, %v8009_v16 }
 0x243   : > { %1226 = vrot.lane.b32.xlu0 %v1219_v58, %s7337_s30  ;;  %2906 = vrot.lane.b32.xlu1 %v2890_v6, %s7336_s13  ;;  %v8140_v6 = vpop.permute.xlu1 %1376 }
 0x247   : > { %1309 = vrot.lane.b32.xlu0 %v1299_v31, %s7338_s12  ;;  %2992 = vrot.lane.b32.xlu1 %v2968_v21, %s7338_s12  ;;  %v1302_v21 = vsel %vm630_vm1, %v1298_v12, %v1301_v61  ;;  %v1472_v12 = vrot.slane %v1458_v1, 4  ;;  %v8159_v42 = vpop.permute.xlu1 %3180 }
 0x24b   : > { %2908 = vrot.lane.b32.xlu0 %v2891_v57, %s7336_s13  ;;  %1005 = vrot.lane.b32.xlu1 %v988_v28, %s7337_s30  ;;  %v1468_v57 = vrot.slane %v1456_v18, 4  ;;  %v1560_v18 = vrot.slane %v1542_v5, 4  ;;  %v8170_v63 = vpop.permute.xlu1 %3434 }
 0x24c   : > { %v3445_v26 = vmul.f32 %v8170_v63, %v7911_v9 }
 0x24d   : > { %v1469_v28 = vsel %vm1402_vm7, %v1466_v41, %v1468_v57  ;;  %v1473_v56 = vsel %vm1402_vm7, %v1468_v57, %v1472_v12  ;;  %v1566_v41 = vrot.slane %v1545_v51, 4  ;;  %v1561_v53 = vsel %vm1402_vm7, %v1557_v7, %v1560_v18  ;;  %v8201_v51 = vld [vmem:[#allocation2 + $0x70] sm:$0x3] }
 0x24f   : > { %1313 = vrot.lane.b32.xlu0 %v1302_v21, %s7338_s12  ;;  %1092 = vrot.lane.b32.xlu1 %v1067_v33, %s7338_s12  ;;  %v8167_v21 = vpop.permute.xlu0 %3432  ;;  %v1213_v33 = vmul.f32 %v1209_v29, %v8009_v16  ;;  %v1567_v1 = vsel %vm1402_vm7, %v1560_v18, %v1566_v41  ;;  %v1221_v29 = vsel %vm630_vm1, %v1218_v47, %v1220_v34 }
 0x250   : > { %v3097_v47 = vrot.slane %v7840_v0, %v7495_v2  ;;  %v1459_v18 = vmul.f32 %v8064_v20, %v8201_v51  ;;  %v1543_v41 = vmul.f32 %v8085_v35, %v8009_v16 }
 0x251   : > { %v1222_v57 = vrot.slane %v1213_v33, 2  ;;  %v1470_v33 = vrot.slane %v1457_v59, 4 }
 0x252   : > { %v3107_v10 = vrot.slane %v3097_v47, %v7495_v2  ;;  %v1562_v20 = vrot.slane %v1543_v41, 4 }
 0x253   : > { %1480 = vrot.lane.b32.xlu0 %v1469_v28, %s7337_s30  ;;  %1232 = vrot.lane.b32.xlu1 %v1220_v34, %s7337_s30  ;;  %v2969_v28 = vmul.f32 %v7974_v55, %v2829_v40  ;;  %v8177_v12 = vpop.permute.xlu0 %1625  ;;  %v1303_v55 = vrot.slane %v1290_v37, 2  ;;  %v3261_v40 = vrot.slane %v7852_v36, %v7525_v13  ;;  %v1223_v62 = vsel %vm630_vm1, %v1219_v58, %v1222_v57 }
 0x254   : > { %9973 = vst [vmem:[#allocation20_spill] sm:$0xff] %v8177_v12  ;;  %v3112_v37 = vmul.f32 %v3107_v10, %v7990_v60 }
 0x255   : > { %v1304_v7 = vsel %vm630_vm1, %v1299_v31, %v1303_v55  ;;  %v1471_v31 = vsel %vm1402_vm7, %v9978_v19, %v1470_v33 }
 0x256   : > { %v3120_v47 = vrot.slane %v3112_v37, 6 }
 0x257   : > { %1484 = vrot.lane.b32.xlu0 %v1473_v56, %s7337_s30  ;;  %1319 = vrot.lane.b32.xlu1 %v1301_v61, %s7338_s12  ;;  %v8183_v61 = vpop.permute.xlu1 %1623  ;;  %v8193_v5 = vpop.permute.xlu0 %2853  ;;  %v3271_v56 = vrot.slane %v3261_v40, %v7525_v13 }
 0x258   : > { %9974 = vst [vmem:[#allocation21_spill] sm:$0xff] %v8183_v61  ;;  %9975 = vst [vmem:[#allocation22_spill] sm:$0xff] %v8193_v5 }
 0x25b   : > { %1584 = vrot.lane.b32.xlu0 %v1567_v1, %s7338_s12  ;;  %2994 = vrot.lane.b32.xlu1 %v2969_v28, %s7338_s12  ;;  %v8199_v34 = vpop.permute.xlu1 %2851  ;;  %v8217_v58 = vpop.permute.xlu0 %3048  ;;  %v1474_v1 = vrot.slane %v1459_v18, 4 }
 0x25c   : > { %9976 = vst [vmem:[#allocation23_spill] sm:$0xff] %v8199_v34  ;;  %9977 = vst [vmem:[#allocation24_spill] sm:$0xff] %v8217_v58 }
 0x25d   : > { %v1475_v59 = vsel %vm1402_vm7, %v1470_v33, %v1474_v1  ;;  %v3184_v33 = vsel %vm419_vm2, %v8159_v42, %v8156_v30 }
 0x25e   : > { %v8263_v1 = vmul.f32 %v3184_v33, %v7993_v22 }
 0x25f   : > { %1234 = vrot.lane.b32.xlu0 %v1222_v57, %s7337_s30  ;;  %1228 = vrot.lane.b32.xlu1 %v1221_v29, %s7337_s30  ;;  %v8223_v28 = vpop.permute.xlu1 %3046  ;;  %v1546_v57 = vmul.f32 %v8085_v35, %v8201_v51  ;;  %v9980_v29 = vrot.slane %v8091_v32, 4  ;;  %v8235_v40 = vpop.permute.xlu0 %1576  ;;  %v3265_v35 = vrot.slane %v7852_v36, %v7752_v49 }
 0x260   : > { %9979 = vst [vmem:[#allocation25_spill] sm:$0xff] %v8223_v28 }
 0x261   : > { %v1568_v32 = vrot.slane %v1546_v57, 4  ;;  %v3275_v18 = vrot.slane %v3265_v35, %v7525_v13  ;;  %v3193_v35 = vmul.f32 %v8156_v30, %v7911_v9 }
 0x263   : > { %1321 = vrot.lane.b32.xlu0 %v1303_v55, %s7338_s12  ;;  %1578 = vrot.lane.b32.xlu1 %v1561_v53, %s7338_s12  ;;  %v1563_v55 = vsel %vm1402_vm7, %v9980_v29, %v1562_v20  ;;  %v3114_v53 = vmul.f32 %v3107_v10, %v8002_v17  ;;  %v1569_v0 = vsel %vm1402_vm7, %v1562_v20, %v1568_v32  ;;  %v8249_v41 = vpop.permute.xlu0 %1317 }
 0x267   : > { %1230 = vrot.lane.b32.xlu0 %v1223_v62, %s7337_s30  ;;  %1315 = vrot.lane.b32.xlu1 %v1304_v7, %s7338_s12  ;;  %v8242_v62 = vpop.permute.xlu1 %2898  ;;  %v3122_v7 = vrot.slane %v3114_v53, 6  ;;  %v8269_v57 = vpop.permute.xlu0 %1588  ;;  %v8279_v53 = vmul.f32 %v3184_v33, %v8009_v16  ;;  %v3191_v33 = vmul.f32 %v8159_v42, %v8002_v17 }
 0x268   : > { %9981 = vst [vmem:[#allocation26_spill] sm:$0xff] %v8242_v62  ;;  %9982 = vst [vmem:[#allocation27_spill] sm:$0xff] %v8269_v57  ;;  %v3465_v62 = vrot.slane %v3445_v26, 4 }
 0x269   : > { %v3123_v10 = vsel %vm3066_vm8, %v3120_v47, %v3122_v7  ;;  %v9907_v32 = vrot.slane %v8279_v53, 6 }
 0x26b   : > { %3278 = vrot.lane.b32.xlu0 %v3271_v56, %s7336_s13  ;;  %1482 = vrot.lane.b32.xlu1 %v1471_v31, %s7337_s30  ;;  %v3111_v56 = vrot.slane %v3101_v24, %v7495_v2  ;;  %v8259_v31 = vpop.permute.xlu1 %1080  ;;  %v3190_v24 = vmul.f32 %v8156_v30, %v7823_v11  ;;  %v3188_v11 = vmul.f32 %v8159_v42, %v7990_v60  ;;  %v8321_v42 = vld [vmem:[#allocation2 + $0x28] sm:$0xc0] }
 0x26c   : > { %9987 = vst [vmem:[#allocation32_spill] sm:$0xff] %v8321_v42 }
 0x26d   : > { %v8256_v19 = vmul.f32 %v3111_v56, %v7993_v22  ;;  %v8267_v37 = vmul.f32 %v3111_v56, %v8009_v16  ;;  %v3202_v56 = vrot.slane %v3190_v24, 6  ;;  %v8312_v24 = vld [vmem:[#allocation2 + $0x70] sm:$0x3f] }
 0x26e   : > { %9984 = vst [vmem:[#allocation29_spill] sm:$0xff] %v8312_v24 }
 0x26f   : > { %1580 = vrot.lane.b32.xlu0 %v1563_v55, %s7338_s12  ;;  %1486 = vrot.lane.b32.xlu1 %v1475_v59, %s7337_s30  ;;  %v9904_v20 = vrot.slane %v8256_v19, 6  ;;  %v8272_v29 = vpop.permute.xlu1 %1311  ;;  %v9906_v55 = vrot.slane %v8263_v1, 6  ;;  %v9905_v59 = vrot.slane %v8267_v37, 6 }
 0x273   : > { %3126 = vrot.lane.b32.xlu0 %v3120_v47, %s7336_s13  ;;  %1586 = vrot.lane.b32.xlu1 %v1569_v0, %s7338_s12  ;;  %v8292_v47 = vpop.permute.xlu0 %2900  ;;  %v8299_v30 = vpop.permute.xlu1 %1323  ;;  %v3207_v0 = vrot.slane %v3193_v35, 6 }
 0x274   : > { %9983 = vst [vmem:[#allocation28_spill] sm:$0xff] %v8292_v47 }
 0x275   : > { %v3208_v35 = vsel %vm3066_vm8, %v3202_v56, %v3207_v0 }
 0x277   : > { %3130 = vrot.lane.b32.xlu0 %v3123_v10, %s7336_s13  ;;  %3280 = vrot.lane.b32.xlu1 %v3275_v18, %s7336_s13  ;;  %v3200_v18 = vrot.slane %v3188_v11, 6  ;;  %v3203_v11 = vrot.slane %v3191_v33, 6  ;;  %v8336_v33 = vld [vmem:[#allocation2 + $0x68] sm:$0x3f] }
 0x278   : > { %9989 = vst [vmem:[#allocation34_spill] sm:$0xff] %v8336_v33 }
 0x27b   : > { %3134 = vrot.lane.b32.xlu0 %v3122_v7, %s7336_s13  ;;  %3128 = vrot.lane.b32.xlu1 %v9904_v20, %s7336_s13  ;;  %v3344_v7 = vrot.slane %v7852_v36, %v7761_v54  ;;  %v3340_v20 = vrot.slane %v7852_v36, %v7495_v2  ;;  %v3411_v54 = vld [vmem:[#allocation2 + $0x78] sm:$0x3f] }
 0x27d   : > { %v8308_v10 = vrot.slane %v3344_v7, %v7495_v2  ;;  %v3350_v36 = vrot.slane %v3340_v20, %v7495_v2 }
 0x27f   : > { %3211 = vrot.lane.b32.xlu0 %v9906_v55, %s7338_s12  ;;  %3136 = vrot.lane.b32.xlu1 %v9905_v59, %s7336_s13  ;;  %v8314_v59 = vpop.permute.xlu0 %2984  ;;  %v3410_v55 = vld [vmem:[#allocation2 + $0x38] sm:$0xc0]  ;;  %v8325_v7 = vmul.f32 %v8308_v10, %v8312_v24  ;;  %v3357_v20 = vmul.f32 %v3350_v36, %v8002_v17 }
 0x280   : > { %9985 = vst [vmem:[#allocation30_spill] sm:$0xff] %v8314_v59 }
 0x281   : > { %v9923_v49 = vrot.slane %v8325_v7, 4  ;;  %v3368_v5 = vrot.slane %v3357_v20, 4  ;;  %v3446_v20 = vmul.f32 %v8167_v21, %v8336_v33 }
 0x283   : > { %3223 = vrot.lane.b32.xlu0 %v9907_v32, %s7338_s12  ;;  %3213 = vrot.lane.b32.xlu1 %v3202_v56, %s7338_s12  ;;  %v8318_v32 = vpop.permute.xlu1 %1582  ;;  %v3442_v56 = vmul.f32 %v8170_v63, %v3410_v55  ;;  %v8331_v3 = vpop.permute.xlu0 %2990  ;;  %v3448_v55 = vmul.f32 %v8170_v63, %v3411_v54 }
 0x284   : > { %9986 = vst [vmem:[#allocation31_spill] sm:$0xff] %v8318_v32  ;;  %9988 = vst [vmem:[#allocation33_spill] sm:$0xff] %v8331_v3  ;;  %v3204_v3 = vsel %vm3066_vm8, %v3200_v18, %v3203_v11 }
 0x285   : > { %v3464_v9 = vrot.slane %v3442_v56, 4  ;;  %v3471_v56 = vrot.slane %v3448_v55, 4 }
 0x287   : > { %3209 = vrot.lane.b32.xlu0 %v3200_v18, %s7338_s12  ;;  %3219 = vrot.lane.b32.xlu1 %v3208_v35, %s7338_s12  ;;  %v3355_v35 = vmul.f32 %v3350_v36, %v8321_v42  ;;  %v8340_v59 = vpop.permute.xlu1 %2982  ;;  %v8349_v34 = vpop.permute.xlu0 %2996  ;;  %v3466_v26 = vsel %vm1402_vm7, %v3464_v9, %v3465_v62 }
 0x288   : > { %9990 = vst [vmem:[#allocation35_spill] sm:$0xff] %v8340_v59  ;;  %9991 = vst [vmem:[#allocation36_spill] sm:$0xff] %v8349_v34 }
 0x289   : > { %v3367_v47 = vrot.slane %v3355_v35, 4  ;;  %v3443_v35 = vmul.f32 %v8167_v21, %v8002_v17 }
 0x28b   : > { %3221 = vrot.lane.b32.xlu0 %v3203_v11, %s7338_s12  ;;  %3225 = vrot.lane.b32.xlu1 %v3207_v0, %s7338_s12  ;;  %v3359_v0 = vmul.f32 %v3350_v36, %v8336_v33  ;;  %v8351_v28 = vpop.permute.xlu1 %2980  ;;  %v3369_v54 = vsel %vm1402_vm7, %v3367_v47, %v3368_v5  ;;  %v3436_v47 = vsel %vm419_vm2, %v8167_v21, %v8170_v63  ;;  %v8380_v63 = vld [vmem:[#allocation2 + $0x30] sm:$0xc0] }
 0x28c   : > { %9992 = vst [vmem:[#allocation37_spill] sm:$0xff] %v8351_v28  ;;  %9995 = vst [vmem:[#allocation40_spill] sm:$0xff] %v8380_v63 }
 0x28d   : > { %v3373_v18 = vrot.slane %v3359_v0, 4 }
 0x28f   : > { %3387 = vrot.lane.b32.xlu0 %v9923_v49, %s7336_s13  ;;  %3215 = vrot.lane.b32.xlu1 %v3204_v3, %s7338_s12  ;;  %v3472_v3 = vsel %vm1402_vm7, %v3465_v62, %v3471_v56  ;;  %v3374_v9 = vsel %vm1402_vm7, %v3368_v5, %v3373_v18  ;;  %v3459_v62 = vrot.slane %v3443_v35, 4  ;;  %v3440_v49 = vmul.f32 %v8167_v21, %v8321_v42 }
 0x290   : > { %v3356_v35 = vmul.f32 %v8308_v10, %v8380_v63  ;;  %v3358_v21 = vmul.f32 %v8308_v10, %v8009_v16  ;;  %v9997_v42 = vrot.slane %v8263_v1, 6  ;;  %v3441_v1 = vmul.f32 %v3436_v47, %v8380_v63  ;;  %v6755_v63 = vld [vmem:[#allocation4 + $0x74] ss:$8 sps:$4 sm:$0xff]  }
 0x291   : > { %1886 = vmatprep.subr.bf16.mxu1 %v6755_v63  ;;  %v6764_v63 = vld [vmem:[#allocation4 + $0x44] ss:$8 sps:$4 sm:$0xff]  }
 0x292   : > { %v3370_v34 = vrot.slane %v3356_v35, 4  ;;  %v10001_v35 = vrot.slane %v8325_v7, 4  ;;  %v6757_v7 = vld [vmem:[#allocation4 + $0x70] ss:$8 sps:$4 sm:$0xff]  }
 0x293   : > { %3477 = vrot.lane.b32.xlu0 %v3466_v26, %s7338_s12  ;;  %3377 = vrot.lane.b32.xlu1 %v3369_v54, %s7336_s13  ;;  %v3467_v26 = vrot.slane %v3446_v20, 4  ;;  %v3447_v54 = vmul.f32 %v3436_v47, %v8312_v24  ;;  %v9996_v24 = vrot.slane %v8279_v53, 6  ;;  %v6385_v53 = vld [vmem:[%s9895_s6 + $0x4] sm:$0x3] }
 0x294   : > { %1887 = vmatpush1.bf16.msra.mxu1 %v6757_v7 }
 0x295   : > { %v8357_v11 = vpop.permute.xlu0 %999  ;;  %v8359_v36 = vpop.permute.xlu1 %1084  ;;  %v3469_v33 = vrot.slane %v3447_v54, 4  ;;  %v3206_v54 = vsel %vm3066_vm8, %v9997_v42, %v9996_v24  ;;  %v3444_v24 = vmul.f32 %v3436_v47, %v8009_v16 }
 0x297   : > { %3483 = vrot.lane.b32.xlu0 %v3472_v3, %s7338_s12  ;;  %3381 = vrot.lane.b32.xlu1 %v3374_v9, %s7336_s13  ;;  %v3468_v9 = vsel %vm1402_vm7, %v3459_v62, %v3467_v26  ;;  %v3462_v47 = vrot.slane %v3444_v24, 4  ;;  %v6761_v24 = vld [vmem:[#allocation4 + $0x54] ss:$8 sps:$4 sm:$0xff]  }
 0x299   : > { %v8372_v55 = vpop.permute.xlu0 %2986  ;;  %v8374_v0 = vpop.permute.xlu1 %2902 }
 0x29a   : > { %9993 = vst [vmem:[#allocation38_spill] sm:$0xff] %v8372_v55  ;;  %9994 = vst [vmem:[#allocation39_spill] sm:$0xff] %v8374_v0 }
 0x29b   : > { %3489 = vrot.lane.b32.xlu0 %v3471_v56, %s7338_s12  ;;  %3385 = vrot.lane.b32.xlu1 %v3373_v18, %s7336_s13  ;;  %v3458_v56 = vrot.slane %v3440_v49, 4 }
 0x29d   : > { %v8383_v5 = vpop.permute.xlu0 %1086  ;;  %v8385_v3 = vpop.permute.xlu1 %1001  ;;  %v3460_v49 = vsel %vm1402_vm7, %v3458_v56, %v3459_v62 }
 0x29f   : > { %3479 = vrot.lane.b32.xlu0 %v3468_v9, %s7338_s12  ;;  %3487 = vrot.lane.b32.xlu1 %v3469_v33, %s7338_s12  ;;  %v3371_v9 = vrot.slane %v3358_v21, 4  ;;  %v3519_v21 = vrot.slane %v6385_v53, %v7525_v13  ;;  %v7188_v13 = vld [vmem:[#allocation2 + $0x10] sm:$0xc0] }
 0x2a1   : > { %v8394_v20 = vpop.permute.xlu0 %1476  ;;  %v8396_v18 = vpop.permute.xlu1 %1224  ;;  %v3372_v28 = vsel %vm1402_vm7, %v3370_v34, %v3371_v9  ;;  %v3376_v34 = vsel %vm1402_vm7, %v3371_v9, %v10001_v35 }
 0x2a3   : > { %3217 = vrot.lane.b32.xlu0 %v3206_v54, %s7338_s12  ;;  %3473 = vrot.lane.b32.xlu1 %v3460_v49, %s7338_s12  ;;  %v3461_v54 = vrot.slane %v3441_v1, 4 }
 0x2a5   : > { %v8406_v55 = vpop.permute.xlu0 %1572  ;;  %v8408_v10 = vpop.permute.xlu1 %1307 }
 0x2a6   : > { %9998 = vst [vmem:[#allocation41_spill] sm:$0xff] %v8406_v55 }
 0x2a7   : > { %3379 = vrot.lane.b32.xlu0 %v3372_v28, %s7336_s13  ;;  %3485 = vrot.lane.b32.xlu1 %v3467_v26, %s7338_s12  ;;  %v10002_v28 = vrot.slane %v8267_v37, 6  ;;  %v10003_v26 = vrot.slane %v8256_v19, 6  ;;  %v3463_v37 = vsel %vm1402_vm7, %v3461_v54, %v3462_v47  ;;  %v6760_v19 = vld [vmem:[#allocation4 + $0x60] ss:$8 sps:$4 sm:$0xff]   ;;  %v918_v54 = vld [vmem:[#allocation2] sm:$0xc0] }
 0x2a9   : > { %v8418_v42 = vpop.permute.xlu0 %2904  ;;  %v8420_v62 = vpop.permute.xlu1 %2988  ;;  %v3125_v56 = vsel %vm3066_vm8, %v10003_v26, %v10002_v28  ;;  %v3523_v28 = vrot.slane %v6385_v53, %v7495_v2  ;;  %v6763_v26 = vld [vmem:[#allocation4 + $0x50] ss:$8 sps:$4 sm:$0xff]   ;;  %v956_v53 = vmul.f32 %v7950_v38, %v918_v54  ;;  %v8466_v2 = vld [vmem:[#allocation2 + $0x8] sm:$0xff] }
 0x2aa   : > { %9999 = vst [vmem:[#allocation42_spill] sm:$0xff] %v8418_v42  ;;  %10000 = vst [vmem:[#allocation43_spill] sm:$0xff] %v8420_v62  ;;  %v6758_v62 = vld [vmem:[#allocation4 + $0x64] ss:$8 sps:$4 sm:$0xff]   ;;  %v1153_v54 = vmul.f32 %v8466_v2, %v7954_v39  ;;  %v1387_v59 = vmul.f32 %v8466_v2, %v8140_v6  ;;  %v1380_v42 = vsel %vm419_vm2, %v8140_v6, %v8138_v14 }
 0x2ab   : > { %3383 = vrot.lane.b32.xlu0 %v3376_v34, %s7336_s13  ;;  %3132 = vrot.lane.b32.xlu1 %v3125_v56, %s7336_s13  ;;  %v3470_v34 = vsel %vm1402_vm7, %v3462_v47, %v3469_v33  ;;  %v6767_v33 = vld [vmem:[#allocation4 + $0x34] ss:$8 sps:$4 sm:$0xff]   ;;  %10008 = vst [vmem:[#allocation48_spill] sm:$0xff] %v8466_v2 }
 0x2ac   : > { %1888 = vmatprep.subr.bf16.mxu1 %v6758_v62  ;;  %v6766_v62 = vld [vmem:[#allocation4 + $0x40] ss:$8 sps:$4 sm:$0xff]   ;;  %v8492_v57 = vrot.slane %v1153_v54, 2  ;;  %v1406_v55 = vrot.slane %v1387_v59, 4  ;;  %v6776_v54 = vld [vmem:[#allocation4 + $0x4] ss:$8 sps:$4 sm:$0xff]   ;;  %v959_v59 = vmul.f32 %v8466_v2, %v7950_v38 }
 0x2ad   : > { %v8433_v49 = vpop.permute.xlu0 %1003  ;;  %v8435_v9 = vpop.permute.xlu1 %1478  ;;  %1889 = vmatpush1.bf16.msra.mxu1 %v6760_v19 }
 0x2ae   : > { %1890 = vmatprep.subr.bf16.mxu1 %v6761_v24  ;;  %v6770_v24 = vld [vmem:[#allocation4 + $0x24] ss:$8 sps:$4 sm:$0xff]   ;;  %v1022_v2 = vadd.f32 %v8357_v11, %v959_v59 }
 0x2af   : > { %3524 = vrot.lane.b32.xlu0 %v3519_v21, %s7336_s13  ;;  %3475 = vrot.lane.b32.xlu1 %v3463_v37, %s7338_s12  ;;  %v6769_v37 = vld [vmem:[#allocation4 + $0x30] ss:$8 sps:$4 sm:$0xff]  }
 0x2b0   : > { %v1115_v59 = vadd.f32 %v8359_v36, %v1022_v2 }
 0x2b1   : > { %v8440_v1 = vpop.permute.xlu0 %1090  ;;  %v8442_v35 = vpop.permute.xlu1 %1574  ;;  %1891 = vmatpush1.bf16.msra.mxu1 %v6763_v26 }
 0x2b2   : > { %10004 = vst [vmem:[#allocation44_spill] sm:$0xff] %v8442_v35  ;;  %1892 = vmatprep.subr.bf16.mxu1 %v6764_v63  ;;  %v1349_v63 = vld [vmem:[#allocation2 + $0x20] sm:$0xfc] }
 0x2b3   : > { %3481 = vrot.lane.b32.xlu1 %v3470_v34, %s7338_s12  ;;  %v8462_v34 = vsel %vm419_vm2, %v7950_v38, %v7952_v25 }
 0x2b5   : > { %v8447_v56 = vpop.permute.xlu0 %1226  ;;  %v8449_v21 = vpop.permute.xlu1 %2906  ;;  %1893 = vmatpush1.bf16.msra.mxu1 %v6766_v62  ;;  %v1019_v62 = vadd.f32 %v7958_v44, %v956_v53  ;;  %v6773_v53 = vld [vmem:[#allocation4 + $0x14] ss:$8 sps:$4 sm:$0xff]  }
 0x2b6   : > { %10005 = vst [vmem:[#allocation45_spill] sm:$0xff] %v8449_v21  ;;  %1894 = vmatprep.subr.bf16.mxu1 %v6767_v33  ;;  %v958_v33 = vmul.f32 %v7188_v13, %v7952_v25  ;;  %v7189_v21 = vld [vmem:[#allocation2 + $0x8] sm:$0xc0]  ;;  %v1007_v13 = vsel %vm419_vm2, %v7958_v44, %v7960_v27  ;;  %v8500_v44 = vmul.f32 %v8138_v14, %v8201_v51 }
 0x2b7   : > { %3526 = vrot.lane.b32.xlu1 %v3523_v28, %s7336_s13  ;;  %v1352_v28 = vld [vmem:[#allocation2 + $0x60] sm:$0x3]  ;;  %v1112_v61 = vadd.f32 %v7962_v45, %v1019_v62  ;;  %v1098_v51 = vsel %vm1096_vm9, %v8259_v31, %v7964_v46  ;;  %v8522_v62 = vmul.f32 %v7956_v43, %v7993_v22  ;;  %v960_v46 = vmul.f32 %v8462_v34, %v7990_v60 }
 0x2b8   : > { %v1390_v0 = vmul.f32 %v8140_v6, %v1352_v28  ;;  %v1149_v28 = vsel %vm419_vm2, %v7954_v39, %v7956_v43  ;;  %v1021_v32 = vadd.f32 %v7960_v27, %v958_v33  ;;  %v8528_v33 = vmul.f32 %v1380_v42, %v8024_v52 }
 0x2b9   : > { %v8452_v7 = vpop.permute.xlu0 %1309  ;;  %v8454_v47 = vpop.permute.xlu1 %2992  ;;  %1895 = vmatpush1.bf16.msra.mxu1 %v6769_v37  ;;  %v8485_v37 = vmul.f32 %v8140_v6, %v1349_v63  ;;  %v924_v6 = vld [vmem:[#allocation2 + $0x40] sm:$0x3f]  ;;  %v6775_v63 = vld [vmem:[#allocation4 + $0x10] ss:$8 sps:$4 sm:$0xff]   ;;  %v8541_v52 = vmul.f32 %v8138_v14, %v8060_v15 }
 0x2ba   : > { %10006 = vst [vmem:[#allocation46_spill] sm:$0xff] %v8454_v47  ;;  %v6772_v47 = vld [vmem:[#allocation4 + $0x20] ss:$8 sps:$4 sm:$0xff]   ;;  %1896 = vmatprep.subr.bf16.mxu1 %v6770_v24  ;;  %v8496_v24 = vmul.f32 %v1380_v42, %v8136_v8  ;;  %v1412_v39 = vrot.slane %v1390_v0, 4  ;;  %v1097_v8 = vsel %vm1096_vm9, %v7962_v45, %v8259_v31  ;;  %v962_v0 = vmul.f32 %v7950_v38, %v924_v6  ;;  %v6779_v45 = vld [vmem:[#allocation4 + $0xf4] ss:$8 sps:$4 sm:$0xff]  }
 0x2bb   : > { %v1183_v31 = vadd.f32 %v8492_v57, %v1112_v61 }
 0x2bc   : > { %v8532_v38 = vsel %vm1402_vm7, %v1406_v55, %v1412_v39  ;;  %v961_v39 = vmul.f32 %v7952_v25, %v7993_v22  ;;  %v6781_v22 = vld [vmem:[#allocation4 + $0xf0] ss:$8 sps:$4 sm:$0xff]  }
 0x2bd   : > { %v8457_v19 = vpop.permute.xlu0 %2908  ;;  %v8464_v26 = vpop.permute.xlu1 %1005  ;;  %1897 = vmatpush1.bf16.msra.mxu1 %v6772_v47  ;;  %v1114_v47 = vadd.f32 %v1098_v51, %v1021_v32  ;;  %v10009_v32 = vrot.slane %v8485_v37, 4  ;;  %v964_v51 = vmul.f32 %v7952_v25, %v8126_v23  ;;  %v1236_v25 = vsel %vm419_vm2, %v8396_v18, %v8447_v56 }
 0x2be   : > { %10007 = vst [vmem:[#allocation47_spill] sm:$0xff] %v8457_v19  ;;  %v957_v19 = vmul.f32 %v7189_v21, %v8462_v34  ;;  %1898 = vmatprep.subr.bf16.mxu1 %v6773_v53  ;;  %v6778_v53 = vld [vmem:[#allocation4] ss:$8 sps:$4 sm:$0xff]  }
 0x2c0   : > { %v1020_v12 = vadd.f32 %v1007_v13, %v957_v19  ;;  %v8513_v19 = vmul.f32 %v1149_v28, %v7990_v60  ;;  %v963_v60 = vmul.f32 %v8462_v34, %v8072_v4  ;;  %v1008_v4 = vsel %vm419_vm2, %v8357_v11, %v8385_v3 }
 0x2c1   : > { %v8479_v58 = vpop.permute.xlu0 %1313  ;;  %v8487_v21 = vpop.permute.xlu1 %1092  ;;  %1899 = vmatpush1.bf16.msra.mxu1 %v6775_v63  ;;  %v8548_v63 = vsel %vm1402_vm7, %v10009_v32, %v1406_v55  ;;  %v8563_v55 = vmul.f32 %v7956_v43, %v8009_v16  ;;  %v1025_v34 = vadd.f32 %v8433_v49, %v962_v0  ;;  %v6782_v43 = vld [vmem:[#allocation4 + $0xe4] ss:$8 sps:$4 sm:$0xff]   ;;  %v8584_v11 = vmul.f32 %v8138_v14, %v8009_v16  ;;  %v6784_v16 = vld [vmem:[#allocation4 + $0xe0] ss:$8 sps:$4 sm:$0xff]  }
 0x2c2   : > { %v1113_v13 = vadd.f32 %v1097_v8, %v1020_v12  ;;  %1900 = vmatprep.subr.bf16.mxu1 %v6776_v54  ;;  %v1166_v61 = vrot.slane %v8513_v19, 2  ;;  %v9946_v54 = vrot.slane %v8522_v62, 2  ;;  %v8556_v8 = vmul.f32 %v1149_v28, %v8002_v17 }
 0x2c3   : > { %v8566_v19 = vmul.f32 %v1380_v42, %v8002_v17  ;;  %v1248_v17 = vadd.f32 %v8396_v18, %v1183_v31  ;;  %v1405_v28 = vrot.slane %v8541_v52, 4  ;;  %v1118_v0 = vadd.f32 %v8440_v1, %v1025_v34 }
 0x2c4   : > { %v1184_v42 = vadd.f32 %v1166_v61, %v1113_v13  ;;  %v1170_v18 = vrot.slane %v8556_v8, 2  ;;  %v1023_v31 = vadd.f32 %v1008_v4, %v960_v46  ;;  %v1024_v13 = vadd.f32 %v8385_v3, %v961_v39  ;;  %v6785_v46 = vld [vmem:[#allocation4 + $0xd4] ss:$8 sps:$4 sm:$0xff]   ;;  %v6794_v8 = vld [vmem:[#allocation4 + $0xa4] ss:$8 sps:$4 sm:$0xff]  }
 0x2c5   : > { %v8503_v35 = vpop.permute.xlu0 %1480  ;;  %v8515_v27 = vpop.permute.xlu1 %1232  ;;  %1901 = vmatpush1.bf16.msra.mxu1 %v6778_v53  ;;  %v1185_v53 = vadd.f32 %v9946_v54, %v1114_v47  ;;  %v1340_v52 = vadd.f32 %v8408_v10, %v1248_v17  ;;  %v1100_v14 = vsel %vm1096_vm9, %v8383_v5, %v7966_v48  ;;  %v1186_v47 = vadd.f32 %v8492_v57, %v1115_v59 }
 0x2c6   : > { %1902 = vmatprep.subr.bf16.mxu1 %v6779_v45  ;;  %v1325_v45 = vsel %vm1096_vm9, %v8408_v10, %v8452_v7  ;;  %v1249_v32 = vadd.f32 %v1236_v25, %v1184_v42  ;;  %v1172_v34 = vrot.slane %v8563_v55, 2  ;;  %v1408_v15 = vrot.slane %v8566_v19, 4 }
 0x2c7   : > { %v1099_v3 = vsel %vm1096_vm9, %v8359_v36, %v8383_v5  ;;  %v1326_v10 = vsel %vm1096_vm9, %v8452_v7, %v8272_v29  ;;  %v1250_v55 = vadd.f32 %v8447_v56, %v1185_v53  ;;  %v1009_v19 = vsel %vm419_vm2, %v8433_v49, %v8464_v26  ;;  %v6787_v7 = vld [vmem:[#allocation4 + $0xd0] ss:$8 sps:$4 sm:$0xff]  }
 0x2c8   : > { %v1341_v39 = vadd.f32 %v1325_v45, %v1249_v32  ;;  %v1189_v59 = vadd.f32 %v8492_v57, %v1118_v0  ;;  %v1116_v25 = vadd.f32 %v1099_v3, %v1023_v31  ;;  %v10010_v36 = vrot.slane %v8485_v37, 4  ;;  %v6788_v37 = vld [vmem:[#allocation4 + $0xc4] ss:$8 sps:$4 sm:$0xff]  }
 0x2c9   : > { %v8534_v6 = vpop.permute.xlu0 %1484  ;;  %v8543_v12 = vpop.permute.xlu1 %1319  ;;  %1903 = vmatpush2.bf16.msra.mxu1 %v6781_v22  ;;  %v1410_v22 = vrot.slane %v8584_v11, 4  ;;  %v1171_v29 = vsel %vm630_vm1, %v1166_v61, %v1170_v18  ;;  %v1342_v17 = vadd.f32 %v1326_v10, %v1250_v55  ;;  %v1101_v56 = vsel %vm1096_vm9, %v8440_v1, %v8487_v21  ;;  %v6791_v55 = vld [vmem:[#allocation4 + $0xb4] ss:$8 sps:$4 sm:$0xff]  }
 0x2ca   : > { %1904 = vmatprep.subr.bf16.mxu1 %v6782_v43  ;;  %v1117_v43 = vadd.f32 %v1100_v14, %v1024_v13  ;;  %v1427_v5 = vadd.f32 %v10010_v36, %v1340_v52  ;;  %v1102_v57 = vsel %vm1096_vm9, %v8487_v21, %v7968_v50  ;;  %v1254_v49 = vadd.f32 %v8515_v27, %v1189_v59  ;;  %v6797_v11 = vld [vmem:[#allocation4 + $0x94] ss:$8 sps:$4 sm:$0xff]  }
 0x2cb   : > { %v10011_v0 = vrot.slane %v8528_v33, 4  ;;  %v1026_v61 = vadd.f32 %v1009_v19, %v963_v60  ;;  %v1027_v45 = vadd.f32 %v8464_v26, %v964_v51  ;;  %v10012_v52 = vrot.slane %v8522_v62, 2  ;;  %v6790_v62 = vld [vmem:[#allocation4 + $0xc0] ss:$8 sps:$4 sm:$0xff]  }
 0x2cc   : > { %v1346_v1 = vadd.f32 %v8543_v12, %v1254_v49  ;;  %v1411_v60 = vsel %vm1402_vm7, %v1405_v28, %v1410_v22  ;;  %v10014_v14 = vrot.slane %v8496_v24, 4  ;;  %v1488_v33 = vsel %vm419_vm2, %v8394_v20, %v8435_v9 }
 0x2cd   : > { %v8576_v23 = vpop.permute.xlu0 %1584  ;;  %v8580_v2 = vpop.permute.xlu1 %2994  ;;  %1905 = vmatpush2.bf16.msra.mxu1 %v6784_v16  ;;  %v1428_v53 = vadd.f32 %v10011_v0, %v1341_v39  ;;  %v1173_v50 = vsel %vm630_vm1, %v10012_v52, %v1172_v34  ;;  %v10013_v21 = vmov %v10011_v0  ;;  %v1119_v16 = vadd.f32 %v1101_v56, %v1026_v61 }
 0x2ce   : > { %1906 = vmatprep.subr.bf16.mxu1 %v6785_v46  ;;  %v1409_v32 = vsel %vm1402_vm7, %v10013_v21, %v1408_v15  ;;  %v1120_v26 = vadd.f32 %v1102_v57, %v1027_v45  ;;  %v1188_v51 = vadd.f32 %v1173_v50, %v1117_v43  ;;  %v1500_v46 = vadd.f32 %v8394_v20, %v1427_v5  ;;  %v6796_v45 = vld [vmem:[#allocation4 + $0xa0] ss:$8 sps:$4 sm:$0xff]  }
 0x2cf   : > { %v1429_v3 = vadd.f32 %v1405_v28, %v1342_v17  ;;  %v1187_v10 = vadd.f32 %v1171_v29, %v1116_v25  ;;  %v1501_v19 = vadd.f32 %v1488_v33, %v1428_v53  ;;  %v1433_v43 = vadd.f32 %v8532_v38, %v1346_v1  ;;  %v10020_v33 = vld [vmem:[#allocation21_spill] sm:$0xff] }
 0x2d0   : > { %v1190_v25 = vadd.f32 %v1170_v18, %v1119_v16  ;;  %v1191_v5 = vadd.f32 %v1172_v34, %v1120_v26 }
 0x2d1   : > { %v8600_v54 = vpop.permute.xlu0 %1234  ;;  %v1229_v48 = vpop.permute.xlu1 %1228  ;;  %1907 = vmatpush2.bf16.msra.mxu1 %v6787_v7  ;;  %v1502_v38 = vadd.f32 %v8435_v9, %v1429_v3  ;;  %v10015_v9 = vld [vmem:[#allocation44_spill] sm:$0xff] }
 0x2d2   : > { %v1251_v4 = vadd.f32 %v1229_v48, %v1186_v47  ;;  %v8646_v47 = vsel %vm1402_vm7, %v1408_v15, %v10014_v14  ;;  %1908 = vmatprep.subr.bf16.mxu1 %v6788_v37  ;;  %v1238_v36 = vsel %vm419_vm2, %v8515_v27, %v8600_v54  ;;  %v1256_v34 = vadd.f32 %v8600_v54, %v1191_v5  ;;  %v10021_v5 = vld [vmem:[#allocation27_spill] sm:$0xff] }
 0x2d3   : > { %v1255_v18 = vadd.f32 %v1238_v36, %v1190_v25  ;;  %v1591_v49 = vsel %vm1096_vm9, %v10015_v9, %v8235_v40 }
 0x2d4   : > { %v1343_v31 = vadd.f32 %v8479_v58, %v1251_v4  ;;  %v1607_v52 = vadd.f32 %v1591_v49, %v1502_v38  ;;  %v6805_v49 = vld [vmem:[#allocation4 + $0x274] ss:$8 sps:$4 sm:$0xff]  }
 0x2d5   : > { %v1322_v42 = vpop.permute.xlu0 %1321  ;;  %v8631_v13 = vpop.permute.xlu1 %1578  ;;  %1909 = vmatpush2.bf16.msra.mxu1 %v6790_v62 }
 0x2d6   : > { %v1430_v59 = vadd.f32 %v8548_v63, %v1343_v31  ;;  %v1329_v7 = vsel %vm1096_vm9, %v8543_v12, %v1322_v42  ;;  %v1330_v27 = vsel %vm1096_vm9, %v1322_v42, %v8299_v30  ;;  %1910 = vmatprep.subr.bf16.mxu1 %v6791_v55  ;;  %v1506_v12 = vadd.f32 %v8534_v6, %v1433_v43  ;;  %v10017_v31 = vld [vmem:[#allocation41_spill] sm:$0xff] }
 0x2d7   : > { %v10016_v30 = vrot.slane %v8500_v44, 4  ;;  %v1347_v0 = vadd.f32 %v1329_v7, %v1255_v18  ;;  %v1348_v53 = vadd.f32 %v1330_v27, %v1256_v34  ;;  %v1605_v1 = vadd.f32 %v10017_v31, %v1500_v46  ;;  %v10019_v46 = vld [vmem:[#allocation20_spill] sm:$0xff]  ;;  %v6802_v27 = vld [vmem:[#allocation4 + $0x80] ss:$8 sps:$4 sm:$0xff]  }
 0x2d8   : > { %v1590_v40 = vsel %vm1096_vm9, %v10017_v31, %v10015_v9  ;;  %v1611_v26 = vadd.f32 %v8576_v23, %v1506_v12  ;;  %v1627_v3 = vsel %vm419_vm2, %v10020_v33, %v10019_v46  ;;  %v6799_v55 = vld [vmem:[#allocation4 + $0x90] ss:$8 sps:$4 sm:$0xff]  }
 0x2d9   : > { %v1231_v39 = vpop.permute.xlu0 %1230  ;;  %v1316_v24 = vpop.permute.xlu1 %1315  ;;  %v1417_v42 = vsel %vm1402_vm7, %v1410_v22, %v10016_v30  ;;  %v1606_v22 = vadd.f32 %v1590_v40, %v1501_v19 }
 0x2da   : > { %v1237_v15 = vsel %vm419_vm2, %v1229_v48, %v1231_v39  ;;  %v1253_v4 = vadd.f32 %v1231_v39, %v1188_v51  ;;  %v1328_v20 = vsel %vm1096_vm9, %v1316_v24, %v8249_v41  ;;  %v1327_v63 = vsel %vm1096_vm9, %v8479_v58, %v1316_v24  ;;  %v6793_v48 = vld [vmem:[#allocation4 + $0xb0] ss:$8 sps:$4 sm:$0xff]  }
 0x2db   : > { %v1252_v28 = vadd.f32 %v1237_v15, %v1187_v10  ;;  %v1503_v58 = vadd.f32 %v8503_v35, %v1430_v59  ;;  %1911 = vmatpush2.bf16.msra.mxu1 %v6793_v48  ;;  %v1434_v10 = vadd.f32 %v8646_v47, %v1347_v0  ;;  %v1435_v39 = vadd.f32 %v1417_v42, %v1348_v53 }
 0x2dc   : > { %v1345_v29 = vadd.f32 %v1328_v20, %v1253_v4  ;;  %1912 = vmatprep.subr.bf16.mxu1 %v6794_v8  ;;  %v1633_v24 = vadd.f32 %v10019_v46, %v1607_v52  ;;  %v1632_v20 = vadd.f32 %v1627_v3, %v1606_v22  ;;  %v1631_v47 = vadd.f32 %v10020_v33, %v1605_v1 }
 0x2dd   : > { %v1344_v41 = vadd.f32 %v1327_v63, %v1252_v28  ;;  %v8669_v17 = vpop.permute.xlu0 %3278  ;;  %v1483_v56 = vpop.permute.xlu1 %1482  ;;  %v1608_v21 = vadd.f32 %v8631_v13, %v1503_v58  ;;  %v1637_v28 = vadd.f32 %v10020_v33, %v1611_v26 }
 0x2de   : > { %v1432_v57 = vadd.f32 %v1411_v60, %v1345_v29  ;;  %v1489_v54 = vsel %vm419_vm2, %v8503_v35, %v1483_v56  ;;  %v10018_v60 = vld [vmem:[#allocation31_spill] sm:$0xff]  ;;  %v1642_v8 = vmax.f32 %v1633_v24, 0.0 }
 0x2df   : > { %v1431_v37 = vadd.f32 %v1409_v32, %v1344_v41  ;;  %1913 = vmatpush2.bf16.msra.mxu1 %v6796_v45  ;;  %v1634_v15 = vadd.f32 %v10020_v33, %v1608_v21  ;;  %v1646_v9 = vmax.f32 %v1637_v28, 0.0  ;;  %v2821_v33 = vld [vmem:[#allocation2] sm:$0xfc] }
 0x2e0   : > { %v1505_v61 = vadd.f32 %v1483_v56, %v1432_v57  ;;  %1914 = vmatprep.subr.bf16.mxu1 %v6797_v11  ;;  %v1640_v57 = vmax.f32 %v1631_v47, 0.0  ;;  %v7191_v47 = vld [vmem:[#allocation2 + $0x10] sm:$0xfc] }
 0x2e1   : > { %v1504_v44 = vadd.f32 %v1489_v54, %v1431_v37  ;;  %v1581_v50 = vpop.permute.xlu0 %1580  ;;  %v1487_v32 = vpop.permute.xlu1 %1486  ;;  %v1643_v18 = vmax.f32 %v1634_v15, 0.0  ;;  %v1685_v31 = vpack.c.bf16 %v1646_v9, %v1646_v9  ;;  %v10026_v15 = vld [vmem:[#allocation23_spill] sm:$0xff] }
 0x2e2   : > { %v1592_v35 = vsel %vm1096_vm9, %v8631_v13, %v1581_v50  ;;  %v1593_v16 = vsel %vm1096_vm9, %v1581_v50, %v10018_v60  ;;  %v1490_v51 = vsel %vm419_vm2, %v8534_v6, %v1487_v32  ;;  %v6800_v6 = vld [vmem:[#allocation4 + $0x84] ss:$8 sps:$4 sm:$0xff]   ;;  %v1508_v43 = vadd.f32 %v1487_v32, %v1435_v39  ;;  %v10023_v39 = vld [vmem:[#allocation25_spill] sm:$0xff] }
 0x2e3   : > { %v1609_v14 = vadd.f32 %v1592_v35, %v1504_v44  ;;  %v1610_v62 = vadd.f32 %v1593_v16, %v1505_v61  ;;  %v1507_v4 = vadd.f32 %v1490_v51, %v1434_v10  ;;  %1915 = vmatpush2.bf16.msra.mxu1 %v6799_v55  ;;  %v1682_v53 = vpack.c.bf16 %v1643_v18, %v1640_v57  ;;  %v10022_v10 = vld [vmem:[#allocation24_spill] sm:$0xff] }
 0x2e4   : > { %1916 = vmatprep.subr.bf16.mxu1 %v6800_v6  ;;  %v1707_v35 = vrot.slane %v1685_v31, 3  ;;  %v3050_v55 = vsel %vm1055_vm6, %v10023_v39, %v10022_v10  ;;  %v10025_v6 = vld [vmem:[#allocation22_spill] sm:$0xff]  ;;  %v8776_v57 = vld [vmem:[#allocation2 + $0x50] sm:$0xff] }
 0x2e5   : > { %v1635_v13 = vadd.f32 %v1627_v3, %v1609_v14  ;;  %v1636_v19 = vadd.f32 %v10019_v46, %v1610_v62  ;;  %v8701_v59 = vpop.permute.xlu0 %3126  ;;  %v1587_v36 = vpop.permute.xlu1 %1586  ;;  %v1706_v32 = vrot.slane %v1682_v53, 3  ;;  %v2861_v28 = vmul.f32 %v7191_v47, %v10025_v6  ;;  %v10029_v53 = vld [vmem:[#allocation42_spill] sm:$0xff] }
 0x2e6   : > { %v1594_v25 = vsel %vm1096_vm9, %v8576_v23, %v1587_v36  ;;  %v1595_v63 = vsel %vm1096_vm9, %v1587_v36, %v10021_v5  ;;  %v1641_v23 = vmax.f32 %v1632_v20, 0.0  ;;  %v7190_v36 = vld [vmem:[#allocation2 + $0x8] sm:$0xfc]  ;;  %v8780_v9 = vmul.f32 %v8776_v57, %v10022_v10 }
 0x2e7   : > { %v1644_v29 = vmax.f32 %v1635_v13, 0.0  ;;  %v1645_v48 = vmax.f32 %v1636_v19, 0.0  ;;  %v1612_v38 = vadd.f32 %v1594_v25, %v1507_v4  ;;  %v1613_v7 = vadd.f32 %v1595_v63, %v1508_v43  ;;  %1917 = vmatpush2.bf16.msra.mxu1 %v6802_v27  ;;  %v10024_v19 = vld [vmem:[#allocation48_spill] sm:$0xff]  ;;  %v7192_v25 = vld [vmem:[#allocation2 + $0x28] sm:$0xff] }
 0x2e8   : > { %3789 = vmatprep.subr.bf16.mxu1 %v6805_v49  ;;  %v1708_v26 = vsel %vm1705_vm10, %v1706_v32, %v1707_v35  ;;  %v3054_v24 = vmul.f32 %v10024_v19, %v10023_v39  ;;  %v2855_v4 = vsel %vm1055_vm6, %v10026_v15, %v10025_v6  ;;  %v2859_v43 = vmul.f32 %v10026_v15, %v2821_v33  ;;  %v10027_v63 = vld [vmem:[#allocation28_spill] sm:$0xff]  ;;  %v10031_v35 = vld [vmem:[#allocation30_spill] sm:$0xff] }
 0x2e9   : > { %v8711_v41 = vpop.permute.xlu0 %3130  ;;  %v1638_v34 = vadd.f32 %v1627_v3, %v1612_v38  ;;  %v1639_v58 = vadd.f32 %v10019_v46, %v1613_v7  ;;  %v8714_v56 = vpop.permute.xlu1 %3280  ;;  %v1684_v30 = vpack.c.bf16 %v1645_v48, %v1642_v8  ;;  %v1683_v42 = vpack.c.bf16 %v1644_v29, %v1641_v23  ;;  %v10028_v29 = vld [vmem:[#allocation26_spill] sm:$0xff]  ;;  %v8763_v7 = vld [vmem:[#allocation2 + $0x30] sm:$0xff]  ;;  %v8767_v8 = vld [vmem:[#allocation2 + $0x48] sm:$0xff] }
 0x2ea   : > { %v2860_v20 = vmul.f32 %v7190_v36, %v2855_v4  ;;  %v8756_v5 = vmul.f32 %v7192_v25, %v3050_v55  ;;  %v2910_v48 = vsel %vm1055_vm6, %v10028_v29, %v10027_v63  ;;  %v3056_v27 = vmul.f32 %v8763_v7, %v10022_v10  ;;  %v10033_v10 = vld [vmem:[#allocation37_spill] sm:$0xff] }
 0x2eb   : > { %v1647_v12 = vmax.f32 %v1638_v34, 0.0  ;;  %v1648_v37 = vmax.f32 %v1639_v58, 0.0  ;;  %v1712_v1 = vrot.slane %v1684_v30, 3  ;;  %v1709_v52 = vrot.slane %v1683_v42, 3  ;;  %v2827_v34 = vld [vmem:[#allocation2 + $0x40] sm:$0x3] }
 0x2ec   : > { %v8770_v18 = vmul.f32 %v8767_v8, %v3050_v55  ;;  %v8774_v23 = vrot.slane %v3054_v24, 6  ;;  %v2922_v49 = vadd.f32 %v10028_v29, %v2859_v43  ;;  %v2862_v30 = vmul.f32 %v10024_v19, %v10026_v15  ;;  %v7196_v55 = vld [vmem:[#allocation2 + $0x50] sm:$0x3]  ;;  %v10035_v43 = vld [vmem:[#allocation38_spill] sm:$0xff] }
 0x2ed   : > { %v8716_v0 = vpop.permute.xlu0 %3134  ;;  %v1686_v54 = vpack.c.bf16 %v1647_v12, %v1647_v12  ;;  %v1687_v61 = vpack.c.bf16 %v1648_v37, %v1648_v37  ;;  %v8718_v45 = vpop.permute.xlu1 %3128  ;;  %v2923_v12 = vadd.f32 %v2910_v48, %v2860_v20  ;;  %v2924_v37 = vadd.f32 %v10027_v63, %v2861_v28  ;;  %v10036_v28 = vld [vmem:[#allocation47_spill] sm:$0xff] }
 0x2ee   : > { %v3068_v42 = vrot.slane %v8756_v5, 6  ;;  %v2865_v31 = vmul.f32 %v10026_v15, %v2827_v34  ;;  %v3074_v32 = vrot.slane %v8780_v9, 6  ;;  %v2867_v24 = vmul.f32 %v7196_v55, %v10025_v6  ;;  %v10034_v15 = vld [vmem:[#allocation43_spill] sm:$0xff] }
 0x2ef   : > { %v1713_v40 = vrot.slane %v1687_v61, 3  ;;  %v1710_v44 = vrot.slane %v1686_v54, 3  ;;  %v10030_v54 = vld [vmem:[#allocation39_spill] sm:$0xff]  ;;  %v3000_v36 = vsel %vm1096_vm9, %v10035_v43, %v10034_v15  ;;  %v3015_v63 = vadd.f32 %v10031_v35, %v2924_v37  ;;  %v10040_v37 = vld [vmem:[#allocation33_spill] sm:$0xff] }
 0x2f0   : > { %v2911_v61 = vsel %vm1055_vm6, %v10030_v54, %v10029_v53  ;;  %v2925_v29 = vadd.f32 %v10030_v54, %v2862_v30  ;;  %v7197_v48 = vld [vmem:[#allocation2 + $0x48] sm:$0x3] }
 0x2f1   : > { %v8720_v50 = vpop.permute.xlu0 %3211  ;;  %v8722_v11 = vpop.permute.xlu1 %3136  ;;  %v1714_v22 = vsel %vm1705_vm10, %v1712_v1, %v1713_v40  ;;  %v1711_v21 = vsel %vm1705_vm10, %v1709_v52, %v1710_v44  ;;  %v3069_v40 = vrot.slane %v3056_v27, 6  ;;  %v3072_v52 = vrot.slane %v8770_v18, 6 }
 0x2f2   : > { %1719 = vrot.lane.b32.xlu1 %v1714_v22, %s7336_s13  ;;  %1717 = vrot.lane.b32.xlu0 %v1711_v21, %s7336_s13  ;;  %v2863_v44 = vmul.f32 %v7192_v25, %v2855_v4  ;;  %v2864_v22 = vmul.f32 %v8763_v7, %v10025_v6  ;;  %v10037_v25 = vld [vmem:[#allocation45_spill] sm:$0xff]  ;;  %v2866_v27 = vmul.f32 %v7197_v48, %v2855_v4 }
 0x2f3   : > { %v2912_v5 = vsel %vm1055_vm6, %v10037_v25, %v10036_v28  ;;  %v2930_v18 = vadd.f32 %v10036_v28, %v2867_v24  ;;  %v3001_v4 = vsel %vm1096_vm9, %v10034_v15, %v10040_v37  ;;  %v3016_v30 = vadd.f32 %v3000_v36, %v2925_v29  ;;  %v10041_v29 = vld [vmem:[#allocation40_spill] sm:$0xff] }
 0x2f4   : > { %v2926_v20 = vadd.f32 %v2911_v61, %v2863_v44  ;;  %v2927_v47 = vadd.f32 %v10029_v53, %v2864_v22  ;;  %v10038_v61 = vld [vmem:[#allocation46_spill] sm:$0xff]  ;;  %v10039_v44 = vld [vmem:[#allocation36_spill] sm:$0xff]  ;;  %v2928_v54 = vadd.f32 %v10037_v25, %v2865_v31  ;;  %v3075_v55 = vsel %vm3066_vm8, %v3069_v40, %v3074_v32 }
 0x2f5   : > { %v8728_v60 = vpop.permute.xlu0 %3223  ;;  %v8730_v16 = vpop.permute.xlu1 %3213  ;;  %v3002_v53 = vsel %vm1096_vm9, %v10038_v61, %v8580_v2  ;;  %v3003_v22 = vsel %vm1096_vm9, %v8580_v2, %v10039_v44  ;;  %v3021_v2 = vadd.f32 %v10039_v44, %v2930_v18  ;;  %v3282_v15 = vsel %vm1055_vm6, %v8669_v17, %v8714_v56  ;;  %v10042_v61 = vld [vmem:[#allocation32_spill] sm:$0xff] }
 0x2f6   : > { %1715 = vrot.lane.b32.xlu0 %v1708_v26, %s7336_s13  ;;  %v10032_v26 = vld [vmem:[#allocation35_spill] sm:$0xff]  ;;  %v3019_v24 = vadd.f32 %v3002_v53, %v2928_v54  ;;  %v3288_v48 = vmul.f32 %v8714_v56, %v10041_v29  ;;  %v3287_v53 = vmul.f32 %v3282_v15, %v10042_v61  ;;  %v3290_v44 = vmul.f32 %v8767_v8, %v3282_v15 }
 0x2f7   : > { %v2999_v33 = vsel %vm1096_vm9, %v10032_v26, %v10031_v35  ;;  %v2998_v39 = vsel %vm1096_vm9, %v10033_v10, %v10032_v26  ;;  %v2929_v35 = vadd.f32 %v2912_v5, %v2866_v27  ;;  %v3018_v10 = vadd.f32 %v10040_v37, %v2927_v47 }
 0x2f8   : > { %v3014_v34 = vadd.f32 %v2999_v33, %v2923_v12  ;;  %v3013_v9 = vadd.f32 %v2998_v39, %v2922_v49  ;;  %v3251_v12 = vld [vmem:[#allocation2 + $0x20] sm:$0xc0]  ;;  %v3254_v49 = vld [vmem:[#allocation2 + $0x60] sm:$0x3f]  ;;  %v3017_v33 = vadd.f32 %v3001_v4, %v2926_v20  ;;  %v3073_v39 = vsel %vm3066_vm8, %v3068_v42, %v3072_v52 }
 0x2f9   : > { %v8734_v51 = vpop.permute.xlu0 %3209  ;;  %v8736_v14 = vpop.permute.xlu1 %3219  ;;  %v3020_v43 = vadd.f32 %v3003_v22, %v2929_v35  ;;  %v3286_v31 = vmul.f32 %v8669_v17, %v3251_v12  ;;  %v3289_v20 = vmul.f32 %v10024_v19, %v8669_v17  ;;  %v3087_v47 = vadd.f32 %v3069_v40, %v3015_v63 }
 0x2fa   : > { %v8843_v28 = vmul.f32 %v8669_v17, %v3254_v49  ;;  %v3085_v5 = vadd.f32 %v8774_v23, %v3013_v9  ;;  %v3088_v27 = vadd.f32 %v8774_v23, %v3016_v30  ;;  %v3086_v18 = vadd.f32 %v3068_v42, %v3014_v34  ;;  %v10043_v30 = vld [vmem:[#allocation29_spill] sm:$0xff] }
 0x2fb   : > { %v3291_v19 = vmul.f32 %v8776_v57, %v8714_v56  ;;  %v3090_v40 = vadd.f32 %v3075_v55, %v3018_v10  ;;  %v3091_v17 = vadd.f32 %v8774_v23, %v3019_v24  ;;  %v3092_v63 = vadd.f32 %v3072_v52, %v3020_v43  ;;  %v10044_v10 = vld [vmem:[#allocation34_spill] sm:$0xff] }
 0x2fc   : > { %v3093_v22 = vadd.f32 %v3074_v32, %v3021_v2  ;;  %v3089_v9 = vadd.f32 %v3073_v39, %v3017_v33  ;;  %v3304_v4 = vrot.slane %v3286_v31, 4  ;;  %v3305_v54 = vrot.slane %v3289_v20, 4 }
 0x2fd   : > { %v8738_v62 = vpop.permute.xlu0 %3221  ;;  %v8740_v46 = vpop.permute.xlu1 %3225  ;;  %v3313_v35 = vrot.slane %v8843_v28, 4  ;;  %v3294_v42 = vmul.f32 %v8714_v56, %v10043_v30  ;;  %v3150_v8 = vadd.f32 %v8701_v59, %v3085_v5  ;;  %v3310_v12 = vrot.slane %v3288_v48, 4 }
 0x2fe   : > { %v3153_v49 = vadd.f32 %v8711_v41, %v3088_v27  ;;  %v3138_v23 = vsel %vm1055_vm6, %v8701_v59, %v8718_v45  ;;  %v3307_v52 = vrot.slane %v3287_v53, 4  ;;  %v3308_v32 = vrot.slane %v3290_v44, 4 }
 0x2ff   : > { %v3311_v33 = vrot.slane %v3291_v19, 4  ;;  %v3293_v39 = vmul.f32 %v3282_v15, %v10044_v10  ;;  %v3152_v55 = vadd.f32 %v8718_v45, %v3087_v47  ;;  %v3140_v56 = vsel %vm1055_vm6, %v8716_v0, %v8722_v11 }
 0x300   : > { %v3158_v2 = vadd.f32 %v8722_v11, %v3093_v22  ;;  %v3228_v24 = vsel %vm1096_vm9, %v8720_v50, %v8730_v16  ;;  %v3151_v43 = vadd.f32 %v3138_v23, %v3086_v18  ;;  %v3156_v59 = vadd.f32 %v8716_v0, %v3091_v17 }
 0x301   : > { %v8742_v3 = vpop.permute.xlu0 %3387  ;;  %v8747_v13 = vpop.permute.xlu1 %3215  ;;  %v3227_v31 = vsel %vm1096_vm9, %v8734_v51, %v8720_v50  ;;  %v3317_v15 = vrot.slane %v3294_v42, 4  ;;  %v3232_v47 = vsel %vm1096_vm9, %v8728_v60, %v8740_v46  ;;  %v3231_v28 = vsel %vm1096_vm9, %v8738_v62, %v8728_v60 }
 0x302   : > { %v3250_v11 = vadd.f32 %v8740_v46, %v3158_v2  ;;  %v3157_v5 = vadd.f32 %v3140_v56, %v3092_v63  ;;  %v3243_v29 = vadd.f32 %v3228_v24, %v3151_v43  ;;  %v3244_v50 = vadd.f32 %v8730_v16, %v3152_v55 }
 0x303   : > { %v3315_v51 = vrot.slane %v3293_v39, 4  ;;  %v3306_v48 = vsel %vm1402_vm7, %v3304_v4, %v3305_v54  ;;  %v3242_v27 = vadd.f32 %v3227_v31, %v3150_v8  ;;  %v3314_v18 = vsel %vm1402_vm7, %v3305_v54, %v3313_v35 }
 0x304   : > { %v3309_v61 = vsel %vm1402_vm7, %v3307_v52, %v3308_v32  ;;  %v3249_v46 = vadd.f32 %v3232_v47, %v3157_v5  ;;  %v3248_v53 = vadd.f32 %v3231_v28, %v3156_v59  ;;  %v3312_v60 = vsel %vm1402_vm7, %v3310_v12, %v3311_v33 }
 0x305   : > { %v8761_v38 = vpop.permute.xlu0 %3477  ;;  %v8772_v58 = vpop.permute.xlu1 %3377  ;;  %v3336_v19 = vadd.f32 %v3317_v15, %v3250_v11  ;;  %v3318_v16 = vsel %vm1402_vm7, %v3311_v33, %v3317_v15  ;;  %v3329_v63 = vadd.f32 %v3309_v61, %v3243_v29  ;;  %v3330_v22 = vadd.f32 %v3312_v60, %v3244_v50 }
 0x306   : > { %v3316_v54 = vsel %vm1402_vm7, %v3308_v32, %v3315_v51  ;;  %v3328_v42 = vadd.f32 %v3306_v48, %v3242_v27 }
 0x308   : > { %v3401_v32 = vadd.f32 %v8772_v58, %v3328_v42 }
 0x309   : > { %v8791_v1 = vpop.permute.xlu0 %3483  ;;  %v8796_v21 = vpop.permute.xlu1 %3381 }
 0x30d   : > { %v8816_v6 = vpop.permute.xlu0 %3489  ;;  %v8824_v26 = vpop.permute.xlu1 %3385 }
 0x30e   : > { %v3391_v8 = vsel %vm1055_vm6, %v8824_v26, %v8742_v3 }
 0x311   : > { %v8837_v36 = vpop.permute.xlu0 %3479  ;;  %v8845_v25 = vpop.permute.xlu1 %3487 }
 0x312   : > { %v3496_v43 = vsel %vm1096_vm9, %v8845_v25, %v8816_v6 }
 0x315   : > { %v3218_v37 = vpop.permute.xlu0 %3217  ;;  %v3474_v34 = vpop.permute.xlu1 %3473 }
 0x316   : > { %v3229_v0 = vsel %vm1096_vm9, %v8747_v13, %v3218_v37  ;;  %v3230_v12 = vsel %vm1096_vm9, %v3218_v37, %v8736_v14 }
 0x317   : > { %v3245_v44 = vadd.f32 %v3229_v0, %v3153_v49 }
 0x319   : > { %v3486_v20 = vpop.permute.xlu1 %3485  ;;  %v3380_v45 = vpop.permute.xlu0 %3379  ;;  %v3331_v23 = vadd.f32 %v3314_v18, %v3245_v44 }
 0x31a   : > { %v3495_v37 = vsel %vm1096_vm9, %v3486_v20, %v8845_v25 }
 0x31b   : > { %v3404_v15 = vadd.f32 %v8796_v21, %v3331_v23 }
 0x31d   : > { %v3133_v62 = vpop.permute.xlu1 %3132  ;;  %v3384_v30 = vpop.permute.xlu0 %3383 }
 0x31e   : > { %v3139_v13 = vsel %vm1055_vm6, %v8711_v41, %v3133_v62  ;;  %v3155_v17 = vadd.f32 %v3133_v62, %v3090_v40  ;;  %v3334_v41 = vadd.f32 %v3313_v35, %v3248_v53  ;;  %v3335_v40 = vadd.f32 %v3315_v51, %v3249_v46 }
 0x31f   : > { %v3154_v4 = vadd.f32 %v3139_v13, %v3089_v9  ;;  %v3409_v9 = vadd.f32 %v8742_v3, %v3336_v19  ;;  %v3403_v35 = vadd.f32 %v3380_v45, %v3330_v22  ;;  %v3390_v24 = vsel %vm1055_vm6, %v8796_v21, %v3384_v30 }
 0x320   : > { %v3247_v49 = vadd.f32 %v8736_v14, %v3155_v17  ;;  %v3407_v55 = vadd.f32 %v8824_v26, %v3334_v41  ;;  %v3408_v56 = vadd.f32 %v3391_v8, %v3335_v40  ;;  %v3389_v14 = vsel %vm1055_vm6, %v8772_v58, %v3380_v45 }
 0x321   : > { %v3246_v52 = vadd.f32 %v3230_v12, %v3154_v4  ;;  %v3476_v33 = vpop.permute.xlu1 %3475  ;;  %v3525_v26 = vpop.permute.xlu0 %3524  ;;  %v3514_v11 = vadd.f32 %v8816_v6, %v3409_v9  ;;  %v3402_v28 = vadd.f32 %v3389_v14, %v3329_v63  ;;  %v3508_v5 = vadd.f32 %v8761_v38, %v3403_v35  ;;  %v10045_v12 = vld [vmem:[#allocation16_spill] sm:$0xff] }
 0x322   : > { %v3333_v10 = vadd.f32 %v3318_v16, %v3247_v49  ;;  %v3491_v39 = vsel %vm1096_vm9, %v3474_v34, %v3476_v33  ;;  %v3512_v20 = vadd.f32 %v3495_v37, %v3407_v55  ;;  %v3492_v47 = vsel %vm1096_vm9, %v3476_v33, %v8761_v38 }
 0x323   : > { %v3332_v2 = vadd.f32 %v3316_v54, %v3246_v52  ;;  %v3506_v59 = vadd.f32 %v3491_v39, %v3401_v32  ;;  %v3513_v0 = vadd.f32 %v3496_v43, %v3408_v56  ;;  %v3507_v50 = vadd.f32 %v3492_v47, %v3402_v28  ;;  %v8960_v28 = vld [vmem:[#allocation2 + $0x28] sm:$0xff] }
 0x324   : > { %v3406_v3 = vadd.f32 %v3384_v30, %v3333_v10  ;;  %v3538_v21 = vadd.f32 %v3525_v26, %v3512_v20  ;;  %v6343_v30 = vld [vmem:[%s9894_s5 + $0x18] sm:$0x77]  ;;  %v8933_v10 = vld [vmem:[%s9894_s5 + $0x20] sm:$0x77]  ;;  %v10048_v20 = vld [vmem:[#allocation19_spill] sm:$0xff] }
 0x325   : > { %v3405_v34 = vadd.f32 %v3390_v24, %v3332_v2  ;;  %v3482_v31 = vpop.permute.xlu1 %3481  ;;  %v3532_v51 = vadd.f32 %v3525_v26, %v3506_v59  ;;  %v1966_v49 = vrot.slane %v6343_v30, %v10045_v12  ;;  %v2119_v37 = vrot.slane %v8933_v10, %v10045_v12  ;;  %v10046_v2 = vld [vmem:[#allocation18_spill] sm:$0xff] }
 0x326   : > { %v3493_v58 = vsel %vm1096_vm9, %v8837_v36, %v3482_v31  ;;  %v3494_v45 = vsel %vm1096_vm9, %v3482_v31, %v8791_v1  ;;  %v3511_v29 = vadd.f32 %v8791_v1, %v3406_v3  ;;  %v3547_v17 = vmax.f32 %v3538_v21, 0.0  ;;  %v10047_v24 = vld [vmem:[#allocation14_spill] sm:$0xff]  ;;  %v8970_v21 = vld [vmem:[#allocation2 + $0x30] sm:$0xff] }
 0x327   : > { %v3509_v25 = vadd.f32 %v3493_v58, %v3404_v15  ;;  %v3510_v48 = vadd.f32 %v3494_v45, %v3405_v34  ;;  %v3541_v1 = vmax.f32 %v3532_v51, 0.0  ;;  %v1976_v55 = vrot.slane %v1966_v49, %v10045_v12 }
 0x328   : > { %v3588_v9 = vpack.c.bf16 %v3547_v17, %v3547_v17  ;;  %v1970_v14 = vrot.slane %v6343_v30, %v10046_v2  ;;  %v2003_v3 = vrot.slane %v6343_v30, %v10047_v24  ;;  %v2129_v34 = vrot.slane %v2119_v37, %v10045_v12  ;;  %v9040_v37 = vld [vmem:[%s9894_s5 + $0x28] sm:$0x77] }
 0x329   : > { %v3535_v27 = vadd.f32 %v3525_v26, %v3509_v25  ;;  %v3527_v18 = vpop.permute.xlu1 %3526  ;;  %v2123_v31 = vrot.slane %v8933_v10, %v10046_v2  ;;  %v2007_v47 = vrot.slane %v6343_v30, %v10048_v20  ;;  %v2186_v17 = vrot.slane %v8933_v10, %v10047_v24 }
 0x32a   : > { %v3528_v36 = vsel %vm1055_vm6, %v3525_v26, %v3527_v18  ;;  %v3534_v61 = vadd.f32 %v3527_v18, %v3508_v5  ;;  %v3537_v46 = vadd.f32 %v3527_v18, %v3511_v29  ;;  %v3540_v53 = vadd.f32 %v3527_v18, %v3514_v11  ;;  %v8948_v26 = vld [vmem:[#allocation2 + $0x8] sm:$0xf0]  ;;  %v8958_v11 = vld [vmem:[#allocation2 + $0x10] sm:$0xf0]  ;;  %v8967_v29 = vld [vmem:[#allocation2 + $0x48] sm:$0xf] }
 0x32b   : > { %v3544_v44 = vmax.f32 %v3535_v27, 0.0  ;;  %v3533_v6 = vadd.f32 %v3528_v36, %v3507_v50  ;;  %v3536_v60 = vadd.f32 %v3528_v36, %v3510_v48  ;;  %v3539_v62 = vadd.f32 %v3528_v36, %v3513_v0  ;;  %v10049_v50 = vld [vmem:[#allocation15_spill] sm:$0xff] }
 0x32c   : > { %v3543_v19 = vmax.f32 %v3534_v61, 0.0  ;;  %v3546_v13 = vmax.f32 %v3537_v46, 0.0  ;;  %v3549_v38 = vmax.f32 %v3540_v53, 0.0  ;;  %v3610_v35 = vrot.slane %v3588_v9, 1  ;;  %v8977_v48 = vld [vmem:[%s9894_s5 + $0x48] sm:$0x77] }
 0x32d   : > { %v3542_v16 = vmax.f32 %v3533_v6, 0.0  ;;  %v3545_v63 = vmax.f32 %v3536_v60, 0.0  ;;  %v3548_v22 = vmax.f32 %v3539_v62, 0.0  ;;  %v3585_v41 = vpack.c.bf16 %v3544_v44, %v3541_v1  ;;  %v8983_v61 = vld [vmem:[#allocation2 + $0x50] sm:$0xf]  ;;  %v10050_v53 = vld [vmem:[#allocation17_spill] sm:$0xff] }
 0x32e   : > { %v3587_v4 = vpack.c.bf16 %v3546_v13, %v3543_v19  ;;  %v3590_v54 = vpack.c.bf16 %v3549_v38, %v3549_v38  ;;  %v1980_v59 = vrot.slane %v1970_v14, %v10045_v12  ;;  %v2013_v15 = vrot.slane %v2003_v3, %v10047_v24  ;;  %v9001_v38 = vld [vmem:[%s9894_s5 + $0x50] sm:$0x77]  ;;  %v9049_v3 = vld [vmem:[%s9894_s5 + $0x58] sm:$0x77] }
 0x32f   : > { %v3586_v42 = vpack.c.bf16 %v3545_v63, %v3542_v16  ;;  %v3589_v8 = vpack.c.bf16 %v3548_v22, %v3548_v22  ;;  %v3609_v56 = vrot.slane %v3585_v41, 1  ;;  %v2133_v45 = vrot.slane %v2123_v31, %v10045_v12 }
 0x330   : > { %v3615_v40 = vrot.slane %v3587_v4, 1  ;;  %v3616_v23 = vrot.slane %v3590_v54, 1  ;;  %v2018_v58 = vmul.f32 %v2013_v15, %v8948_v26  ;;  %v2017_v25 = vrot.slane %v2007_v47, %v10047_v24 }
 0x331   : > { %v3612_v52 = vrot.slane %v3586_v42, 1  ;;  %v3613_v33 = vrot.slane %v3589_v8, 1  ;;  %v3611_v43 = vsel %vm518_vm0, %v3609_v56, %v3610_v35  ;;  %v2020_v5 = vmul.f32 %v2013_v15, %v8960_v28  ;;  %v9018_v42 = vld [vmem:[#allocation2 + $0x48] sm:$0xff] }
 0x332   : > { %v3617_v32 = vsel %vm518_vm0, %v3615_v40, %v3616_v23  ;;  %v2019_v0 = vmul.f32 %v2017_v25, %v8958_v11  ;;  %v2069_v51 = vrot.slane %v6343_v30, %v10049_v50  ;;  %v2022_v27 = vmul.f32 %v2013_v15, %v8967_v29 }
 0x333   : > { %3622 = vrot.lane.b32.xlu0 %v3617_v32, %s7337_s30  ;;  %v3614_v39 = vsel %vm518_vm0, %v3612_v52, %v3613_v33  ;;  %v2021_v18 = vmul.f32 %v2017_v25, %v8970_v21  ;;  %v3977_v46 = vrot.slane %v8977_v48, %v10049_v50  ;;  %v2073_v44 = vrot.slane %v6343_v30, %v10050_v53  ;;  %v9030_v33 = vld [vmem:[#allocation2 + $0x50] sm:$0xff] }
 0x334   : > { %3620 = vrot.lane.b32.xlu1 %v3614_v39, %s7337_s30  ;;  %v2079_v36 = vrot.slane %v2069_v51, %v10049_v50  ;;  %v2023_v6 = vmul.f32 %v2017_v25, %v8983_v61  ;;  %v2252_v62 = vrot.slane %v8933_v10, %v10049_v50  ;;  %v3981_v13 = vrot.slane %v8977_v48, %v10050_v53  ;;  %v6803_v25 = vld [vmem:[#allocation4 + $0x270] ss:$8 sps:$4 sm:$0xff]  }
 0x335   : > { %v3987_v60 = vrot.slane %v3977_v46, %v10049_v50  ;;  %v2083_v19 = vrot.slane %v2073_v44, %v10049_v50  ;;  %v4204_v16 = vrot.slane %v9001_v38, %v10049_v50  ;;  %v2256_v22 = vrot.slane %v8933_v10, %v10050_v53  ;;  %v9070_v44 = vld [vmem:[#allocation2 + $0x28] sm:$0xf0] }
 0x336   : > { %v2262_v1 = vrot.slane %v2252_v62, %v10049_v50  ;;  %v3991_v63 = vrot.slane %v3981_v13, %v10049_v50  ;;  %v2196_v4 = vrot.slane %v2186_v17, %v10047_v24  ;;  %v2190_v54 = vrot.slane %v8933_v10, %v10048_v20 }
 0x337   : > { %1983 = vrot.lane.b32.xlu0 %v1976_v55, %s7338_s12  ;;  %v4214_v30 = vrot.slane %v4204_v16, %v10049_v50  ;;  %v2266_v8 = vrot.slane %v2256_v22, %v10049_v50  ;;  %v4208_v49 = vrot.slane %v9001_v38, %v10050_v53  ;;  %v2326_v35 = vrot.slane %v9040_v37, %v10045_v12  ;;  %v9080_v16 = vld [vmem:[#allocation2 + $0x30] sm:$0xf0]  ;;  %v6814_v22 = vld [vmem:[#allocation4 + $0x244] ss:$8 sps:$4 sm:$0xff]  }
 0x338   : > { %3618 = vrot.lane.b32.xlu1 %v3611_v43, %s7337_s30  ;;  %v2201_v41 = vmul.f32 %v2196_v4, %v8960_v28  ;;  %v2203_v40 = vmul.f32 %v2196_v4, %v9018_v42  ;;  %v2200_v23 = vrot.slane %v2190_v54, %v10047_v24  ;;  %v2330_v47 = vrot.slane %v9040_v37, %v10046_v2  ;;  %s6196_s30 = sshll.u32 %s409_s24, 4  ;;  %s9839_s30 = int_to_ptr.vmem [resolvable:$true] %s6196_s30 }
 0x339   : > { %v4218_v52 = vrot.slane %v4208_v49, %v10049_v50  ;;  %v2437_v49 = vrot.slane %v9040_v37, %v10049_v50  ;;  %p7263_p11 = scmp.lt.s32.totalorder %s9839_s30, %s7261_s29 }
 0x33a   : > { %v2209_v9 = vrot.slane %v2201_v41, 4  ;;  %v2211_v32 = vrot.slane %v2203_v40, 4  ;;  %v2202_v10 = vmul.f32 %v2200_v23, %v8970_v21  ;;  %v2204_v39 = vmul.f32 %v2200_v23, %v9030_v33  ;;  %v6817_v41 = vld [vmem:[#allocation4 + $0x234] ss:$8 sps:$4 sm:$0xff]   ;;  %v9092_v40 = vld [vmem:[#allocation2 + $0x70] sm:$0xf] }
 0x33b   : > { %2136 = vrot.lane.b32.xlu0 %v2129_v34, %s7338_s12  ;;  %v2336_v34 = vrot.slane %v2326_v35, %v10045_v12  ;;  %v2340_v51 = vrot.slane %v2330_v47, %v10045_v12  ;;  %v3873_v35 = vrot.slane %v8977_v48, %v10045_v12  ;;  %v6826_v47 = vld [vmem:[#allocation4 + $0x204] ss:$8 sps:$4 sm:$0xff]  }
 0x33c   : > { %1985 = vrot.lane.b32.xlu1 %v1980_v59, %s7338_s12  ;;  %v2212_v55 = vsel %vm1402_vm7, %v2209_v9, %v2211_v32  ;;  %v2210_v56 = vrot.slane %v2202_v10, 4  ;;  %v2213_v14 = vrot.slane %v2204_v39, 4  ;;  %v4456_v59 = vrot.slane %v9049_v3, %v10049_v50  ;;  %v6346_v10 = vld [vmem:[%s9895_s6 + $0x2] sm:$0x3]  ;;  %v6820_v39 = vld [vmem:[#allocation4 + $0x224] ss:$8 sps:$4 sm:$0xff]  }
 0x33e   : > { %v2214_v43 = vsel %vm1402_vm7, %v2210_v56, %v2213_v14 }
 0x33f   : > { %2030 = vrot.lane.b32.xlu0 %v2018_v58, %s7338_s12 }
 0x340   : > { %2138 = vrot.lane.b32.xlu1 %v2133_v45, %s7338_s12  ;;  %v2372_v45 = vrot.slane %v9040_v37, %v10047_v24 }
 0x342   : > { %v2382_v46 = vrot.slane %v2372_v45, %v10047_v24 }
 0x343   : > { %2034 = vrot.lane.b32.xlu0 %v2020_v5, %s7338_s12 }
 0x344   : > { %2032 = vrot.lane.b32.xlu1 %v2019_v0, %s7338_s12  ;;  %v4466_v0 = vrot.slane %v4456_v59, %v10049_v50  ;;  %v2387_v13 = vmul.f32 %v2382_v46, %v9070_v44  ;;  %v2389_v4 = vmul.f32 %v2382_v46, %v9018_v42  ;;  %v6821_v59 = vld [vmem:[#allocation4 + $0x210] ss:$8 sps:$4 sm:$0xff]  }
 0x347   : > { %2038 = vrot.lane.b32.xlu0 %v2022_v27, %s7338_s12  ;;  %v6808_v27 = vld [vmem:[#allocation4 + $0x264] ss:$8 sps:$4 sm:$0xff]  }
 0x348   : > { %2036 = vrot.lane.b32.xlu1 %v2021_v18, %s7338_s12  ;;  %v4460_v18 = vrot.slane %v9049_v3, %v10050_v53 }
 0x34a   : > { %v4470_v62 = vrot.slane %v4460_v18, %v10049_v50  ;;  %v3915_v18 = vrot.slane %v8977_v48, %v10048_v20 }
 0x34b   : > { %2086 = vrot.lane.b32.xlu0 %v2079_v36, %s7338_s12 }
 0x34c   : > { %2040 = vrot.lane.b32.xlu1 %v2023_v6, %s7338_s12  ;;  %v2376_v6 = vrot.slane %v9040_v37, %v10048_v20 }
 0x34e   : > { %v2386_v17 = vrot.slane %v2376_v6, %v10047_v24  ;;  %v6832_v6 = vld [vmem:[#allocation4 + $0x2e4] ss:$8 sps:$4 sm:$0xff]  }
 0x34f   : > { %3994 = vrot.lane.b32.xlu0 %v3987_v60, %s7339_s15  ;;  %v6806_v60 = vld [vmem:[#allocation4 + $0x260] ss:$8 sps:$4 sm:$0xff]  }
 0x350   : > { %2088 = vrot.lane.b32.xlu1 %v2083_v19, %s7338_s12  ;;  %v6811_v19 = vld [vmem:[#allocation4 + $0x254] ss:$8 sps:$4 sm:$0xff]   ;;  %v2388_v54 = vmul.f32 %v2386_v17, %v9080_v16  ;;  %v2390_v23 = vmul.f32 %v2386_v17, %v9030_v33 }
 0x353   : > { %2269 = vrot.lane.b32.xlu0 %v2262_v1, %s7338_s12  ;;  %v6809_v1 = vld [vmem:[#allocation4 + $0x250] ss:$8 sps:$4 sm:$0xff]  }
 0x354   : > { %3996 = vrot.lane.b32.xlu1 %v3991_v63, %s7339_s15  ;;  %v9083_v63 = vld [vmem:[#allocation2 + $0x68] sm:$0xf] }
 0x357   : > { %4221 = vrot.lane.b32.xlu0 %v4214_v30, %s7339_s15  ;;  %v2391_v30 = vmul.f32 %v2382_v46, %v9083_v63 }
 0x358   : > { %2271 = vrot.lane.b32.xlu1 %v2266_v8, %s7338_s12  ;;  %v6812_v8 = vld [vmem:[#allocation4 + $0x240] ss:$8 sps:$4 sm:$0xff]  }
 0x35b   : > { %2215 = vrot.lane.b32.xlu0 %v2209_v9, %s7338_s12  ;;  %v6815_v9 = vld [vmem:[#allocation4 + $0x230] ss:$8 sps:$4 sm:$0xff]  }
 0x35c   : > { %4223 = vrot.lane.b32.xlu1 %v4218_v52, %s7339_s15  ;;  %v2447_v52 = vrot.slane %v2437_v49, %v10049_v50  ;;  %v6847_v49 = vld [vmem:[#allocation4 + $0x294] ss:$8 sps:$4 sm:$0xff]  }
 0x35f   : > { %2219 = vrot.lane.b32.xlu0 %v2212_v55, %s7338_s12  ;;  %v2441_v55 = vrot.slane %v9040_v37, %v10050_v53  ;;  %v3883_v53 = vrot.slane %v3873_v35, %v10045_v12  ;;  %v4070_v37 = vrot.slane %v9001_v38, %v10045_v12  ;;  %v6856_v35 = vld [vmem:[#allocation7 + $0x64] ss:$8 sps:$4 sm:$0xff]  }
 0x360   : > { %2217 = vrot.lane.b32.xlu1 %v2210_v56, %s7338_s12  ;;  %v2484_v56 = vrot.slane %v6346_v10, %v10045_v12 }
 0x361   : > { %v4080_v45 = vrot.slane %v4070_v37, %v10045_v12  ;;  %v6854_v37 = vld [vmem:[#allocation7 + $0x60] ss:$8 sps:$4 sm:$0xff]  }
 0x363   : > { %2223 = vrot.lane.b32.xlu0 %v2211_v32, %s7338_s12  ;;  %v2392_v32 = vmul.f32 %v2386_v17, %v9092_v40  ;;  %v6833_v17 = vld [vmem:[#allocation4 + $0x2d0] ss:$8 sps:$4 sm:$0xff]  }
 0x364   : > { %v1720_v31 = vpop.permute.xlu1 %1719  ;;  %v1718_v15 = vpop.permute.xlu0 %1717  ;;  %2221 = vrot.lane.b32.xlu1 %v2214_v43, %s7338_s12  ;;  %v2451_v43 = vrot.slane %v2441_v55, %v10049_v50  ;;  %v3877_v50 = vrot.slane %v8977_v48, %v10046_v2 }
 0x365   : > { %v1723_v58 = vsel %vm1055_vm6, %v1718_v15, %v1720_v31  ;;  %v3911_v31 = vrot.slane %v8977_v48, %v10047_v24  ;;  %v6830_v48 = vld [vmem:[#allocation4 + $0x2e0] ss:$8 sps:$4 sm:$0xff]  }
 0x366   : > { %1918 = vmatprep.mubr.bf16.mxu1 %v1723_v58  ;;  %v6824_v58 = vld [vmem:[#allocation4 + $0x200] ss:$8 sps:$4 sm:$0xff]  }
 0x367   : > { %2343 = vrot.lane.b32.xlu0 %v2336_v34, %s7338_s12  ;;  %v6823_v34 = vld [vmem:[#allocation4 + $0x214] ss:$8 sps:$4 sm:$0xff]  }
 0x368   : > { %2225 = vrot.lane.b32.xlu1 %v2213_v14, %s7338_s12  ;;  %v1716_v5 = vpop.permute.xlu0 %1715  ;;  %v6818_v14 = vld [vmem:[#allocation4 + $0x220] ss:$8 sps:$4 sm:$0xff]  }
 0x369   : > { %v1722_v36 = vsel %vm1055_vm6, %v1716_v5, %v1718_v15  ;;  %v2488_v15 = vrot.slane %v6346_v10, %v10047_v24  ;;  %v9126_v5 = vld [vmem:[#allocation2 + $0x8] sm:$0xe0] }
 0x36a   : > { %1919 = vmatmul.mubr.bf16.vlgmr.msra.gmra.mxu1 %v1722_v36  ;;  %v6827_v36 = vld [vmem:[#allocation4 + $0x2f0] ss:$8 sps:$4 sm:$0xff]  }
 0x36b   : > { %4473 = vrot.lane.b32.xlu0 %v4466_v0, %s7339_s15  ;;  %3790 = vmatpush1.bf16.msra.mxu1 %v6803_v25  ;;  %v9123_v25 = vrot.slane %v3911_v31, %v10047_v24  ;;  %v6829_v0 = vld [vmem:[#allocation4 + $0x2f4] ss:$8 sps:$4 sm:$0xff]  }
 0x36c   : > { %2345 = vrot.lane.b32.xlu1 %v2340_v51, %s7338_s12  ;;  %3791 = vmatprep.subr.bf16.mxu1 %v6808_v27  ;;  %v3887_v51 = vrot.slane %v3877_v50, %v10045_v12  ;;  %v4074_v27 = vrot.slane %v9001_v38, %v10046_v2  ;;  %v9141_v38 = vld [vmem:[#allocation2 + $0x10] sm:$0xe0] }
 0x36d   : > { %v3926_v46 = vmul.f32 %v9123_v25, %v9126_v5 }
 0x36f   : > { %2399 = vrot.lane.b32.xlu0 %v2387_v13, %s7338_s12  ;;  %3792 = vmatpush1.bf16.msra.mxu1 %v6806_v60  ;;  %v4084_v60 = vrot.slane %v4074_v27, %v10045_v12  ;;  %v6862_v27 = vld [vmem:[#allocation7 + $0x44] ss:$8 sps:$4 sm:$0xff]  }
 0x370   : > { %4475 = vrot.lane.b32.xlu1 %v4470_v62, %s7339_s15  ;;  %3793 = vmatprep.subr.bf16.mxu1 %v6811_v19  ;;  %v9139_v62 = vrot.slane %v3915_v18, %v10047_v24  ;;  %v6835_v19 = vld [vmem:[#allocation4 + $0x2d4] ss:$8 sps:$4 sm:$0xff]  }
 0x372   : > { %v3927_v13 = vmul.f32 %v9139_v62, %v9141_v38 }
 0x373   : > { %2403 = vrot.lane.b32.xlu0 %v2389_v4, %s7338_s12  ;;  %3794 = vmatpush1.bf16.msra.mxu1 %v6809_v1  ;;  %v6838_v1 = vld [vmem:[#allocation4 + $0x2c4] ss:$8 sps:$4 sm:$0xff]   ;;  %v6841_v4 = vld [vmem:[#allocation4 + $0x2b4] ss:$8 sps:$4 sm:$0xff]  }
 0x374   : > { %2401 = vrot.lane.b32.xlu1 %v2388_v54, %s7338_s12  ;;  %3795 = vmatprep.subr.bf16.mxu1 %v6814_v22  ;;  %v6836_v22 = vld [vmem:[#allocation4 + $0x2c0] ss:$8 sps:$4 sm:$0xff]   ;;  %v6839_v54 = vld [vmem:[#allocation4 + $0x2b0] ss:$8 sps:$4 sm:$0xff]  }
 0x377   : > { %2407 = vrot.lane.b32.xlu0 %v2391_v30, %s7338_s12  ;;  %3796 = vmatpush1.bf16.msra.mxu1 %v6812_v8  ;;  %v6844_v30 = vld [vmem:[#allocation4 + $0x2a4] ss:$8 sps:$4 sm:$0xff]   ;;  %v6842_v8 = vld [vmem:[#allocation4 + $0x2a0] ss:$8 sps:$4 sm:$0xff]  }
 0x378   : > { %2405 = vrot.lane.b32.xlu1 %v2390_v23, %s7338_s12  ;;  %3797 = vmatprep.subr.bf16.mxu1 %v6817_v41  ;;  %v6845_v41 = vld [vmem:[#allocation4 + $0x290] ss:$8 sps:$4 sm:$0xff]   ;;  %v6850_v23 = vld [vmem:[#allocation4 + $0x284] ss:$8 sps:$4 sm:$0xff]  }
 0x37b   : > { %2454 = vrot.lane.b32.xlu0 %v2447_v52, %s7338_s12  ;;  %3798 = vmatpush1.bf16.msra.mxu1 %v6815_v9  ;;  %v6848_v52 = vld [vmem:[#allocation4 + $0x280] ss:$8 sps:$4 sm:$0xff]   ;;  %v6853_v9 = vld [vmem:[#allocation7 + $0x74] ss:$8 sps:$4 sm:$0xff]  }
 0x37c   : > { %2409 = vrot.lane.b32.xlu1 %v2392_v32, %s7338_s12  ;;  %3799 = vmatprep.subr.bf16.mxu1 %v6820_v39 }
 0x37f   : > { %2489 = vrot.lane.b32.xlu0 %v2484_v56, %s7338_s12  ;;  %3800 = vmatpush1.bf16.msra.mxu1 %v6818_v14  ;;  %v6851_v56 = vld [vmem:[#allocation7 + $0x70] ss:$8 sps:$4 sm:$0xff]  }
 0x380   : > { %2456 = vrot.lane.b32.xlu1 %v2451_v43, %s7338_s12  ;;  %3801 = vmatprep.subr.bf16.mxu1 %v6823_v34  ;;  %v6647_v43 = vpack.c.bf16 %v8776_v57, %v8763_v7  ;;  %v9153_v7 = vld [vmem:[#allocation2 + $0x8] sm:$0xff] }
 0x383   : > { %3802 = vmatpush1.bf16.msra.mxu1 %v6821_v59  ;;  %3890 = vrot.lane.b32.xlu0 %v3883_v53, %s7340_s26  ;;  %v1953_v59 = vld [vmem:[#allocation2] sm:$0xf0] }
 0x384   : > { %2491 = vrot.lane.b32.xlu1 %v2488_v15, %s7338_s12  ;;  %3803 = vmatprep.subr.bf16.mxu1 %v6826_v47  ;;  %v6859_v47 = vld [vmem:[#allocation7 + $0x54] ss:$8 sps:$4 sm:$0xff]  }
 0x387   : > { %3804 = vmatpush1.bf16.msra.mxu1 %v6824_v58  ;;  %4087 = vrot.lane.b32.xlu0 %v4080_v45, %s7340_s26  ;;  %v6857_v45 = vld [vmem:[#allocation7 + $0x50] ss:$8 sps:$4 sm:$0xff]  }
 0x388   : > { %3805 = vmatprep.subr.bf16.mxu1 %v6829_v0  ;;  %3892 = vrot.lane.b32.xlu1 %v3887_v51, %s7340_s26 }
 0x38b   : > { %3806 = vmatpush2.bf16.msra.mxu1 %v6827_v36  ;;  %3938 = vrot.lane.b32.xlu0 %v3926_v46, %s7340_s26  ;;  %v1959_v46 = vld [vmem:[#allocation2 + $0x40] sm:$0xf] }
 0x38c   : > { %3807 = vmatprep.subr.bf16.mxu1 %v6832_v6  ;;  %4089 = vrot.lane.b32.xlu1 %v4084_v60, %s7340_s26 }
 0x38f   : > { %3808 = vmatpush2.bf16.msra.mxu1 %v6830_v48  ;;  %v6860_v48 = vld [vmem:[#allocation7 + $0x40] ss:$8 sps:$4 sm:$0xff]  }
 0x390   : > { %3809 = vmatprep.subr.bf16.mxu1 %v6835_v19  ;;  %3940 = vrot.lane.b32.xlu1 %v3927_v13, %s7340_s26 }
 0x393   : > { %3810 = vmatpush2.bf16.msra.mxu1 %v6833_v17 }
 0x394   : > { %3811 = vmatprep.subr.bf16.mxu1 %v6838_v1 }
 0x397   : > { %3812 = vmatpush2.bf16.msra.mxu1 %v6836_v22  ;;  %v6865_v22 = vld [vmem:[#allocation7 + $0x34] ss:$8 sps:$4 sm:$0xff]  }
 0x398   : > { %3813 = vmatprep.subr.bf16.mxu1 %v6841_v4 }
 0x39b   : > { %3814 = vmatpush2.bf16.msra.mxu1 %v6839_v54 }
 0x39c   : > { %3815 = vmatprep.subr.bf16.mxu1 %v6844_v30 }
 0x39f   : > { %3816 = vmatpush2.bf16.msra.mxu1 %v6842_v8 }
 0x3a0   : > { %3817 = vmatprep.subr.bf16.mxu1 %v6847_v49 }
 0x3a3   : > { %3818 = vmatpush2.bf16.msra.mxu1 %v6845_v41  ;;  %v6863_v41 = vld [vmem:[#allocation7 + $0x30] ss:$8 sps:$4 sm:$0xff]  }
 0x3a4   : > { %3819 = vmatprep.subr.bf16.mxu1 %v6850_v23 }
 0x3a5   : > { %v3623_v32 = vpop.permute.xlu0 %3622 }
 0x3a6   : > { %v3621_v10 = vpop.permute.xlu1 %3620 }
 0x3a7   : > { %3820 = vmatpush2.bf16.msra.mxu1 %v6848_v52  ;;  %v3626_v39 = vsel %vm419_vm2, %v3621_v10, %v3623_v32 }
 0x3a8   : > { %3821 = vmatprep.mubr.bf16.mxu1 %v3626_v39  ;;  %5959 = vmatprep.subr.bf16.mxu1 %v6853_v9 }
 0x3a9   : > { %v1984_v55 = vpop.permute.xlu0 %1983 }
 0x3aa   : > { %v3619_v14 = vpop.permute.xlu1 %3618  ;;  %v1991_v15 = vmul.f32 %v1984_v55, %v1953_v59  ;;  %v1994_v57 = vmul.f32 %v9153_v7, %v1984_v55  ;;  %v1997_v1 = vmul.f32 %v1984_v55, %v1959_v46  ;;  %v2065_v46 = vld [vmem:[#allocation2 + $0x58] sm:$0xf] }
 0x3ab   : > { %v3625_v34 = vsel %vm419_vm2, %v3619_v14, %v3621_v10  ;;  %v6868_v10 = vld [vmem:[#allocation7 + $0x24] ss:$8 sps:$4 sm:$0xff]  }
 0x3ac   : > { %3822 = vmatmul.mubr.bf16.vlgmr.msra.gmra.mxu1 %v3625_v34 }
 0x3ad   : > { %5960 = vmatpush1.bf16.msra.mxu1 %v6851_v56  ;;  %5991 = vmatprep.mubr.bf16.mxu1 %v6647_v43  ;;  %v2137_v53 = vpop.permute.xlu0 %2136 }
 0x3ae   : > { %v1986_v31 = vpop.permute.xlu1 %1985  ;;  %5961 = vmatprep.subr.bf16.mxu1 %v6856_v35  ;;  %v2144_v19 = vmul.f32 %v9153_v7, %v2137_v53 }
 0x3af   : > { %v1987_v50 = vsel %vm1096_vm9, %v1984_v55, %v1986_v31  ;;  %v1993_v36 = vmul.f32 %v1986_v31, %v8958_v11  ;;  %v1996_v49 = vmul.f32 %v1986_v31, %v8970_v21  ;;  %v1999_v34 = vmul.f32 %v1986_v31, %v8983_v61 }
 0x3b0   : > { %v1992_v6 = vmul.f32 %v1987_v50, %v8948_v26  ;;  %v2156_v23 = vrot.slane %v2144_v19, 4  ;;  %v1995_v32 = vmul.f32 %v1987_v50, %v8960_v28  ;;  %v1998_v59 = vmul.f32 %v1987_v50, %v8967_v29  ;;  %v2063_v50 = vld [vmem:[#allocation2 + $0x18] sm:$0xf0] }
 0x3b1   : > { %5962 = vmatpush1.bf16.msra.mxu1 %v6854_v37  ;;  %v2031_v58 = vpop.permute.xlu0 %2030 }
 0x3b2   : > { %v2054_v0 = vadd.f32 %v2031_v58, %v1991_v15  ;;  %v2139_v51 = vpop.permute.xlu1 %2138  ;;  %5963 = vmatprep.subr.bf16.mxu1 %v6859_v47 }
 0x3b3   : > { %v2140_v18 = vsel %vm1096_vm9, %v2137_v53, %v2139_v51  ;;  %v9169_v14 = vmul.f32 %v2139_v51, %v8970_v21  ;;  %v9172_v35 = vmul.f32 %v2139_v51, %v9030_v33  ;;  %v6866_v53 = vld [vmem:[#allocation7 + $0x20] ss:$8 sps:$4 sm:$0xff]  }
 0x3b4   : > { %v9181_v51 = vmul.f32 %v2140_v18, %v9018_v42 }
 0x3b5   : > { %5964 = vmatpush1.bf16.msra.mxu1 %v6857_v45  ;;  %v2035_v60 = vpop.permute.xlu0 %2034  ;;  %v6871_v45 = vld [vmem:[#allocation7 + $0x14] ss:$8 sps:$4 sm:$0xff]   ;;  %v2163_v19 = vrot.slane %v9172_v35, 4 }
 0x3b6   : > { %v2057_v13 = vadd.f32 %v2035_v60, %v1994_v57  ;;  %v2033_v17 = vpop.permute.xlu1 %2032  ;;  %5965 = vmatprep.subr.bf16.mxu1 %v6862_v27  ;;  %v2145_v57 = vmul.f32 %v2140_v18, %v8960_v28  ;;  %v6869_v18 = vld [vmem:[#allocation7 + $0x10] ss:$8 sps:$4 sm:$0xff]   ;;  %v3971_v35 = vld [vmem:[#allocation2 + $0x18] sm:$0xe0] }
 0x3b7   : > { %v2042_v4 = vsel %vm1096_vm9, %v2031_v58, %v2033_v17  ;;  %v9161_v54 = vadd.f32 %v2033_v17, %v1993_v36 }
 0x3b8   : > { %v9163_v30 = vadd.f32 %v2042_v4, %v1992_v6  ;;  %v9184_v6 = vld [vmem:[#allocation2 + $0x38] sm:$0xff]  ;;  %v6874_v4 = vld [vmem:[#allocation7 + $0x4] ss:$8 sps:$4 sm:$0xff]  }
 0x3b9   : > { %5966 = vmatpush1.bf16.msra.mxu1 %v6860_v48  ;;  %v2039_v8 = vpop.permute.xlu0 %2038 }
 0x3ba   : > { %v2060_v52 = vadd.f32 %v2039_v8, %v1997_v1  ;;  %v2037_v9 = vpop.permute.xlu1 %2036  ;;  %5967 = vmatprep.subr.bf16.mxu1 %v6865_v22 }
 0x3bb   : > { %v2043_v39 = vsel %vm1096_vm9, %v2035_v60, %v2037_v9  ;;  %v2059_v55 = vadd.f32 %v2037_v9, %v1996_v49 }
 0x3bc   : > { %v2058_v56 = vadd.f32 %v2043_v39, %v1995_v32  ;;  %v2157_v32 = vrot.slane %v2145_v57, 4 }
 0x3bd   : > { %5968 = vmatpush1.bf16.msra.mxu1 %v6863_v41  ;;  %v2087_v43 = vpop.permute.xlu0 %2086 }
 0x3be   : > { %v2094_v37 = vmul.f32 %v2087_v43, %v8948_v26  ;;  %v2097_v15 = vmul.f32 %v2087_v43, %v8960_v28  ;;  %v2100_v47 = vmul.f32 %v2087_v43, %v8967_v29  ;;  %v2041_v58 = vpop.permute.xlu1 %2040  ;;  %5969 = vmatprep.subr.bf16.mxu1 %v6868_v10  ;;  %v2158_v29 = vrot.slane %v9169_v14, 4 }
 0x3bf   : > { %v2044_v27 = vsel %vm1096_vm9, %v2039_v8, %v2041_v58  ;;  %v2062_v31 = vadd.f32 %v2041_v58, %v1999_v34  ;;  %v2161_v10 = vrot.slane %v9181_v51, 4 }
 0x3c0   : > { %v2061_v36 = vadd.f32 %v2044_v27, %v1998_v59  ;;  %v2103_v26 = vadd.f32 %v2094_v37, %v2054_v0  ;;  %v2106_v60 = vadd.f32 %v2097_v15, %v2057_v13  ;;  %v2109_v48 = vadd.f32 %v2100_v47, %v2060_v52  ;;  %v6872_v59 = vld [vmem:[#allocation7] ss:$8 sps:$4 sm:$0xff]   ;;  %v6877_v47 = vld [vmem:[#allocation7 + $0xf4] ss:$8 sps:$4 sm:$0xff]  }
 0x3c1   : > { %5970 = vmatpush1.bf16.msra.mxu1 %v6866_v53  ;;  %v9188_v17 = vpop.permute.xlu0 %3994  ;;  %v9211_v27 = vld [vmem:[#allocation2 + $0x58] sm:$0xff] }
 0x3c2   : > { %v4003_v1 = vmul.f32 %v9188_v17, %v9126_v5  ;;  %v2089_v22 = vpop.permute.xlu1 %2088  ;;  %5971 = vmatprep.subr.bf16.mxu1 %v6871_v45  ;;  %v2174_v8 = vadd.f32 %v2156_v23, %v2103_v26  ;;  %v9192_v49 = vadd.f32 %v2156_v23, %v2106_v60  ;;  %v9194_v0 = vadd.f32 %v2156_v23, %v2109_v48  ;;  %v3973_v45 = vld [vmem:[#allocation2 + $0x58] sm:$0x1f] }
 0x3c3   : > { %v2090_v13 = vsel %vm1096_vm9, %v2087_v43, %v2089_v22  ;;  %v2096_v41 = vmul.f32 %v2089_v22, %v2063_v50  ;;  %v2102_v52 = vmul.f32 %v2089_v22, %v2065_v46  ;;  %v2099_v9 = vmul.f32 %v2089_v22, %v9184_v6  ;;  %v6880_v22 = vld [vmem:[#allocation7 + $0xe4] ss:$8 sps:$4 sm:$0xff]  }
 0x3c4   : > { %v2095_v39 = vmul.f32 %v2090_v13, %v8958_v11  ;;  %v2098_v14 = vmul.f32 %v2090_v13, %v8970_v21  ;;  %4021 = vrot.lane.b32.xlu0 %v4003_v1, %s7336_s13  ;;  %v2101_v34 = vmul.f32 %v2090_v13, %v8983_v61  ;;  %v4306_v61 = vrot.slane %v9049_v3, %v10046_v2 }
 0x3c5   : > { %5972 = vmatpush1.bf16.msra.mxu1 %v6869_v18  ;;  %v2270_v23 = vpop.permute.xlu0 %2269  ;;  %v2105_v43 = vadd.f32 %v2096_v41, %v9161_v54  ;;  %v2108_v53 = vadd.f32 %v2099_v9, %v2059_v55  ;;  %v2111_v37 = vadd.f32 %v2102_v52, %v2062_v31  ;;  %v2164_v31 = vsel %vm1402_vm7, %v2158_v29, %v2163_v19 }
 0x3c6   : > { %v3997_v15 = vpop.permute.xlu1 %3996  ;;  %5973 = vmatprep.subr.bf16.mxu1 %v6874_v4  ;;  %v2104_v58 = vadd.f32 %v2095_v39, %v9163_v30  ;;  %v2107_v11 = vadd.f32 %v2098_v14, %v2058_v56  ;;  %v2162_v50 = vsel %vm1402_vm7, %v2157_v32, %v2161_v10  ;;  %v6875_v56 = vld [vmem:[#allocation7 + $0xf0] ss:$8 sps:$4 sm:$0xff]   ;;  %v2110_v48 = vadd.f32 %v2101_v34, %v2061_v36  ;;  %v6878_v14 = vld [vmem:[#allocation7 + $0xe0] ss:$8 sps:$4 sm:$0xff]  }
 0x3c7   : > { %v9207_v57 = vsel %vm3998_vm11, %v9188_v17, %v3997_v15  ;;  %v4005_v51 = vmul.f32 %v3997_v15, %v3971_v35  ;;  %v2176_v54 = vadd.f32 %v2158_v29, %v2105_v43  ;;  %v9217_v46 = vadd.f32 %v2164_v31, %v2108_v53 }
 0x3c8   : > { %v2175_v55 = vadd.f32 %v2157_v32, %v2104_v58  ;;  %v9219_v26 = vadd.f32 %v2162_v50, %v2107_v11  ;;  %v9221_v60 = vadd.f32 %v2163_v19, %v2111_v37  ;;  %v2277_v2 = vmul.f32 %v2270_v23, %v8960_v28  ;;  %v6886_v50 = vld [vmem:[#allocation7 + $0xc4] ss:$8 sps:$4 sm:$0xff]  }
 0x3c9   : > { %5974 = vmatpush1.bf16.msra.mxu1 %v6872_v59  ;;  %v9215_v30 = vpop.permute.xlu0 %4221  ;;  %v4011_v18 = vmul.f32 %v3997_v15, %v3973_v45  ;;  %4025 = vrot.lane.b32.xlu0 %v4005_v51, %s7336_s13  ;;  %v4004_v29 = vmul.f32 %v9207_v57, %v9141_v38  ;;  %v2280_v4 = vmul.f32 %v2270_v23, %v9018_v42  ;;  %v6881_v51 = vld [vmem:[#allocation7 + $0xd0] ss:$8 sps:$4 sm:$0xff]  }
 0x3ca   : > { %v2272_v1 = vpop.permute.xlu1 %2271  ;;  %5975 = vmatprep.subr.bf16.mxu1 %v6877_v47  ;;  %v9232_v19 = vadd.f32 %v2161_v10, %v2110_v48  ;;  %v4008_v28 = vmul.f32 %v3997_v15, %v9184_v6  ;;  %v4302_v36 = vrot.slane %v9049_v3, %v10045_v12  ;;  %v2289_v35 = vrot.slane %v2277_v2, 4  ;;  %v6883_v10 = vld [vmem:[#allocation7 + $0xd4] ss:$8 sps:$4 sm:$0xff]  }
 0x3cb   : > { %v2279_v13 = vmul.f32 %v2272_v1, %v9184_v6  ;;  %v9230_v41 = vmul.f32 %v2272_v1, %v9211_v27  ;;  %4023 = vrot.lane.b32.xlu1 %v4004_v29, %s7336_s13  ;;  %v2273_v52 = vsel %vm1096_vm9, %v2270_v23, %v2272_v1  ;;  %v4316_v43 = vrot.slane %v4306_v61, %v10045_v12 }
 0x3cc   : > { %v2292_v53 = vrot.slane %v2280_v4, 4  ;;  %v4312_v47 = vrot.slane %v4302_v36, %v10045_v12  ;;  %v2281_v58 = vmul.f32 %v2273_v52, %v9030_v33 }
 0x3cd   : > { %v2291_v9 = vrot.slane %v2279_v13, 4  ;;  %v2296_v32 = vrot.slane %v9230_v41, 4  ;;  %5976 = vmatpush2.bf16.msra.mxu1 %v6875_v56  ;;  %v2216_v39 = vpop.permute.xlu0 %2215  ;;  %4037 = vrot.lane.b32.xlu0 %v4011_v18, %s7336_s13  ;;  %v6884_v13 = vld [vmem:[#allocation7 + $0xc0] ss:$8 sps:$4 sm:$0xff]  }
 0x3ce   : > { %v2239_v34 = vadd.f32 %v2216_v39, %v2174_v8  ;;  %v9240_v59 = vpop.permute.xlu1 %4223  ;;  %5977 = vmatprep.subr.bf16.mxu1 %v6880_v22  ;;  %v2278_v8 = vmul.f32 %v2273_v52, %v8970_v21  ;;  %v2293_v21 = vsel %vm1402_vm7, %v2289_v35, %v2292_v53  ;;  %v2294_v29 = vrot.slane %v2281_v58, 4 }
 0x3cf   : > { %v4231_v3 = vmul.f32 %v9240_v59, %v9184_v6  ;;  %v4234_v23 = vmul.f32 %v9240_v59, %v9211_v27  ;;  %v2297_v37 = vsel %vm1402_vm7, %v2291_v9, %v2296_v32  ;;  %4031 = vrot.lane.b32.xlu1 %v4008_v28, %s7336_s13 }
 0x3d0   : > { %v9252_v15 = vadd.f32 %v2289_v35, %v2239_v34  ;;  %v2290_v18 = vrot.slane %v2278_v8, 4 }
 0x3d1   : > { %v4243_v11 = vrot.slane %v4231_v3, 3  ;;  %v4248_v45 = vrot.slane %v4234_v23, 3  ;;  %5978 = vmatpush2.bf16.msra.mxu1 %v6878_v14  ;;  %v2220_v6 = vpop.permute.xlu0 %2219  ;;  %4321 = vrot.lane.b32.xlu0 %v4316_v43, %s7340_s26  ;;  %v6892_v23 = vld [vmem:[#allocation7 + $0xa4] ss:$8 sps:$4 sm:$0xff]  }
 0x3d2   : > { %v2242_v61 = vadd.f32 %v2220_v6, %v9192_v49  ;;  %v2218_v31 = vpop.permute.xlu1 %2217  ;;  %5979 = vmatprep.subr.bf16.mxu1 %v6883_v10  ;;  %v6887_v10 = vld [vmem:[#allocation7 + $0xb0] ss:$8 sps:$4 sm:$0xff]  }
 0x3d3   : > { %v2227_v56 = vsel %vm1096_vm9, %v2216_v39, %v2218_v31  ;;  %v2241_v48 = vadd.f32 %v2218_v31, %v2176_v54  ;;  %v4249_v2 = vsel %vm1705_vm10, %v4243_v11, %v4248_v45  ;;  %4319 = vrot.lane.b32.xlu1 %v4312_v47, %s7340_s26  ;;  %v6889_v39 = vld [vmem:[#allocation7 + $0xb4] ss:$8 sps:$4 sm:$0xff]   ;;  %v6890_v47 = vld [vmem:[#allocation7 + $0xa0] ss:$8 sps:$4 sm:$0xff]  }
 0x3d4   : > { %v9262_v1 = vadd.f32 %v2293_v21, %v2242_v61  ;;  %v2240_v22 = vadd.f32 %v2227_v56, %v2175_v55  ;;  %v6893_v21 = vld [vmem:[#allocation7 + $0x90] ss:$8 sps:$4 sm:$0xff]  }
 0x3d5   : > { %v2309_v49 = vadd.f32 %v2291_v9, %v2241_v48  ;;  %5980 = vmatpush2.bf16.msra.mxu1 %v6881_v51  ;;  %v2224_v4 = vpop.permute.xlu0 %2223  ;;  %4260 = vrot.lane.b32.xlu0 %v4249_v2, %s7336_s13  ;;  %v2295_v9 = vsel %vm1402_vm7, %v2290_v18, %v2294_v29 }
 0x3d6   : > { %v2308_v28 = vadd.f32 %v2290_v18, %v2240_v22  ;;  %v2245_v36 = vadd.f32 %v2224_v4, %v9194_v0  ;;  %v2222_v52 = vpop.permute.xlu1 %2221  ;;  %5981 = vmatprep.subr.bf16.mxu1 %v6886_v50 }
 0x3d7   : > { %v2228_v54 = vsel %vm1096_vm9, %v2220_v6, %v2222_v52  ;;  %v2244_v14 = vadd.f32 %v2222_v52, %v9217_v46  ;;  %4254 = vrot.lane.b32.xlu1 %v4243_v11, %s7336_s13  ;;  %v6895_v6 = vld [vmem:[#allocation7 + $0x94] ss:$8 sps:$4 sm:$0xff]   ;;  %v2316_v52 = vld [vmem:[#allocation2 + $0x20] sm:$0xf0] }
 0x3d8   : > { %v9269_v55 = vadd.f32 %v2292_v53, %v2245_v36  ;;  %v2243_v35 = vadd.f32 %v2228_v54, %v9219_v26 }
 0x3d9   : > { %v2312_v34 = vadd.f32 %v2297_v37, %v2244_v14  ;;  %5982 = vmatpush2.bf16.msra.mxu1 %v6884_v13  ;;  %v2344_v0 = vpop.permute.xlu0 %2343 }
 0x3da   : > { %v2311_v43 = vadd.f32 %v2295_v9, %v2243_v35  ;;  %v2226_v3 = vpop.permute.xlu1 %2225  ;;  %5983 = vmatprep.subr.bf16.mxu1 %v6889_v39  ;;  %v2319_v39 = vld [vmem:[#allocation2 + $0x60] sm:$0xf]  ;;  %v2351_v9 = vmul.f32 %v2344_v0, %v2316_v52 }
 0x3db   : > { %v2229_v8 = vsel %vm1096_vm9, %v2224_v4, %v2226_v3  ;;  %v2247_v46 = vadd.f32 %v2226_v3, %v9221_v60  ;;  %4266 = vrot.lane.b32.xlu1 %v4248_v45, %s7336_s13  ;;  %v4451_v45 = vld [vmem:[#allocation2 + $0x38] sm:$0xf8]  ;;  %v6896_v35 = vld [vmem:[#allocation7 + $0x80] ss:$8 sps:$4 sm:$0xff]  }
 0x3dc   : > { %v2246_v53 = vadd.f32 %v2229_v8, %v9232_v19  ;;  %v7200_v3 = vld [vmem:[#allocation2 + $0x48] sm:$0xff] }
 0x3dd   : > { %v2315_v26 = vadd.f32 %v2296_v32, %v2247_v46  ;;  %5984 = vmatpush2.bf16.msra.mxu1 %v6887_v10  ;;  %v9280_v37 = vpop.permute.xlu0 %4473  ;;  %v2357_v10 = vmul.f32 %v2344_v0, %v2319_v39  ;;  %v2360_v46 = vadd.f32 %v2351_v9, %v9252_v15 }
 0x3de   : > { %v2314_v58 = vadd.f32 %v2294_v29, %v2246_v53  ;;  %v2346_v11 = vpop.permute.xlu1 %2345  ;;  %5985 = vmatprep.subr.bf16.mxu1 %v6892_v23  ;;  %v6898_v29 = vld [vmem:[#allocation7 + $0x84] ss:$8 sps:$4 sm:$0xff]  }
 0x3df   : > { %v2347_v51 = vsel %vm1096_vm9, %v2344_v0, %v2346_v11  ;;  %v2353_v61 = vmul.f32 %v2346_v11, %v9080_v16  ;;  %v2356_v60 = vmul.f32 %v2346_v11, %v9030_v33  ;;  %v2359_v19 = vmul.f32 %v2346_v11, %v9092_v40 }
 0x3e0   : > { %v2352_v41 = vmul.f32 %v2347_v51, %v9070_v44  ;;  %v2355_v32 = vmul.f32 %v2347_v51, %v9018_v42  ;;  %v2358_v31 = vmul.f32 %v2347_v51, %v9083_v63 }
 0x3e1   : > { %5986 = vmatpush2.bf16.msra.mxu1 %v6890_v47  ;;  %v2400_v50 = vpop.permute.xlu0 %2399  ;;  %v2362_v56 = vadd.f32 %v2353_v61, %v2309_v49  ;;  %v2365_v48 = vadd.f32 %v2356_v60, %v2312_v34  ;;  %v2368_v2 = vadd.f32 %v2359_v19, %v2315_v26  ;;  %v2354_v34 = vmul.f32 %v9153_v7, %v2344_v0 }
 0x3e2   : > { %v9289_v18 = vpop.permute.xlu1 %4475  ;;  %5987 = vmatprep.subr.bf16.mxu1 %v6895_v6  ;;  %v2361_v22 = vadd.f32 %v2352_v41, %v2308_v28  ;;  %v2364_v4 = vadd.f32 %v2355_v32, %v2311_v43  ;;  %v2367_v13 = vadd.f32 %v2358_v31, %v2314_v58  ;;  %v7199_v43 = vld [vmem:[#allocation2 + $0x28] sm:$0xff]  ;;  %v2366_v26 = vadd.f32 %v2357_v10, %v9269_v55  ;;  %v2432_v31 = vld [vmem:[#allocation2 + $0x38] sm:$0xf0] }
 0x3e3   : > { %v9292_v36 = vmul.f32 %v9289_v18, %v4451_v45  ;;  %v6646_v23 = vpack.c.bf16 %v7200_v3, %v7199_v43  ;;  %v2363_v53 = vadd.f32 %v2354_v34, %v9262_v1  ;;  %v2423_v47 = vadd.f32 %v2400_v50, %v2360_v46 }
 0x3e4   : > { %v9309_v1 = vmul.f32 %v9289_v18, %v9211_v27 }
 0x3e5   : > { %v4501_v54 = vrot.slane %v9292_v36, 6  ;;  %5988 = vmatpush2.bf16.msra.mxu1 %v6893_v21  ;;  %v2404_v14 = vpop.permute.xlu0 %2403 }
 0x3e6   : > { %v2402_v49 = vpop.permute.xlu1 %2401  ;;  %5989 = vmatprep.subr.bf16.mxu1 %v6898_v29  ;;  %v2426_v58 = vadd.f32 %v2404_v14, %v2363_v53 }
 0x3e7   : > { %4518 = vrot.lane.b32.xlu0 %v4501_v54, %s7336_s13  ;;  %v2411_v0 = vsel %vm1096_vm9, %v2400_v50, %v2402_v49  ;;  %v2425_v55 = vadd.f32 %v2402_v49, %v2362_v56  ;;  %v2433_v50 = vld [vmem:[#allocation2 + $0x78] sm:$0xf] }
 0x3e8   : > { %v2424_v21 = vadd.f32 %v2411_v0, %v2361_v22 }
 0x3e9   : > { %5990 = vmatpush2.bf16.msra.mxu1 %v6896_v35  ;;  %v2408_v28 = vpop.permute.xlu0 %2407 }
 0x3ea   : > { %v2406_v8 = vpop.permute.xlu1 %2405  ;;  %v2429_v11 = vadd.f32 %v2408_v28, %v2366_v26 }
 0x3eb   : > { %v2412_v51 = vsel %vm1096_vm9, %v2404_v14, %v2406_v8  ;;  %v2428_v52 = vadd.f32 %v2406_v8, %v2365_v48 }
 0x3ec   : > { %5992 = vmatmul.mubr.bf16.vlgmr.msra.gmra.mxu1 %v6646_v23  ;;  %v2427_v29 = vadd.f32 %v2412_v51, %v2364_v4 }
 0x3ed   : > { %v2455_v6 = vpop.permute.xlu0 %2454 }
 0x3ee   : > { %v2462_v61 = vmul.f32 %v2455_v6, %v9070_v44  ;;  %v2465_v60 = vmul.f32 %v2455_v6, %v9018_v42  ;;  %v2468_v19 = vmul.f32 %v2455_v6, %v9083_v63  ;;  %v2410_v15 = vpop.permute.xlu1 %2409 }
 0x3ef   : > { %v2413_v44 = vsel %vm1096_vm9, %v2408_v28, %v2410_v15  ;;  %v2431_v42 = vadd.f32 %v2410_v15, %v2368_v2 }
 0x3f0   : > { %v2471_v45 = vadd.f32 %v2462_v61, %v2423_v47  ;;  %v2474_v41 = vadd.f32 %v2465_v60, %v2426_v58  ;;  %v2477_v32 = vadd.f32 %v2468_v19, %v2429_v11  ;;  %v2430_v43 = vadd.f32 %v2413_v44, %v2367_v13 }
 0x3f1   : > { %v2490_v39 = vpop.permute.xlu0 %2489 }
 0x3f2   : > { %v2497_v14 = vadd.f32 %v2490_v39, %v2471_v45  ;;  %v2500_v63 = vadd.f32 %v2490_v39, %v2474_v41  ;;  %v2503_v35 = vadd.f32 %v2490_v39, %v2477_v32  ;;  %v2457_v9 = vpop.permute.xlu1 %2456 }
 0x3f3   : > { %v2458_v34 = vsel %vm1096_vm9, %v2455_v6, %v2457_v9  ;;  %v2464_v10 = vmul.f32 %v2457_v9, %v2432_v31  ;;  %v2467_v56 = vmul.f32 %v2457_v9, %v9211_v27  ;;  %v2470_v49 = vmul.f32 %v2457_v9, %v2433_v50 }
 0x3f4   : > { %v2506_v3 = vmax.f32 %v2497_v14, 0.0  ;;  %v2509_v23 = vmax.f32 %v2500_v63, 0.0  ;;  %v2463_v22 = vmul.f32 %v2458_v34, %v9080_v16  ;;  %v2466_v48 = vmul.f32 %v2458_v34, %v9030_v33 }
 0x3f5   : > { %v2469_v4 = vmul.f32 %v2458_v34, %v9092_v40  ;;  %v2473_v2 = vadd.f32 %v2464_v10, %v2425_v55  ;;  %v2476_v28 = vadd.f32 %v2467_v56, %v2428_v52  ;;  %v2512_v8 = vmax.f32 %v2503_v35, 0.0  ;;  %v9317_v58 = vpop.permute.xlu0 %3890 }
 0x3f6   : > { %v2550_v46 = vpack.c.bf16 %v2509_v23, %v2506_v3  ;;  %v2479_v53 = vadd.f32 %v2470_v49, %v2431_v42  ;;  %v2492_v26 = vpop.permute.xlu1 %2491  ;;  %v2472_v47 = vadd.f32 %v2463_v22, %v2424_v21  ;;  %v2475_v27 = vadd.f32 %v2466_v48, %v2427_v29  ;;  %v4452_v3 = vld [vmem:[#allocation2 + $0x78] sm:$0x7] }
 0x3f7   : > { %v2478_v0 = vadd.f32 %v2469_v4, %v2430_v43  ;;  %v2493_v13 = vsel %vm1096_vm9, %v2490_v39, %v2492_v26  ;;  %v2499_v11 = vadd.f32 %v2492_v26, %v2473_v2  ;;  %v2502_v16 = vadd.f32 %v2492_v26, %v2476_v28  ;;  %v1681_v4 = vld [vmem:[%s9897_s8] sm:$0x3] }
 0x3f8   : > { %v2498_v6 = vadd.f32 %v2493_v13, %v2472_v47  ;;  %v2505_v51 = vadd.f32 %v2492_v26, %v2479_v53  ;;  %v4506_v33 = vrot.slane %v9309_v1, 6  ;;  %v2501_v40 = vadd.f32 %v2493_v13, %v2475_v27  ;;  %v3860_v53 = vld [vmem:[#allocation2] sm:$0xe0] }
 0x3f9   : > { %v2504_v61 = vadd.f32 %v2493_v13, %v2478_v0  ;;  %v2508_v60 = vmax.f32 %v2499_v11, 0.0  ;;  %v2553_v19 = vpack.c.bf16 %v2512_v8, %v2512_v8  ;;  %v2511_v55 = vmax.f32 %v2502_v16, 0.0  ;;  %v9323_v29 = vpop.permute.xlu0 %4087 }
 0x3fa   : > { %v2507_v15 = vmax.f32 %v2498_v6, 0.0  ;;  %v2514_v45 = vmax.f32 %v2505_v51, 0.0  ;;  %v9321_v41 = vpop.permute.xlu1 %3892  ;;  %v2510_v32 = vmax.f32 %v2501_v40, 0.0  ;;  %v4507_v52 = vsel %vm3066_vm8, %v4501_v54, %v4506_v33 }
 0x3fb   : > { %v2513_v31 = vmax.f32 %v2504_v61, 0.0  ;;  %v2552_v50 = vpack.c.bf16 %v2511_v55, %v2508_v60  ;;  %v2575_v44 = vrot.slane %v2553_v19, 2  ;;  %4524 = vrot.lane.b32.xlu1 %v4507_v52, %s7336_s13  ;;  %v2574_v10 = vrot.slane %v2550_v46, 2 }
 0x3fc   : > { %v2555_v21 = vpack.c.bf16 %v2514_v45, %v2514_v45  ;;  %v2551_v1 = vpack.c.bf16 %v2510_v32, %v2507_v15  ;;  %v4489_v23 = vmul.f32 %v9289_v18, %v4452_v3  ;;  %v1692_v2 = vrot.slane %v1681_v4, %v10045_v12 }
 0x3fd   : > { %v2554_v14 = vpack.c.bf16 %v2513_v31, %v2513_v31  ;;  %v2580_v63 = vrot.slane %v2552_v50, 2  ;;  %v3939_v56 = vpop.permute.xlu0 %3938  ;;  %v9338_v49 = vsel %vm630_vm1, %v2574_v10, %v2575_v44  ;;  %v1696_v8 = vrot.slane %v1681_v4, %v10047_v24 }
 0x3fe   : > { %v2581_v39 = vrot.slane %v2555_v21, 2  ;;  %v9328_v42 = vpop.permute.xlu1 %4089  ;;  %v2577_v35 = vrot.slane %v2551_v1, 2  ;;  %v4512_v22 = vrot.slane %v4489_v23, 6  ;;  %v3899_v13 = vmul.f32 %v9317_v58, %v3860_v53 }
 0x3ff   : > { %v2578_v9 = vrot.slane %v2554_v14, 2  ;;  %v9358_v15 = vsel %vm3894_vm12, %v9317_v58, %v9321_v41  ;;  %v3901_v32 = vmul.f32 %v9321_v41, %v9141_v38 }
 0x400   : > { %v9332_v34 = vsel %vm630_vm1, %v2580_v63, %v2581_v39  ;;  %v9343_v48 = vsel %vm3066_vm8, %v4506_v33, %v4512_v22  ;;  %v3962_v60 = vadd.f32 %v3939_v56, %v3899_v13  ;;  %v3900_v31 = vmul.f32 %v9358_v15, %v9126_v5 }
 0x401   : > { %v9335_v54 = vsel %vm630_vm1, %v2577_v35, %v2578_v9 }
 0x402   : > { %v3941_v36 = vpop.permute.xlu1 %3940 }
 0x403   : > { %v3950_v43 = vsel %vm3894_vm12, %v3939_v56, %v3941_v36  ;;  %v3964_v21 = vadd.f32 %v3941_v36, %v3901_v32  ;;  %v4095_v56 = vmul.f32 %v9153_v7, %v9323_v29 }
 0x404   : > { %v3963_v50 = vadd.f32 %v3950_v43, %v3900_v31  ;;  %v6386_v43 = vld [vmem:[%s9897_s8 + $0x4] sm:$0x3] }
 0x405   : > { %v9385_v36 = vrot.slane %v4095_v56, 3  ;;  %v3595_v3 = vrot.slane %v6386_v43, %v10045_v12  ;;  %v3599_v22 = vrot.slane %v6386_v43, %v10047_v24 }
 0x42a   : > { %v1920_v28 = vpop.f32.mrf.mxu1 }
 0x42b   : > { %v1921_v26 = vadd.f32 %v1920_v28, %v1692_v2 }
 0x42c   : > { %v1922_v46 = vpop.f32.mrf.mxu1 }
 0x42d   : > { %v1923_v27 = vadd.f32 %v1922_v46, %v1696_v8  ;;  %v1929_v6 = vmax.f32 %v1921_v26, 0.0  ;;  %v9405_v46 = vsel %vm3894_vm12, %v9323_v29, %v9328_v42 }
 0x42e   : > { %v1924_v47 = vpop.f32.mrf.mxu1 }
 0x42f   : > { %v1925_v0 = vadd.f32 %v1924_v47, %v1692_v2  ;;  %v1930_v33 = vmax.f32 %v1923_v27, 0.0  ;;  %v9398_v2 = vld [vmem:[%s9894_s5 + $0x50] sm:$0x77] }
 0x430   : > { %v1926_v11 = vpop.f32.mrf.mxu1  ;;  %v4138_v7 = vrot.slane %v9398_v2, %v10047_v24  ;;  %v6899_v47 = vld [vmem:[#allocation4 + $0x170] ss:$8 sps:$4 sm:$0xff]   ;;  %v6901_v27 = vld [vmem:[#allocation4 + $0x174] ss:$8 sps:$4 sm:$0xff]  }
 0x431   : > { %v1931_v16 = vmax.f32 %v1925_v0, 0.0  ;;  %v1927_v51 = vadd.f32 %v1926_v11, %v1696_v8  ;;  %2754 = vmatprep.subr.bf16.mxu0 %v6901_v27  ;;  %v6907_v27 = vld [vmem:[#allocation4 + $0x154] ss:$8 sps:$4 sm:$0xff]  }
 0x432   : > { %v9410_v13 = vrot.slane %v4138_v7, %v10047_v24  ;;  %2755 = vmatpush1.bf16.msra.mxu0 %v6899_v47 }
 0x433   : > { %v9351_v40 = vpack.c.bf16 %v1931_v16, %v1929_v6  ;;  %v1932_v61 = vmax.f32 %v1927_v51, 0.0 }
 0x435   : > { %v9353_v19 = vpack.c.bf16 %v1932_v61, %v1930_v33  ;;  %v7202_v33 = vld [vmem:[%s9894_s5 + $0x58] sm:$0x77] }
 0x436   : > { %v4022_v55 = vpop.permute.xlu0 %4021  ;;  %v4381_v61 = vrot.slane %v7202_v33, %v10047_v24  ;;  %v4385_v43 = vrot.slane %v7202_v33, %v10048_v20 }
 0x437   : > { %v4054_v45 = vadd.f32 %v4022_v55, %v3962_v60 }
 0x439   : > { %v9392_v23 = vadd.f32 %v9385_v36, %v4054_v45 }
 0x43b   : > { %v4026_v52 = vpop.permute.xlu0 %4025 }
 0x43d   : > { %v4024_v1 = vpop.permute.xlu1 %4023 }
 0x43e   : > { %v4039_v44 = vsel %vm1055_vm6, %v4022_v55, %v4024_v1  ;;  %v4040_v39 = vsel %vm1055_vm6, %v4024_v1, %v4026_v52 }
 0x43f   : > { %v9366_v14 = vadd.f32 %v4039_v44, %v3963_v50  ;;  %v9368_v63 = vadd.f32 %v4040_v39, %v3964_v21  ;;  %v9370_v35 = vpop.permute.xlu0 %4037  ;;  %v9450_v44 = vrot.slane %v4381_v61, %v10047_v24 }
 0x441   : > { %v9372_v9 = vpop.permute.xlu1 %4031 }
 0x443   : > { %v9374_v38 = vpop.permute.xlu0 %4321 }
 0x445   : > { %v9376_v10 = vpop.permute.xlu1 %4319 }
 0x446   : > { %v9381_v5 = vsel %vm3894_vm12, %v9376_v10, %v9374_v38 }
 0x46c   : > { %v3823_v4 = vpop.f32.mrf.mxu1 }
 0x46d   : > { %v3824_v28 = vadd.f32 %v3823_v4, %v3595_v3  ;;  %v9462_v4 = vld [vmem:[#allocation2 + $0x68] sm:$0x7] }
 0x46e   : > { %v3825_v8 = vpop.f32.mrf.mxu1  ;;  %v4334_v33 = vmul.f32 %v9381_v5, %v9462_v4 }
 0x46f   : > { %v9407_v53 = vmax.f32 %v3824_v28, 0.0  ;;  %v3826_v26 = vadd.f32 %v3825_v8, %v3599_v22 }
 0x470   : > { %v3827_v0 = vpop.f32.mrf.mxu1  ;;  %v4356_v50 = vrot.slane %v4334_v33, 6 }
 0x471   : > { %3850 = vst [vmem:[#allocation2 + $0x28] sm:$0xff] %v9407_v53  ;;  %v9413_v11 = vmax.f32 %v3826_v26, 0.0  ;;  %v3828_v6 = vadd.f32 %v3827_v0, %v3595_v3  ;;  %v3928_v16 = vmul.f32 %v9123_v25, %v9407_v53  ;;  %v4006_v29 = vmul.f32 %v9188_v17, %v9407_v53  ;;  %v6904_v26 = vld [vmem:[#allocation4 + $0x164] ss:$8 sps:$4 sm:$0xff]   ;;  %v9472_v0 = vld [vmem:[#allocation2 + $0x70] sm:$0x7] }
 0x472   : > { %v3829_v51 = vpop.f32.mrf.mxu1  ;;  %v9425_v60 = vmul.f32 %v9405_v46, %v9407_v53  ;;  %v9436_v31 = vmul.f32 %v9410_v13, %v9407_v53  ;;  %v9470_v8 = vmul.f32 %v9215_v30, %v9407_v53  ;;  %2756 = vmatprep.subr.bf16.mxu0 %v6904_v26  ;;  %v4335_v61 = vmul.f32 %v9374_v38, %v9472_v0 }
 0x473   : > { %3851 = vst [vmem:[#allocation2 + $0x30] sm:$0xff] %v9413_v11  ;;  %v9428_v55 = vmax.f32 %v3828_v6, 0.0  ;;  %v3830_v45 = vadd.f32 %v3829_v51, %v3599_v22  ;;  %3942 = vrot.lane.b32.xlu0 %v3928_v16, %s7340_s26  ;;  %4027 = vrot.lane.b32.xlu1 %v4006_v29, %s7336_s13  ;;  %v4007_v32 = vmul.f32 %v9207_v57, %v9413_v11  ;;  %v6902_v22 = vld [vmem:[#allocation4 + $0x160] ss:$8 sps:$4 sm:$0xff]  }
 0x474   : > { %v3929_v1 = vmul.f32 %v9139_v62, %v9413_v11  ;;  %v9947_v28 = vrot.slane %v9436_v31, 3  ;;  %v9485_v51 = vrot.slane %v4385_v43, %v10047_v24  ;;  %2757 = vmatpush1.bf16.msra.mxu0 %v6902_v22  ;;  %v6910_v43 = vld [vmem:[#allocation4 + $0x144] ss:$8 sps:$4 sm:$0xff]   ;;  %v4142_v26 = vrot.slane %v9398_v2, %v10048_v20  ;;  %v6908_v20 = vld [vmem:[#allocation4 + $0x140] ss:$8 sps:$4 sm:$0xff]  }
 0x475   : > { %3852 = vst [vmem:[#allocation2 + $0x48] sm:$0xff] %v9428_v55  ;;  %v9441_v21 = vmax.f32 %v3830_v45, 0.0  ;;  %v9445_v52 = vmul.f32 %v9381_v5, %v9428_v55  ;;  %v6905_v45 = vld [vmem:[#allocation4 + $0x150] ss:$8 sps:$4 sm:$0xff]   ;;  %2758 = vmatprep.subr.bf16.mxu0 %v6907_v27  ;;  %v4358_v39 = vrot.slane %v4335_v61, 6  ;;  %v4109_v33 = vrot.slane %v9425_v60, 3 }
 0x476   : > { %v6913_v61 = vld [vmem:[#allocation4 + $0x134] ss:$8 sps:$4 sm:$0xff]  }
 0x477   : > { %3853 = vst [vmem:[#allocation2 + $0x50] sm:$0xff] %v9441_v21  ;;  %v9457_v56 = vmul.f32 %v9374_v38, %v9441_v21  ;;  %4029 = vrot.lane.b32.xlu0 %v4007_v32, %s7336_s13  ;;  %3944 = vrot.lane.b32.xlu1 %v3929_v1, %s7340_s26  ;;  %v9949_v32 = vrot.slane %v9470_v8, 3  ;;  %v4350_v2 = vrot.slane %v9445_v52, 6  ;;  %v4097_v52 = vmul.f32 %v9328_v42, %v9413_v11 }
 0x478   : > { %v4293_v3 = vld [vmem:[#allocation2 + $0x28] sm:$0xf8]  ;;  %2759 = vmatpush1.bf16.msra.mxu0 %v6905_v45  ;;  %v9536_v60 = vadd.f32 %v4109_v33, %v9366_v14 }
 0x479   : > { %v9465_v7 = vmul.f32 %v9450_v44, %v4293_v3  ;;  %v9482_v29 = vmul.f32 %v9280_v37, %v4293_v3  ;;  %2760 = vmatprep.subr.bf16.mxu0 %v6910_v43  ;;  %v9540_v43 = vmul.f32 %v9405_v46, %v9428_v55  ;;  %v9552_v46 = vsel %vm3066_vm8, %v4350_v2, %v4356_v50 }
 0x47a   : > { %v4294_v47 = vld [vmem:[#allocation2 + $0x30] sm:$0xf8] }
 0x47b   : > { %v9475_v6 = vmul.f32 %v9374_v38, %v4294_v47  ;;  %v9948_v16 = vrot.slane %v9465_v7, 6  ;;  %4167 = vrot.lane.b32.xlu1 %v9947_v28, %s7340_s26  ;;  %v9496_v1 = vmul.f32 %v9485_v51, %v4294_v47  ;;  %v9503_v38 = vsel %vm3998_vm11, %v9280_v37, %v9289_v18 }
 0x47c   : > { %v9950_v22 = vrot.slane %v9482_v29, 6  ;;  %v9509_v28 = vld [vmem:[#allocation2 + $0x48] sm:$0x1f]  ;;  %v9512_v27 = vmul.f32 %v9503_v38, %v4294_v47  ;;  %v4352_v18 = vrot.slane %v9457_v56, 6  ;;  %v9523_v47 = vrot.slane %v4142_v26, %v10047_v24  ;;  %2761 = vmatpush1.bf16.msra.mxu0 %v6908_v20 }
 0x47d   : > { %4418 = vrot.lane.b32.xlu0 %v9948_v16, %s7340_s26  ;;  %v9951_v16 = vrot.slane %v9496_v1, 6  ;;  %v9528_v56 = vmul.f32 %v9381_v5, %v4293_v3  ;;  %v3930_v45 = vmul.f32 %v9123_v25, %v9509_v28  ;;  %v9544_v26 = vmul.f32 %v9328_v42, %v9441_v21  ;;  %2762 = vmatprep.subr.bf16.mxu0 %v6913_v61 }
 0x47e   : > { %v9955_v5 = vrot.slane %v9512_v27, 6  ;;  %v4110_v3 = vrot.slane %v4097_v52, 3  ;;  %v9953_v25 = vrot.slane %v9540_v43, 3  ;;  %v9555_v42 = vsel %vm3066_vm8, %v4352_v18, %v4358_v39 }
 0x47f   : > { %4250 = vrot.lane.b32.xlu1 %v9949_v32, %s7336_s13  ;;  %v9954_v14 = vrot.slane %v9544_v26, 3  ;;  %v9557_v32 = vld [vmem:[#allocation2 + $0x50] sm:$0x1f]  ;;  %v10051_v52 = vrot.slane %v9475_v6, 6  ;;  %v4009_v50 = vmul.f32 %v9188_v17, %v9509_v28 }
 0x480   : > { %v9560_v20 = vadd.f32 %v4110_v3, %v9368_v63  ;;  %v9579_v63 = vmul.f32 %v9523_v47, %v9413_v11  ;;  %v9584_v39 = vsel %vm1705_vm10, %v4109_v33, %v9953_v25  ;;  %v3931_v17 = vmul.f32 %v9139_v62, %v9557_v32  ;;  %v6916_v25 = vld [vmem:[#allocation4 + $0x124] ss:$8 sps:$4 sm:$0xff]  }
 0x481   : > { %4514 = vrot.lane.b32.xlu0 %v9950_v22, %s7336_s13  ;;  %v6911_v22 = vld [vmem:[#allocation4 + $0x130] ss:$8 sps:$4 sm:$0xff]   ;;  %v4010_v62 = vmul.f32 %v9207_v57, %v9557_v32  ;;  %v6920_v57 = vld [vmem:[#allocation4 + $0x100] ss:$8 sps:$4 sm:$0xff]  }
 0x482   : > { %2763 = vmatpush1.bf16.msra.mxu0 %v6911_v22  ;;  %v4232_v22 = vmul.f32 %v9215_v30, %v9428_v55 }
 0x483   : > { %4420 = vrot.lane.b32.xlu1 %v9951_v16, %s7340_s26  ;;  %v9952_v16 = vrot.slane %v9528_v56, 6  ;;  %2764 = vmatprep.subr.bf16.mxu0 %v6916_v25 }
 0x485   : > { %3946 = vrot.lane.b32.xlu0 %v3930_v45, %s7340_s26  ;;  %v9565_v45 = vsel %vm3066_vm8, %v10051_v52, %v4352_v18  ;;  %v9570_v61 = vsel %vm3066_vm8, %v9952_v16, %v4350_v2  ;;  %v9589_v2 = vsel %vm1705_vm10, %v4110_v3, %v9954_v14  ;;  %v4225_v18 = vsel %vm3998_vm11, %v9215_v30, %v9240_v59  ;;  %v6914_v16 = vld [vmem:[#allocation4 + $0x120] ss:$8 sps:$4 sm:$0xff]   ;;  %v6919_v3 = vld [vmem:[#allocation4 + $0x114] ss:$8 sps:$4 sm:$0xff]   ;;  %v6922_v14 = vld [vmem:[#allocation4 + $0x104] ss:$8 sps:$4 sm:$0xff]  }
 0x486   : > { %v9956_v52 = vrot.slane %v9579_v63, 3  ;;  %v4230_v33 = vmul.f32 %v4225_v18, %v9413_v11  ;;  %v4155_v59 = vmul.f32 %v9410_v13, %v9428_v55  ;;  %2765 = vmatpush1.bf16.msra.mxu0 %v6914_v16  ;;  %v4244_v30 = vrot.slane %v4232_v22, 3  ;;  %v6925_v13 = vld [vmem:[#allocation4 + $0x1f4] ss:$8 sps:$4 sm:$0xff]  }
 0x487   : > { %4516 = vrot.lane.b32.xlu1 %v9955_v5, %s7336_s13  ;;  %2766 = vmatprep.subr.bf16.mxu0 %v6919_v3  ;;  %v10052_v16 = vrot.slane %v9470_v8, 3  ;;  %v6923_v3 = vld [vmem:[#allocation4 + $0x1f0] ss:$8 sps:$4 sm:$0xff]  }
 0x488   : > { %v4163_v5 = vrot.slane %v4155_v59, 3  ;;  %v10053_v59 = vrot.slane %v9465_v7, 6 }
 0x489   : > { %4033 = vrot.lane.b32.xlu0 %v4009_v50, %s7336_s13  ;;  %v6917_v50 = vld [vmem:[#allocation4 + $0x110] ss:$8 sps:$4 sm:$0xff]   ;;  %v4245_v25 = vsel %vm1705_vm10, %v10052_v16, %v4244_v30 }
 0x48a   : > { %2767 = vmatpush1.bf16.msra.mxu0 %v6917_v50 }
 0x48b   : > { %3948 = vrot.lane.b32.xlu1 %v3931_v17, %s7340_s26  ;;  %v4242_v17 = vrot.slane %v4230_v33, 3  ;;  %2768 = vmatprep.subr.bf16.mxu0 %v6922_v14  ;;  %v4400_v33 = vmul.f32 %v9450_v44, %v9462_v4  ;;  %v4487_v14 = vmul.f32 %v9280_v37, %v9462_v4  ;;  %v6931_v4 = vld [vmem:[#allocation4 + $0x1d4] ss:$8 sps:$4 sm:$0xff]  }
 0x48d   : > { %4169 = vrot.lane.b32.xlu0 %v9956_v52, %s7340_s26  ;;  %v4398_v52 = vmul.f32 %v9450_v44, %v9428_v55  ;;  %v4414_v50 = vrot.slane %v4400_v33, 6  ;;  %v4484_v44 = vmul.f32 %v9280_v37, %v9428_v55  ;;  %v4508_v7 = vrot.slane %v4487_v14, 6 }
 0x48e   : > { %2769 = vmatpush1.bf16.msra.mxu0 %v6920_v57  ;;  %v10055_v37 = vrot.slane %v9482_v29, 6  ;;  %v4401_v14 = vmul.f32 %v9485_v51, %v9472_v0 }
 0x48f   : > { %4035 = vrot.lane.b32.xlu1 %v4010_v62, %s7336_s13  ;;  %v4410_v22 = vrot.slane %v4398_v52, 6  ;;  %2770 = vmatprep.subr.bf16.mxu0 %v6925_v13  ;;  %v6928_v62 = vld [vmem:[#allocation4 + $0x1e4] ss:$8 sps:$4 sm:$0xff]   ;;  %v10054_v52 = vrot.slane %v9436_v31, 3  ;;  %v6926_v13 = vld [vmem:[#allocation4 + $0x1e0] ss:$8 sps:$4 sm:$0xff]  }
 0x491   : > { %4252 = vrot.lane.b32.xlu0 %v4242_v17, %s7336_s13  ;;  %v4411_v8 = vsel %vm3066_vm8, %v10053_v59, %v4410_v22  ;;  %v4164_v57 = vsel %vm1705_vm10, %v10054_v52, %v4163_v5  ;;  %v4415_v16 = vsel %vm3066_vm8, %v4410_v22, %v4414_v50  ;;  %v4399_v22 = vmul.f32 %v9485_v51, %v9441_v21  ;;  %v6932_v59 = vld [vmem:[#allocation4 + $0x1c0] ss:$8 sps:$4 sm:$0xff]   ;;  %v6937_v50 = vld [vmem:[#allocation4 + $0x1b4] ss:$8 sps:$4 sm:$0xff]   ;;  %v6935_v51 = vld [vmem:[#allocation4 + $0x1b0] ss:$8 sps:$4 sm:$0xff]  }
 0x492   : > { %2771 = vmatpush2.bf16.msra.mxu0 %v6923_v3  ;;  %v6934_v3 = vld [vmem:[#allocation4 + $0x1c4] ss:$8 sps:$4 sm:$0xff]  }
 0x493   : > { %4175 = vrot.lane.b32.xlu1 %v4163_v5, %s7340_s26  ;;  %2772 = vmatprep.subr.bf16.mxu0 %v6928_v62  ;;  %v6929_v5 = vld [vmem:[#allocation4 + $0x1d0] ss:$8 sps:$4 sm:$0xff]  }
 0x495   : > { %4256 = vrot.lane.b32.xlu0 %v4245_v25, %s7336_s13  ;;  %v4502_v25 = vrot.slane %v4484_v44, 6  ;;  %v10056_v44 = vrot.slane %v9496_v1, 6 }
 0x496   : > { %2773 = vmatpush2.bf16.msra.mxu0 %v6926_v13  ;;  %v4488_v13 = vmul.f32 %v9503_v38, %v9472_v0 }
 0x497   : > { %4262 = vrot.lane.b32.xlu1 %v4244_v30, %s7336_s13  ;;  %v4233_v30 = vmul.f32 %v4225_v18, %v9441_v21  ;;  %v4503_v31 = vsel %vm3066_vm8, %v10055_v37, %v4502_v25  ;;  %v4156_v18 = vmul.f32 %v9523_v47, %v9441_v21  ;;  %2774 = vmatprep.subr.bf16.mxu0 %v6931_v4  ;;  %v4412_v47 = vrot.slane %v4399_v22, 6  ;;  %v6946_v22 = vld [vmem:[#allocation4 + $0x184] ss:$8 sps:$4 sm:$0xff]  }
 0x498   : > { %v4509_v62 = vsel %vm3066_vm8, %v4502_v25, %v4508_v7  ;;  %v6938_v7 = vld [vmem:[#allocation4 + $0x1a0] ss:$8 sps:$4 sm:$0xff]   ;;  %v4510_v37 = vrot.slane %v4488_v13, 6 }
 0x499   : > { %4422 = vrot.lane.b32.xlu0 %v4411_v8, %s7340_s26  ;;  %v4246_v33 = vrot.slane %v4233_v30, 3  ;;  %v4165_v8 = vrot.slane %v4156_v18, 3  ;;  %v4413_v52 = vsel %vm3066_vm8, %v10056_v44, %v4412_v47  ;;  %v6940_v30 = vld [vmem:[#allocation4 + $0x1a4] ss:$8 sps:$4 sm:$0xff]  }
 0x49a   : > { %2775 = vmatpush2.bf16.msra.mxu0 %v6929_v5 }
 0x49b   : > { %4171 = vrot.lane.b32.xlu1 %v4164_v57, %s7340_s26  ;;  %v4247_v29 = vsel %vm1705_vm10, %v4242_v17, %v4246_v33  ;;  %2776 = vmatprep.subr.bf16.mxu0 %v6934_v3  ;;  %v4416_v57 = vrot.slane %v4401_v14, 6  ;;  %v4485_v17 = vmul.f32 %v9503_v38, %v9441_v21  ;;  %v6941_v38 = vld [vmem:[#allocation4 + $0x190] ss:$8 sps:$4 sm:$0xff]   ;;  %v9691_v14 = vpop.permute.xlu0 %4260 }
 0x49d   : > { %4426 = vrot.lane.b32.xlu0 %v4415_v16, %s7340_s26  ;;  %v4417_v4 = vsel %vm3066_vm8, %v4412_v47, %v4416_v57  ;;  %v4504_v1 = vrot.slane %v4485_v17, 6  ;;  %v10057_v16 = vrot.slane %v9579_v63, 3  ;;  %v10058_v63 = vrot.slane %v9512_v27, 6  ;;  %v9687_v27 = vpop.permute.xlu1 %4254 }
 0x49e   : > { %2777 = vmatpush2.bf16.msra.mxu0 %v6932_v59 }
 0x49f   : > { %4520 = vrot.lane.b32.xlu1 %v4503_v31, %s7336_s13  ;;  %2778 = vmatprep.subr.bf16.mxu0 %v6937_v50  ;;  %v4166_v25 = vsel %vm1705_vm10, %v10057_v16, %v4165_v8  ;;  %v6424_v31 = vld [vmem:[%s9895_s6 + $0x6] sm:$0x3]  ;;  %v4511_v0 = vsel %vm3066_vm8, %v4504_v1, %v4510_v37  ;;  %v4505_v18 = vsel %vm3066_vm8, %v10058_v63, %v4504_v1 }
 0x4a0   : > { %v4560_v5 = vrot.slane %v6424_v31, %v10045_v12  ;;  %v4564_v3 = vrot.slane %v6424_v31, %v10047_v24 }
 0x4a1   : > { %4526 = vrot.lane.b32.xlu0 %v4509_v62, %s7336_s13  ;;  %v6944_v62 = vld [vmem:[#allocation4 + $0x180] ss:$8 sps:$4 sm:$0xff]  }
 0x4a2   : > { %2779 = vmatpush2.bf16.msra.mxu0 %v6935_v51  ;;  %v4292_v51 = vld [vmem:[#allocation2 + $0x20] sm:$0xf8] }
 0x4a3   : > { %4258 = vrot.lane.b32.xlu1 %v4247_v29, %s7336_s13  ;;  %2780 = vmatprep.subr.bf16.mxu0 %v6940_v30  ;;  %v9689_v29 = vpop.permute.xlu1 %4266  ;;  %v9709_v16 = vmul.f32 %v9376_v10, %v4292_v51  ;;  %v7203_v51 = vld [vmem:[#allocation2 + $0x8] sm:$0xff] }
 0x4a5   : > { %4177 = vrot.lane.b32.xlu0 %v4165_v8, %s7340_s26 }
 0x4a6   : > { %2781 = vmatpush2.bf16.msra.mxu0 %v6938_v7 }
 0x4a7   : > { %4424 = vrot.lane.b32.xlu1 %v4413_v52, %s7340_s26  ;;  %v9693_v59 = vpop.permute.xlu1 %4524 }
 0x4a9   : > { %4264 = vrot.lane.b32.xlu0 %v4246_v33, %s7336_s13  ;;  %v6943_v33 = vld [vmem:[#allocation4 + $0x194] ss:$8 sps:$4 sm:$0xff]  }
 0x4aa   : > { %2782 = vmatprep.subr.bf16.mxu0 %v6943_v33 }
 0x4ab   : > { %4428 = vrot.lane.b32.xlu1 %v4417_v4, %s7340_s26  ;;  %2783 = vmatpush2.bf16.msra.mxu0 %v6941_v38  ;;  %v4345_v38 = vrot.slane %v9709_v16, 6 }
 0x4ac   : > { %2784 = vmatprep.subr.bf16.mxu0 %v6946_v22 }
 0x4ad   : > { %4173 = vrot.lane.b32.xlu0 %v4166_v25, %s7340_s26 }
 0x4af   : > { %4528 = vrot.lane.b32.xlu1 %v4511_v0, %s7336_s13  ;;  %2785 = vmatpush2.bf16.msra.mxu0 %v6944_v62 }
 0x4b1   : > { %4530 = vrot.lane.b32.xlu0 %v9343_v48, %s7336_s13  ;;  %v6949_v48 = vld [vmem:[#allocation4 + $0x374] ss:$8 sps:$4 sm:$0xff]  }
 0x4b2   : > { %4866 = vmatprep.subr.bf16.mxu0 %v6949_v48  ;;  %v4295_v48 = vld [vmem:[#allocation2 + $0x60] sm:$0x7] }
 0x4b3   : > { %4565 = vrot.lane.b32.xlu1 %v4560_v5, %s7340_s26 }
 0x4b5   : > { %4522 = vrot.lane.b32.xlu0 %v4505_v18, %s7336_s13  ;;  %s6645_s13 = sshll.u32 %s7424_s21, 9  ;;  %s7256_s21 = scalar_lea.vmem %s9839_s30, 512 }
 0x4b6   : > { %p7257_p10 = scmp.ne.s32.totalorder %s9839_s30, %s7256_s21  ;;  %p7264_p0 = scmp.lt.s32.totalorder %s7262_s25, %s7256_s21 }
 0x4b7   : > { %2585 = vrot.lane.b32.xlu1 %v9335_v54, %s7338_s12  ;;  %v9695_v54 = vpop.permute.xlu0 %4518 }
 0x4b8   : > { %p7258_p12 = pnand %p7257_p10, %p7441_p5  ;;  %p7265_p1 = por %p7264_p0, %p7263_p11 }
 0x4b9   : > { %4567 = vrot.lane.b32.xlu0 %v4564_v3, %s7340_s26  ;;  %s9844_s26 = scalar_lea.hbm %s9900_s11, %s6645_s13 }
 0x4ba   : > { %p7259_p8 = pneg %p7258_p12 }
 0x4bb   : > { %2583 = vrot.lane.b32.xlu1 %v9338_v49, %s7338_s12  ;;  %v3904_v49 = vmul.f32 %v9321_v41, %v9413_v11 }
 0x4bc   : > { %p7266_p3 = pnand %p7265_p1, %p7259_p8 }
 0x4bd   : > { %2587 = vrot.lane.b32.xlu0 %v9332_v34, %s7338_s12  ;;  %v3903_v34 = vmul.f32 %v9358_v15, %v9407_v53 }
 0x4e5   : > { %v9697_v8 = vpop.permute.xlu1 %4027  ;;  %v3943_v47 = vpop.permute.xlu0 %3942 }
 0x4e9   : > { %v3945_v50 = vpop.permute.xlu1 %3944  ;;  %v4030_v44 = vpop.permute.xlu0 %4029 }
 0x4ea   : > { %v3951_v52 = vsel %vm3894_vm12, %v3943_v47, %v3945_v50  ;;  %v3967_v57 = vadd.f32 %v3945_v50, %v3904_v49  ;;  %v4042_v17 = vsel %vm1055_vm6, %v4030_v44, %v9372_v9  ;;  %v4041_v13 = vsel %vm1055_vm6, %v9697_v8, %v4030_v44 }
 0x4eb   : > { %v3966_v30 = vadd.f32 %v3951_v52, %v3903_v34  ;;  %v3907_v34 = vmul.f32 %v9321_v41, %v9557_v32  ;;  %v3906_v44 = vmul.f32 %v9358_v15, %v9509_v28 }
 0x4ec   : > { %v4059_v4 = vadd.f32 %v4042_v17, %v3967_v57 }
 0x4ed   : > { %v4058_v1 = vadd.f32 %v4041_v13, %v3966_v30  ;;  %v4168_v7 = vpop.permute.xlu1 %4167  ;;  %v4330_v30 = vmul.f32 %v7203_v51, %v9376_v10  ;;  %v4333_v13 = vmul.f32 %v9376_v10, %v4295_v48 }
 0x4ee   : > { %v9712_v25 = vadd.f32 %v9589_v2, %v4059_v4  ;;  %v4191_v9 = vadd.f32 %v4168_v7, %v9392_v23 }
 0x4ef   : > { %v9714_v37 = vpop.permute.xlu0 %4418  ;;  %v9717_v31 = vadd.f32 %v9584_v39, %v4058_v1  ;;  %v3866_v39 = vld [vmem:[#allocation2 + $0x40] sm:$0x1f] }
 0x4f0   : > { %v3905_v49 = vmul.f32 %v9317_v58, %v3866_v39 }
 0x4f1   : > { %v4251_v0 = vpop.permute.xlu1 %4250 }
 0x4f2   : > { %v4283_v33 = vadd.f32 %v4251_v0, %v4191_v9 }
 0x4f3   : > { %v9721_v5 = vpop.permute.xlu0 %4514 }
 0x4f4   : > { %v4369_v63 = vadd.f32 %v4345_v38, %v4283_v33  ;;  %v3902_v33 = vmul.f32 %v7203_v51, %v9317_v58 }
 0x4f5   : > { %v9725_v18 = vpop.permute.xlu1 %4420 }
 0x4f6   : > { %v9728_v2 = vadd.f32 %v9714_v37, %v4369_v63 }
 0x4f7   : > { %v3947_v3 = vpop.permute.xlu0 %3946 }
 0x4f8   : > { %v3968_v57 = vadd.f32 %v3947_v3, %v3905_v49  ;;  %v3965_v49 = vadd.f32 %v3943_v47, %v3902_v33  ;;  %v10061_v47 = vrot.slane %v9528_v56, 6 }
 0x4f9   : > { %v9730_v62 = vpop.permute.xlu1 %4516 }
 0x4fa   : > { %v4057_v51 = vadd.f32 %v9697_v8, %v3965_v49 }
 0x4fb   : > { %v4034_v22 = vpop.permute.xlu0 %4033 }
 0x4fc   : > { %v4060_v63 = vadd.f32 %v4034_v22, %v3968_v57 }
 0x4fd   : > { %v3949_v23 = vpop.permute.xlu1 %3948 }
 0x4fe   : > { %v3952_v50 = vsel %vm3894_vm12, %v3947_v3, %v3949_v23  ;;  %v3970_v1 = vadd.f32 %v3949_v23, %v3907_v34 }
 0x4ff   : > { %v4170_v52 = vpop.permute.xlu0 %4169  ;;  %v3969_v4 = vadd.f32 %v3952_v50, %v3906_v44  ;;  %v4348_v44 = vrot.slane %v4330_v30, 6 }
 0x500   : > { %v4179_v17 = vsel %vm3894_vm12, %v4168_v7, %v4170_v52  ;;  %v4193_v32 = vadd.f32 %v4170_v52, %v9560_v20  ;;  %v4132_v20 = vadd.f32 %v9385_v36, %v4060_v63  ;;  %v4354_v52 = vrot.slane %v4333_v13, 6 }
 0x501   : > { %v4036_v9 = vpop.permute.xlu1 %4035  ;;  %v4192_v28 = vadd.f32 %v4179_v17, %v9536_v60 }
 0x502   : > { %v4043_v41 = vsel %vm1055_vm6, %v4034_v22, %v4036_v9  ;;  %v4044_v15 = vsel %vm1055_vm6, %v4036_v9, %v9370_v35  ;;  %v10059_v22 = vrot.slane %v9540_v43, 3  ;;  %v10060_v35 = vrot.slane %v9544_v26, 3 }
 0x503   : > { %v4061_v7 = vadd.f32 %v4043_v41, %v3969_v4  ;;  %v4062_v3 = vadd.f32 %v4044_v15, %v3970_v1  ;;  %v4253_v39 = vpop.permute.xlu0 %4252  ;;  %v4533_v26 = vsel %vm1055_vm6, %v9730_v62, %v9695_v54  ;;  %v4355_v13 = vsel %vm3066_vm8, %v4348_v44, %v4354_v52 }
 0x504   : > { %v4268_v10 = vsel %vm1055_vm6, %v4251_v0, %v4253_v39  ;;  %v4269_v23 = vsel %vm1055_vm6, %v4253_v39, %v9687_v27  ;;  %v10062_v0 = vrot.slane %v9475_v6, 6  ;;  %v4129_v6 = vadd.f32 %v9385_v36, %v4057_v51 }
 0x505   : > { %v4284_v58 = vadd.f32 %v4268_v10, %v4192_v28  ;;  %v4285_v48 = vadd.f32 %v4269_v23, %v4193_v32  ;;  %v4176_v50 = vpop.permute.xlu1 %4175  ;;  %v4133_v34 = vadd.f32 %v10059_v22, %v4061_v7  ;;  %v4134_v60 = vadd.f32 %v10060_v35, %v4062_v3 }
 0x506   : > { %v4197_v4 = vadd.f32 %v4176_v50, %v4132_v20  ;;  %v4349_v28 = vsel %vm3066_vm8, %v4345_v38, %v4348_v44 }
 0x507   : > { %v4370_v57 = vadd.f32 %v10061_v47, %v4284_v58  ;;  %v4371_v17 = vadd.f32 %v10062_v0, %v4285_v48  ;;  %v4257_v27 = vpop.permute.xlu0 %4256 }
 0x509   : > { %v4444_v43 = vadd.f32 %v9725_v18, %v4371_v17  ;;  %v4263_v1 = vpop.permute.xlu1 %4262 }
 0x50a   : > { %v4289_v9 = vadd.f32 %v4263_v1, %v4197_v4 }
 0x50b   : > { %v4423_v30 = vpop.permute.xlu0 %4422  ;;  %v9765_v56 = vadd.f32 %v4533_v26, %v4444_v43 }
 0x50c   : > { %v4375_v33 = vadd.f32 %v4355_v13, %v4289_v9 }
 0x50d   : > { %v4172_v63 = vpop.permute.xlu1 %4171 }
 0x50e   : > { %v4194_v41 = vadd.f32 %v4172_v63, %v4129_v6 }
 0x50f   : > { %v4427_v8 = vpop.permute.xlu0 %4426 }
 0x510   : > { %v4286_v15 = vadd.f32 %v4257_v27, %v4194_v41 }
 0x511   : > { %v4521_v32 = vpop.permute.xlu1 %4520 }
 0x512   : > { %v4372_v7 = vadd.f32 %v4349_v28, %v4286_v15 }
 0x513   : > { %v4527_v54 = vpop.permute.xlu0 %4526 }
 0x514   : > { %v4445_v47 = vadd.f32 %v4423_v30, %v4372_v7 }
 0x515   : > { %v4259_v3 = vpop.permute.xlu1 %4258 }
 0x516   : > { %v4270_v51 = vsel %vm1055_vm6, %v4257_v27, %v4259_v3 }
 0x517   : > { %v4178_v39 = vpop.permute.xlu0 %4177 }
 0x518   : > { %v4181_v49 = vsel %vm3894_vm12, %v4176_v50, %v4178_v39  ;;  %v4199_v58 = vadd.f32 %v4178_v39, %v4134_v60  ;;  %v4271_v60 = vsel %vm1055_vm6, %v4259_v3, %v9691_v14 }
 0x519   : > { %v4425_v10 = vpop.permute.xlu1 %4424  ;;  %v4198_v23 = vadd.f32 %v4181_v49, %v4133_v34  ;;  %v4532_v49 = vsel %vm1055_vm6, %v9721_v5, %v9730_v62 }
 0x51b   : > { %v4265_v36 = vpop.permute.xlu0 %4264 }
 0x51c   : > { %v4272_v48 = vsel %vm1055_vm6, %v4263_v1, %v4265_v36  ;;  %v4273_v22 = vsel %vm1055_vm6, %v4265_v36, %v9689_v29  ;;  %v4448_v29 = vadd.f32 %v4427_v8, %v4375_v33  ;;  %v4547_v1 = vadd.f32 %v9721_v5, %v9728_v2 }
 0x51d   : > { %v4290_v35 = vadd.f32 %v4272_v48, %v4198_v23  ;;  %v4291_v16 = vadd.f32 %v4273_v22, %v4199_v58  ;;  %v4429_v20 = vpop.permute.xlu1 %4428 }
 0x51e   : > { %v4553_v26 = vadd.f32 %v4527_v54, %v4448_v29  ;;  %v4432_v13 = vsel %vm3894_vm12, %v4427_v8, %v4429_v20 }
 0x51f   : > { %v4376_v38 = vadd.f32 %v9552_v46, %v4290_v35  ;;  %v4377_v44 = vadd.f32 %v9555_v42, %v4291_v16  ;;  %v4174_v52 = vpop.permute.xlu0 %4173  ;;  %v4430_v46 = vsel %vm3894_vm12, %v9714_v37, %v9725_v18 }
 0x520   : > { %v4180_v50 = vsel %vm3894_vm12, %v4172_v63, %v4174_v52  ;;  %v4196_v34 = vadd.f32 %v4174_v52, %v9712_v25  ;;  %v4550_v25 = vadd.f32 %v4521_v32, %v4445_v47  ;;  %v4443_v9 = vadd.f32 %v4430_v46, %v4370_v57  ;;  %v6947_v46 = vld [vmem:[#allocation4 + $0x370] ss:$8 sps:$4 sm:$0xff]  }
 0x521   : > { %v4195_v0 = vadd.f32 %v4180_v50, %v9717_v31  ;;  %v4529_v17 = vpop.permute.xlu1 %4528  ;;  %v4431_v31 = vsel %vm3894_vm12, %v4423_v30, %v4425_v10  ;;  %v4449_v41 = vadd.f32 %v4432_v13, %v4376_v38  ;;  %v4450_v8 = vadd.f32 %v4429_v20, %v4377_v44 }
 0x522   : > { %v4288_v4 = vadd.f32 %v4271_v60, %v4196_v34  ;;  %v4536_v15 = vsel %vm1055_vm6, %v4527_v54, %v4529_v17  ;;  %v4548_v58 = vadd.f32 %v4532_v49, %v4443_v9 }
 0x523   : > { %v4287_v42 = vadd.f32 %v4270_v51, %v4195_v0  ;;  %v4531_v43 = vpop.permute.xlu0 %4530  ;;  %v4554_v36 = vadd.f32 %v4536_v15, %v4449_v41  ;;  %v6950_v41 = vld [vmem:[#allocation4 + $0x360] ss:$8 sps:$4 sm:$0xff]  }
 0x524   : > { %v4374_v14 = vadd.f32 %v9565_v45, %v4288_v4  ;;  %v4537_v2 = vsel %vm1055_vm6, %v4529_v17, %v4531_v43 }
 0x525   : > { %v4566_v27 = vpop.permute.xlu1 %4565  ;;  %v4373_v6 = vadd.f32 %v9570_v61, %v4287_v42  ;;  %v4555_v48 = vadd.f32 %v4537_v2, %v4450_v8 }
 0x526   : > { %v4573_v33 = vadd.f32 %v4566_v27, %v4547_v1  ;;  %v4576_v63 = vadd.f32 %v4566_v27, %v4550_v25  ;;  %v4579_v37 = vadd.f32 %v4566_v27, %v4553_v26  ;;  %v4447_v18 = vadd.f32 %v4425_v10, %v4374_v14 }
 0x527   : > { %v4446_v28 = vadd.f32 %v4431_v31, %v4373_v6  ;;  %v4523_v7 = vpop.permute.xlu0 %4522 }
 0x528   : > { %v4582_v45 = vmax.f32 %v4573_v33, 0.0  ;;  %v4585_v57 = vmax.f32 %v4576_v63, 0.0  ;;  %v4588_v3 = vmax.f32 %v4579_v37, 0.0  ;;  %v4534_v30 = vsel %vm1055_vm6, %v4521_v32, %v4523_v7 }
 0x529   : > { %v4535_v61 = vsel %vm1055_vm6, %v4523_v7, %v9693_v59  ;;  %v2586_v39 = vpop.permute.xlu1 %2585  ;;  %v4551_v22 = vadd.f32 %v4534_v30, %v4446_v28 }
 0x52a   : > { %v4626_v10 = vpack.c.bf16 %v4585_v57, %v4582_v45  ;;  %v4629_v54 = vpack.c.bf16 %v4588_v3, %v4588_v3  ;;  %v4552_v23 = vadd.f32 %v4535_v61, %v4447_v18  ;;  %v6955_v45 = vld [vmem:[#allocation4 + $0x354] ss:$8 sps:$4 sm:$0xff]  }
 0x52b   : > { %v4568_v35 = vpop.permute.xlu0 %4567 }
 0x52c   : > { %v4645_v16 = vshrl.u32 %v4626_v10, 16  ;;  %v4648_v38 = vshll.u32 %v4626_v10, 16  ;;  %v4653_v32 = vshrl.u32 %v4629_v54, 16  ;;  %v4656_v20 = vshll.u32 %v4629_v54, 16 }
 0x52d   : > { %v4569_v44 = vsel %vm3894_vm12, %v4566_v27, %v4568_v35  ;;  %v4575_v59 = vadd.f32 %v4568_v35, %v9765_v56  ;;  %v4578_v52 = vadd.f32 %v4568_v35, %v4552_v23  ;;  %v4581_v47 = vadd.f32 %v4568_v35, %v4555_v48  ;;  %v2584_v50 = vpop.permute.xlu1 %2583  ;;  %v6952_v56 = vld [vmem:[#allocation4 + $0x364] ss:$8 sps:$4 sm:$0xff]  }
 0x52e   : > { %v4655_v5 = vrot.slane %v4653_v32, 2  ;;  %v4658_v62 = vrot.slane %v4656_v20, 3  ;;  %v4574_v34 = vadd.f32 %v4569_v44, %v4548_v58  ;;  %v4577_v60 = vadd.f32 %v4569_v44, %v4551_v22  ;;  %v6956_v20 = vld [vmem:[#allocation4 + $0x340] ss:$8 sps:$4 sm:$0xff]  }
 0x52f   : > { %v4580_v0 = vadd.f32 %v4569_v44, %v4554_v36  ;;  %v4584_v17 = vmax.f32 %v4575_v59, 0.0  ;;  %v4587_v29 = vmax.f32 %v4578_v52, 0.0  ;;  %v4590_v51 = vmax.f32 %v4581_v47, 0.0  ;;  %v2588_v4 = vpop.permute.xlu0 %2587  ;;  %v6953_v36 = vld [vmem:[#allocation4 + $0x350] ss:$8 sps:$4 sm:$0xff]  }
 0x530   : > { %v4583_v42 = vmax.f32 %v4574_v34, 0.0  ;;  %v4586_v43 = vmax.f32 %v4577_v60, 0.0  ;;  %v2590_v1 = vsel %vm1096_vm9, %v2584_v50, %v2586_v39  ;;  %v2591_v25 = vsel %vm1096_vm9, %v2586_v39, %v2588_v4  ;;  %v6961_v59 = vld [vmem:[#allocation4 + $0x334] ss:$8 sps:$4 sm:$0xff]   ;;  %v6959_v52 = vld [vmem:[#allocation4 + $0x330] ss:$8 sps:$4 sm:$0xff]  }
 0x531   : > { %v4589_v26 = vmax.f32 %v4580_v0, 0.0  ;;  %v4628_v14 = vpack.c.bf16 %v4587_v29, %v4584_v17  ;;  %v4631_v9 = vpack.c.bf16 %v4590_v51, %v4590_v51  ;;  %2786 = vmatprep.mubr.bf16.mxu0 %v2591_v25  ;;  %v4647_v31 = vrot.slane %v4645_v16, 2  ;;  %v6958_v16 = vld [vmem:[#allocation4 + $0x344] ss:$8 sps:$4 sm:$0xff]   ;;  %v7007_v50 = vld [vmem:[#allocation7 + $0x270] ss:$8 sps:$4 sm:$0xff]  }
 0x532   : > { %v4627_v13 = vpack.c.bf16 %v4586_v43, %v4583_v42  ;;  %2787 = vmatmul.mubr.bf16.vlgmr.msra.gmra.mxu0 %v2590_v1  ;;  %v4650_v27 = vrot.slane %v4648_v38, 3  ;;  %v4659_v6 = vor.u32 %v4658_v62, %v4655_v5  ;;  %v6964_v47 = vld [vmem:[#allocation4 + $0x324] ss:$8 sps:$4 sm:$0xff]   ;;  %v7009_v5 = vld [vmem:[#allocation7 + $0x274] ss:$8 sps:$4 sm:$0xff]  }
 0x533   : > { %v4630_v33 = vpack.c.bf16 %v4589_v26, %v4589_v26  ;;  %v4679_v63 = vshrl.u32 %v4628_v14, 16  ;;  %v4682_v37 = vshll.u32 %v4628_v14, 16  ;;  %v4687_v18 = vshrl.u32 %v4631_v9, 16  ;;  %4867 = vmatpush1.bf16.msra.mxu0 %v6947_v46  ;;  %v6962_v62 = vld [vmem:[#allocation4 + $0x320] ss:$8 sps:$4 sm:$0xff]   ;;  %6045 = vmatprep.subr.bf16.mxu1 %v7009_v5 }
 0x534   : > { %v4690_v15 = vshll.u32 %v4631_v9, 16  ;;  %v4662_v2 = vshrl.u32 %v4627_v13, 16  ;;  %v4665_v28 = vshll.u32 %v4627_v13, 16  ;;  %v4651_v7 = vor.u32 %v4650_v27, %v4647_v31  ;;  %4868 = vmatprep.subr.bf16.mxu0 %v6952_v56  ;;  %v6967_v34 = vld [vmem:[#allocation4 + $0x314] ss:$8 sps:$4 sm:$0xff]   ;;  %6046 = vmatpush1.bf16.msra.mxu1 %v7007_v50 }
 0x535   : > { %v4689_v57 = vrot.slane %v4687_v18, 2  ;;  %v4681_v3 = vrot.slane %v4679_v63, 2  ;;  %v4684_v30 = vrot.slane %v4682_v37, 3  ;;  %v4670_v8 = vshrl.u32 %v4630_v33, 16  ;;  %v7013_v60 = vld [vmem:[#allocation7 + $0x260] ss:$8 sps:$4 sm:$0xff]  }
 0x536   : > { %v4692_v61 = vrot.slane %v4690_v15, 3  ;;  %v4664_v39 = vrot.slane %v4662_v2, 2  ;;  %v4667_v49 = vrot.slane %v4665_v28, 3  ;;  %v4673_v10 = vshll.u32 %v4630_v33, 16  ;;  %v7015_v0 = vld [vmem:[#allocation7 + $0x264] ss:$8 sps:$4 sm:$0xff]  }
 0x537   : > { %v4685_v54 = vor.u32 %v4684_v30, %v4681_v3  ;;  %v4672_v23 = vrot.slane %v4670_v8, 2  ;;  %v4660_v58 = vsel %vm4643_vm13, %v4651_v7, %v4659_v6  ;;  %4869 = vmatpush1.bf16.msra.mxu0 %v6950_v41  ;;  %v6965_v17 = vld [vmem:[#allocation4 + $0x310] ss:$8 sps:$4 sm:$0xff]   ;;  %v6970_v29 = vld [vmem:[#allocation4 + $0x304] ss:$8 sps:$4 sm:$0xff]   ;;  %6047 = vmatprep.subr.bf16.mxu1 %v7015_v0 }
 0x538   : > { %v4693_v48 = vor.u32 %v4692_v61, %v4689_v57  ;;  %v4668_v22 = vor.u32 %v4667_v49, %v4664_v39  ;;  %v4675_v35 = vrot.slane %v4673_v10, 3  ;;  %4870 = vmatprep.subr.bf16.mxu0 %v6955_v45  ;;  %6048 = vmatpush1.bf16.msra.mxu1 %v7013_v60  ;;  %v7019_v51 = vld [vmem:[#allocation7 + $0x250] ss:$8 sps:$4 sm:$0xff]   ;;  %v7021_v4 = vld [vmem:[#allocation7 + $0x254] ss:$8 sps:$4 sm:$0xff]  }
 0x539   : > { %v6968_v46 = vld [vmem:[#allocation4 + $0x300] ss:$8 sps:$4 sm:$0xff]   ;;  %v6973_v42 = vld [vmem:[#allocation4 + $0x3f4] ss:$8 sps:$4 sm:$0xff]   ;;  %6049 = vmatprep.subr.bf16.mxu1 %v7021_v4  ;;  %v7027_v1 = vld [vmem:[#allocation7 + $0x244] ss:$8 sps:$4 sm:$0xff]  }
 0x53a   : > { %v4694_v38 = vsel %vm4643_vm13, %v4685_v54, %v4693_v48  ;;  %v4676_v32 = vor.u32 %v4675_v35, %v4672_v23  ;;  %v7025_v43 = vld [vmem:[#allocation7 + $0x240] ss:$8 sps:$4 sm:$0xff]   ;;  %v6971_v25 = vld [vmem:[#allocation4 + $0x3f0] ss:$8 sps:$4 sm:$0xff]   ;;  %v6976_v56 = vld [vmem:[#allocation4 + $0x3e4] ss:$8 sps:$4 sm:$0xff]  }
 0x53b   : > { %4699 = vrot.lane.b32.xlu1 %v4694_v38, %s7339_s15  ;;  %4871 = vmatpush1.bf16.msra.mxu0 %v6953_v36  ;;  %v7031_v26 = vld [vmem:[#allocation7 + $0x230] ss:$8 sps:$4 sm:$0xff]   ;;  %v7033_v14 = vld [vmem:[#allocation7 + $0x234] ss:$8 sps:$4 sm:$0xff]   ;;  %v6974_v9 = vld [vmem:[#allocation4 + $0x3e0] ss:$8 sps:$4 sm:$0xff]  }
 0x53c   : > { %v4677_v44 = vsel %vm4643_vm13, %v4668_v22, %v4676_v32  ;;  %4872 = vmatprep.subr.bf16.mxu0 %v6958_v16  ;;  %6050 = vmatpush1.bf16.msra.mxu1 %v7019_v51  ;;  %v6979_v31 = vld [vmem:[#allocation4 + $0x3d4] ss:$8 sps:$4 sm:$0xff]   ;;  %v7037_v13 = vld [vmem:[#allocation7 + $0x220] ss:$8 sps:$4 sm:$0xff]   ;;  %v7039_v27 = vld [vmem:[#allocation7 + $0x224] ss:$8 sps:$4 sm:$0xff]  }
 0x53d   : > { %4697 = vrot.lane.b32.xlu0 %v4677_v44, %s7339_s15  ;;  %6051 = vmatprep.subr.bf16.mxu1 %v7027_v1  ;;  %v6977_v6 = vld [vmem:[#allocation4 + $0x3d0] ss:$8 sps:$4 sm:$0xff]   ;;  %v6982_v33 = vld [vmem:[#allocation4 + $0x3c4] ss:$8 sps:$4 sm:$0xff]   ;;  %v7045_v37 = vld [vmem:[#allocation7 + $0x214] ss:$8 sps:$4 sm:$0xff]  }
 0x53e   : > { %v7043_v63 = vld [vmem:[#allocation7 + $0x210] ss:$8 sps:$4 sm:$0xff]   ;;  %v6980_v18 = vld [vmem:[#allocation4 + $0x3c0] ss:$8 sps:$4 sm:$0xff]   ;;  %v6985_v41 = vld [vmem:[#allocation4 + $0x3b4] ss:$8 sps:$4 sm:$0xff]  }
 0x53f   : > { %4873 = vmatpush1.bf16.msra.mxu0 %v6956_v20  ;;  %v7049_v15 = vld [vmem:[#allocation7 + $0x200] ss:$8 sps:$4 sm:$0xff]   ;;  %v7051_v2 = vld [vmem:[#allocation7 + $0x204] ss:$8 sps:$4 sm:$0xff]   ;;  %v6983_v28 = vld [vmem:[#allocation4 + $0x3b0] ss:$8 sps:$4 sm:$0xff]  }
 0x540   : > { %4874 = vmatprep.subr.bf16.mxu0 %v6961_v59  ;;  %6052 = vmatpush1.bf16.msra.mxu1 %v7025_v43  ;;  %v6988_v7 = vld [vmem:[#allocation4 + $0x3a4] ss:$8 sps:$4 sm:$0xff]   ;;  %v7055_v45 = vld [vmem:[#allocation7 + $0x2f0] ss:$8 sps:$4 sm:$0xff]   ;;  %v7057_v57 = vld [vmem:[#allocation7 + $0x2f4] ss:$8 sps:$4 sm:$0xff]  }
 0x541   : > { %4695 = vrot.lane.b32.xlu0 %v4660_v58, %s7339_s15  ;;  %6053 = vmatprep.subr.bf16.mxu1 %v7033_v14  ;;  %v6986_v3 = vld [vmem:[#allocation4 + $0x3a0] ss:$8 sps:$4 sm:$0xff]   ;;  %v6991_v30 = vld [vmem:[#allocation4 + $0x394] ss:$8 sps:$4 sm:$0xff]   ;;  %v7063_v61 = vld [vmem:[#allocation7 + $0x2e4] ss:$8 sps:$4 sm:$0xff]  }
 0x542   : > { %v7061_v8 = vld [vmem:[#allocation7 + $0x2e0] ss:$8 sps:$4 sm:$0xff]   ;;  %v6989_v39 = vld [vmem:[#allocation4 + $0x390] ss:$8 sps:$4 sm:$0xff]   ;;  %v6994_v49 = vld [vmem:[#allocation4 + $0x384] ss:$8 sps:$4 sm:$0xff]  }
 0x543   : > { %4875 = vmatpush1.bf16.msra.mxu0 %v6959_v52  ;;  %v7067_v10 = vld [vmem:[#allocation7 + $0x2d0] ss:$8 sps:$4 sm:$0xff]   ;;  %v7069_v54 = vld [vmem:[#allocation7 + $0x2d4] ss:$8 sps:$4 sm:$0xff]   ;;  %v6992_v23 = vld [vmem:[#allocation4 + $0x380] ss:$8 sps:$4 sm:$0xff]  }
 0x544   : > { %4876 = vmatprep.subr.bf16.mxu0 %v6964_v47  ;;  %6054 = vmatpush1.bf16.msra.mxu1 %v7031_v26  ;;  %v6997_v58 = vld [vmem:[#allocation7 + $0x174] ss:$8 sps:$4 sm:$0xff]   ;;  %v7073_v36 = vld [vmem:[#allocation7 + $0x2c0] ss:$8 sps:$4 sm:$0xff]   ;;  %v7075_v48 = vld [vmem:[#allocation7 + $0x2c4] ss:$8 sps:$4 sm:$0xff]  }
 0x545   : > { %6055 = vmatprep.subr.bf16.mxu1 %v7039_v27  ;;  %v7079_v22 = vld [vmem:[#allocation7 + $0x2b0] ss:$8 sps:$4 sm:$0xff]   ;;  %v7081_v35 = vld [vmem:[#allocation7 + $0x2b4] ss:$8 sps:$4 sm:$0xff]   ;;  %v7085_v16 = vld [vmem:[#allocation7 + $0x2a0] ss:$8 sps:$4 sm:$0xff]  }
 0x546   : > { %v7087_v38 = vld [vmem:[#allocation7 + $0x2a4] ss:$8 sps:$4 sm:$0xff]   ;;  %v7091_v32 = vld [vmem:[#allocation7 + $0x290] ss:$8 sps:$4 sm:$0xff]   ;;  %v7093_v20 = vld [vmem:[#allocation7 + $0x294] ss:$8 sps:$4 sm:$0xff]  }
 0x547   : > { %4877 = vmatpush1.bf16.msra.mxu0 %v6962_v62  ;;  %v7099_v44 = vld [vmem:[#allocation7 + $0x284] ss:$8 sps:$4 sm:$0xff]   ;;  %v7097_v59 = vld [vmem:[#allocation7 + $0x280] ss:$8 sps:$4 sm:$0xff]   ;;  %v6995_v5 = vld [vmem:[#allocation7 + $0x170] ss:$8 sps:$4 sm:$0xff]  }
 0x548   : > { %4878 = vmatprep.subr.bf16.mxu0 %v6967_v34  ;;  %6056 = vmatpush1.bf16.msra.mxu1 %v7037_v13  ;;  %v7000_v34 = vld [vmem:[#allocation7 + $0x164] ss:$8 sps:$4 sm:$0xff]   ;;  %v7141_v0 = vld [vmem:[#allocation7 + $0x474] ss:$8 sps:$4 sm:$0xff]   ;;  %v7001_v51 = vld [vmem:[#allocation7 + $0x150] ss:$8 sps:$4 sm:$0xff]  }
 0x549   : > { %6057 = vmatprep.subr.bf16.mxu1 %v7045_v37  ;;  %v7006_v4 = vld [vmem:[#allocation7 + $0x144] ss:$8 sps:$4 sm:$0xff]   ;;  %v7010_v43 = vld [vmem:[#allocation7 + $0x130] ss:$8 sps:$4 sm:$0xff]   ;;  %v7028_v14 = vld [vmem:[#allocation7 + $0x100] ss:$8 sps:$4 sm:$0xff]  }
 0x54a   : > { %v7018_v1 = vld [vmem:[#allocation7 + $0x124] ss:$8 sps:$4 sm:$0xff]   ;;  %v7040_v27 = vld [vmem:[#allocation7 + $0x1e0] ss:$8 sps:$4 sm:$0xff]  }
 0x54b   : > { %4879 = vmatpush1.bf16.msra.mxu0 %v6965_v17  ;;  %v6998_v17 = vld [vmem:[#allocation7 + $0x160] ss:$8 sps:$4 sm:$0xff]   ;;  %v7030_v26 = vld [vmem:[#allocation7 + $0x104] ss:$8 sps:$4 sm:$0xff]  }
 0x54c   : > { %4880 = vmatprep.subr.bf16.mxu0 %v6970_v29  ;;  %6058 = vmatpush1.bf16.msra.mxu1 %v7043_v63  ;;  %v7003_v29 = vld [vmem:[#allocation7 + $0x154] ss:$8 sps:$4 sm:$0xff]   ;;  %v7042_v13 = vld [vmem:[#allocation7 + $0x1e4] ss:$8 sps:$4 sm:$0xff]   ;;  %v7052_v37 = vld [vmem:[#allocation7 + $0x1c0] ss:$8 sps:$4 sm:$0xff]  }
 0x54d   : > { %6059 = vmatprep.subr.bf16.mxu1 %v7051_v2  ;;  %v7054_v63 = vld [vmem:[#allocation7 + $0x1c4] ss:$8 sps:$4 sm:$0xff]   ;;  %v7064_v2 = vld [vmem:[#allocation7 + $0x1a0] ss:$8 sps:$4 sm:$0xff]  }
 0x54f   : > { %4881 = vmatpush1.bf16.msra.mxu0 %v6968_v46  ;;  %v7004_v46 = vld [vmem:[#allocation7 + $0x140] ss:$8 sps:$4 sm:$0xff]  }
 0x550   : > { %4882 = vmatprep.subr.bf16.mxu0 %v6973_v42  ;;  %6060 = vmatpush1.bf16.msra.mxu1 %v7049_v15  ;;  %v7012_v42 = vld [vmem:[#allocation7 + $0x134] ss:$8 sps:$4 sm:$0xff]   ;;  %v7066_v15 = vld [vmem:[#allocation7 + $0x1a4] ss:$8 sps:$4 sm:$0xff]  }
 0x551   : > { %6061 = vmatprep.subr.bf16.mxu1 %v7057_v57  ;;  %v7076_v57 = vld [vmem:[#allocation7 + $0x180] ss:$8 sps:$4 sm:$0xff]  }
 0x553   : > { %4883 = vmatpush2.bf16.msra.mxu0 %v6971_v25  ;;  %v7016_v25 = vld [vmem:[#allocation7 + $0x120] ss:$8 sps:$4 sm:$0xff]  }
 0x554   : > { %4884 = vmatprep.subr.bf16.mxu0 %v6976_v56  ;;  %6062 = vmatpush2.bf16.msra.mxu1 %v7055_v45  ;;  %v7022_v56 = vld [vmem:[#allocation7 + $0x110] ss:$8 sps:$4 sm:$0xff]   ;;  %v7078_v45 = vld [vmem:[#allocation7 + $0x184] ss:$8 sps:$4 sm:$0xff]  }
 0x555   : > { %6063 = vmatprep.subr.bf16.mxu1 %v7063_v61 }
 0x557   : > { %4885 = vmatpush2.bf16.msra.mxu0 %v6974_v9  ;;  %v7036_v9 = vld [vmem:[#allocation7 + $0x1f4] ss:$8 sps:$4 sm:$0xff]  }
 0x558   : > { %4886 = vmatprep.subr.bf16.mxu0 %v6979_v31  ;;  %6064 = vmatpush2.bf16.msra.mxu1 %v7061_v8  ;;  %v7034_v31 = vld [vmem:[#allocation7 + $0x1f0] ss:$8 sps:$4 sm:$0xff]  }
 0x559   : > { %6065 = vmatprep.subr.bf16.mxu1 %v7069_v54  ;;  %v7082_v8 = vld [vmem:[#allocation7 + $0x370] ss:$8 sps:$4 sm:$0xff]  }
 0x55b   : > { %4887 = vmatpush2.bf16.msra.mxu0 %v6977_v6  ;;  %v7048_v6 = vld [vmem:[#allocation7 + $0x1d4] ss:$8 sps:$4 sm:$0xff]  }
 0x55c   : > { %4888 = vmatprep.subr.bf16.mxu0 %v6982_v33  ;;  %6066 = vmatpush2.bf16.msra.mxu1 %v7067_v10  ;;  %v7046_v33 = vld [vmem:[#allocation7 + $0x1d0] ss:$8 sps:$4 sm:$0xff]  }
 0x55d   : > { %6067 = vmatprep.subr.bf16.mxu1 %v7075_v48 }
 0x55f   : > { %4889 = vmatpush2.bf16.msra.mxu0 %v6980_v18  ;;  %v7060_v18 = vld [vmem:[#allocation7 + $0x1b4] ss:$8 sps:$4 sm:$0xff]  }
 0x560   : > { %4890 = vmatprep.subr.bf16.mxu0 %v6985_v41  ;;  %6068 = vmatpush2.bf16.msra.mxu1 %v7073_v36  ;;  %v7058_v41 = vld [vmem:[#allocation7 + $0x1b0] ss:$8 sps:$4 sm:$0xff]  }
 0x561   : > { %6069 = vmatprep.subr.bf16.mxu1 %v7081_v35  ;;  %v7096_v35 = vld [vmem:[#allocation7 + $0x354] ss:$8 sps:$4 sm:$0xff]  }
 0x563   : > { %4891 = vmatpush2.bf16.msra.mxu0 %v6983_v28  ;;  %v7072_v28 = vld [vmem:[#allocation7 + $0x194] ss:$8 sps:$4 sm:$0xff]  }
 0x564   : > { %4892 = vmatprep.subr.bf16.mxu0 %v6988_v7  ;;  %6070 = vmatpush2.bf16.msra.mxu1 %v7079_v22  ;;  %v7070_v7 = vld [vmem:[#allocation7 + $0x190] ss:$8 sps:$4 sm:$0xff]  }
 0x565   : > { %6071 = vmatprep.subr.bf16.mxu1 %v7087_v38 }
 0x567   : > { %4893 = vmatpush2.bf16.msra.mxu0 %v6986_v3  ;;  %v7084_v3 = vld [vmem:[#allocation7 + $0x374] ss:$8 sps:$4 sm:$0xff]  }
 0x568   : > { %4894 = vmatprep.subr.bf16.mxu0 %v6991_v30  ;;  %6072 = vmatpush2.bf16.msra.mxu1 %v7085_v16  ;;  %v6347_v30 = vld [vmem:[%s9897_s8 + $0x2] sm:$0x3] }
 0x569   : > { %6073 = vmatprep.subr.bf16.mxu1 %v7093_v20  ;;  %v2560_v10 = vrot.slane %v6347_v30, %v10045_v12 }
 0x56b   : > { %4895 = vmatpush2.bf16.msra.mxu0 %v6989_v39  ;;  %v2564_v39 = vrot.slane %v6347_v30, %v10047_v24  ;;  %v7166_v30 = vld [vmem:[#allocation7 + $0x4e0] ss:$8 sps:$4 sm:$0xff]  }
 0x56c   : > { %4896 = vmatprep.subr.bf16.mxu0 %v6994_v49  ;;  %6074 = vmatpush2.bf16.msra.mxu1 %v7091_v32  ;;  %v7090_v49 = vld [vmem:[#allocation7 + $0x364] ss:$8 sps:$4 sm:$0xff]  }
 0x56d   : > { %6075 = vmatprep.subr.bf16.mxu1 %v7099_v44  ;;  %v7094_v44 = vld [vmem:[#allocation7 + $0x350] ss:$8 sps:$4 sm:$0xff]  }
 0x56f   : > { %4897 = vmatpush2.bf16.msra.mxu0 %v6992_v23  ;;  %v10063_v23 = vpack.c.bf16 %v9441_v21, %v9413_v11  ;;  %v7139_v11 = vld [vmem:[#allocation7 + $0x470] ss:$8 sps:$4 sm:$0xff]  }
 0x570   : > { %6002 = vmatprep.subr.bf16.mxu0 %v6997_v58  ;;  %6076 = vmatpush2.bf16.msra.mxu1 %v7097_v59  ;;  %v7088_v58 = vld [vmem:[#allocation7 + $0x360] ss:$8 sps:$4 sm:$0xff]  }
 0x571   : > { %6131 = vmatprep.subr.bf16.mxu1 %v7141_v0  ;;  %v7103_v0 = vld [vmem:[#allocation7 + $0x330] ss:$8 sps:$4 sm:$0xff]  }
 0x5ad   : > { %v4700_v52 = vpop.permute.xlu1 %4699 }
 0x5af   : > { %v4698_v47 = vpop.permute.xlu0 %4697 }
 0x5b0   : > { %v4703_v50 = vsel %vm3998_vm11, %v4698_v47, %v4700_v52 }
 0x5b1   : > { %4898 = vmatprep.mubr.bf16.mxu0 %v4703_v50 }
 0x5b3   : > { %v4696_v62 = vpop.permute.xlu0 %4695 }
 0x5b4   : > { %v4702_v60 = vsel %vm3998_vm11, %v4696_v62, %v4698_v47  ;;  %v7144_v62 = vld [vmem:[#allocation7 + $0x464] ss:$8 sps:$4 sm:$0xff]  }
 0x5b5   : > { %4899 = vmatmul.mubr.bf16.vlgmr.msra.gmra.mxu0 %v4702_v60  ;;  %v7142_v60 = vld [vmem:[#allocation7 + $0x460] ss:$8 sps:$4 sm:$0xff]  }
 0x5b6   : > { %6003 = vmatpush1.bf16.msra.mxu0 %v6995_v5  ;;  %6034 = vmatprep.mubr.bf16.mxu0 %v9353_v19  ;;  %v7024_v19 = vld [vmem:[#allocation7 + $0x114] ss:$8 sps:$4 sm:$0xff]   ;;  %v7100_v5 = vld [vmem:[#allocation7 + $0x340] ss:$8 sps:$4 sm:$0xff]  }
 0x5b7   : > { %6004 = vmatprep.subr.bf16.mxu0 %v7000_v34  ;;  %v7105_v34 = vld [vmem:[#allocation7 + $0x334] ss:$8 sps:$4 sm:$0xff]  }
 0x5ba   : > { %6005 = vmatpush1.bf16.msra.mxu0 %v6998_v17  ;;  %v7147_v17 = vld [vmem:[#allocation7 + $0x454] ss:$8 sps:$4 sm:$0xff]  }
 0x5bb   : > { %6006 = vmatprep.subr.bf16.mxu0 %v7003_v29  ;;  %v7108_v29 = vld [vmem:[#allocation7 + $0x324] ss:$8 sps:$4 sm:$0xff]  }
 0x5be   : > { %6007 = vmatpush1.bf16.msra.mxu0 %v7001_v51  ;;  %v7145_v51 = vld [vmem:[#allocation7 + $0x450] ss:$8 sps:$4 sm:$0xff]  }
 0x5bf   : > { %6008 = vmatprep.subr.bf16.mxu0 %v7006_v4  ;;  %v7106_v4 = vld [vmem:[#allocation7 + $0x320] ss:$8 sps:$4 sm:$0xff]  }
 0x5c2   : > { %6009 = vmatpush1.bf16.msra.mxu0 %v7004_v46  ;;  %v7150_v46 = vld [vmem:[#allocation7 + $0x444] ss:$8 sps:$4 sm:$0xff]  }
 0x5c3   : > { %6010 = vmatprep.subr.bf16.mxu0 %v7012_v42  ;;  %v7111_v42 = vld [vmem:[#allocation7 + $0x314] ss:$8 sps:$4 sm:$0xff]  }
 0x5c6   : > { %6011 = vmatpush1.bf16.msra.mxu0 %v7010_v43  ;;  %v7148_v43 = vld [vmem:[#allocation7 + $0x440] ss:$8 sps:$4 sm:$0xff]  }
 0x5c7   : > { %6012 = vmatprep.subr.bf16.mxu0 %v7018_v1  ;;  %v7109_v1 = vld [vmem:[#allocation7 + $0x310] ss:$8 sps:$4 sm:$0xff]  }
 0x5ca   : > { %6013 = vmatpush1.bf16.msra.mxu0 %v7016_v25  ;;  %v7153_v25 = vld [vmem:[#allocation7 + $0x434] ss:$8 sps:$4 sm:$0xff]  }
 0x5cb   : > { %6014 = vmatprep.subr.bf16.mxu0 %v7024_v19  ;;  %v7114_v19 = vld [vmem:[#allocation7 + $0x304] ss:$8 sps:$4 sm:$0xff]  }
 0x5ce   : > { %6015 = vmatpush1.bf16.msra.mxu0 %v7022_v56  ;;  %v7151_v56 = vld [vmem:[#allocation7 + $0x430] ss:$8 sps:$4 sm:$0xff]  }
 0x5cf   : > { %6016 = vmatprep.subr.bf16.mxu0 %v7030_v26  ;;  %v7112_v26 = vld [vmem:[#allocation7 + $0x300] ss:$8 sps:$4 sm:$0xff]  }
 0x5d2   : > { %6017 = vmatpush1.bf16.msra.mxu0 %v7028_v14  ;;  %v7156_v14 = vld [vmem:[#allocation7 + $0x424] ss:$8 sps:$4 sm:$0xff]  }
 0x5d3   : > { %6018 = vmatprep.subr.bf16.mxu0 %v7036_v9  ;;  %v7117_v9 = vld [vmem:[#allocation7 + $0x3f4] ss:$8 sps:$4 sm:$0xff]  }
 0x5d6   : > { %6019 = vmatpush2.bf16.msra.mxu0 %v7034_v31  ;;  %v7154_v31 = vld [vmem:[#allocation7 + $0x420] ss:$8 sps:$4 sm:$0xff]  }
 0x5d7   : > { %6020 = vmatprep.subr.bf16.mxu0 %v7042_v13  ;;  %v7115_v13 = vld [vmem:[#allocation7 + $0x3f0] ss:$8 sps:$4 sm:$0xff]  }
 0x5da   : > { %6021 = vmatpush2.bf16.msra.mxu0 %v7040_v27  ;;  %v7159_v27 = vld [vmem:[#allocation7 + $0x414] ss:$8 sps:$4 sm:$0xff]  }
 0x5db   : > { %6022 = vmatprep.subr.bf16.mxu0 %v7048_v6  ;;  %v7120_v6 = vld [vmem:[#allocation7 + $0x3e4] ss:$8 sps:$4 sm:$0xff]  }
 0x5de   : > { %6023 = vmatpush2.bf16.msra.mxu0 %v7046_v33  ;;  %v7157_v33 = vld [vmem:[#allocation7 + $0x410] ss:$8 sps:$4 sm:$0xff]  }
 0x5df   : > { %6024 = vmatprep.subr.bf16.mxu0 %v7054_v63  ;;  %v7118_v63 = vld [vmem:[#allocation7 + $0x3e0] ss:$8 sps:$4 sm:$0xff]  }
 0x5e2   : > { %6025 = vmatpush2.bf16.msra.mxu0 %v7052_v37  ;;  %v7162_v37 = vld [vmem:[#allocation7 + $0x404] ss:$8 sps:$4 sm:$0xff]  }
 0x5e3   : > { %6026 = vmatprep.subr.bf16.mxu0 %v7060_v18  ;;  %v7123_v18 = vld [vmem:[#allocation7 + $0x3d4] ss:$8 sps:$4 sm:$0xff]  }
 0x5e6   : > { %6027 = vmatpush2.bf16.msra.mxu0 %v7058_v41  ;;  %v7160_v41 = vld [vmem:[#allocation7 + $0x400] ss:$8 sps:$4 sm:$0xff]  }
 0x5e7   : > { %6028 = vmatprep.subr.bf16.mxu0 %v7066_v15  ;;  %v7121_v15 = vld [vmem:[#allocation7 + $0x3d0] ss:$8 sps:$4 sm:$0xff]  }
 0x5ea   : > { %6029 = vmatpush2.bf16.msra.mxu0 %v7064_v2  ;;  %v7165_v2 = vld [vmem:[#allocation7 + $0x4f4] ss:$8 sps:$4 sm:$0xff]  }
 0x5eb   : > { %6030 = vmatprep.subr.bf16.mxu0 %v7072_v28  ;;  %v7126_v28 = vld [vmem:[#allocation7 + $0x3c4] ss:$8 sps:$4 sm:$0xff]  }
 0x5ee   : > { %6031 = vmatpush2.bf16.msra.mxu0 %v7070_v7  ;;  %v7163_v7 = vld [vmem:[#allocation7 + $0x4f0] ss:$8 sps:$4 sm:$0xff]  }
 0x5ef   : > { %6032 = vmatprep.subr.bf16.mxu0 %v7078_v45  ;;  %v7124_v45 = vld [vmem:[#allocation7 + $0x3c0] ss:$8 sps:$4 sm:$0xff]  }
 0x5f2   : > { %6033 = vmatpush2.bf16.msra.mxu0 %v7076_v57  ;;  %v2788_v61 = vpop.f32.mrf.mxu0  ;;  %v7168_v57 = vld [vmem:[#allocation7 + $0x4e4] ss:$8 sps:$4 sm:$0xff]  }
 0x5f3   : > { %6088 = vmatprep.subr.bf16.mxu0 %v7084_v3  ;;  %v2789_v16 = vadd.f32 %v2788_v61, %v2560_v10  ;;  %v7129_v3 = vld [vmem:[#allocation7 + $0x3b4] ss:$8 sps:$4 sm:$0xff]  }
 0x5f4   : > { %v2790_v54 = vpop.f32.mrf.mxu0  ;;  %v7171_v61 = vld [vmem:[#allocation7 + $0x4d4] ss:$8 sps:$4 sm:$0xff]  }
 0x5f5   : > { %6035 = vmatmul.mubr.bf16.vlgmr.msra.gmra.mxu0 %v9351_v40  ;;  %v2791_v48 = vadd.f32 %v2790_v54, %v2564_v39  ;;  %v7102_v40 = vld [vmem:[#allocation7 + $0x344] ss:$8 sps:$4 sm:$0xff]   ;;  %v2797_v47 = vmax.f32 %v2789_v16, 0.0  ;;  %v7136_v16 = vld [vmem:[#allocation7 + $0x380] ss:$8 sps:$4 sm:$0xff]  }
 0x5f6   : > { %6089 = vmatpush1.bf16.msra.mxu0 %v7082_v8  ;;  %6120 = vmatprep.mubr.bf16.mxu0 %v10063_v23  ;;  %v2792_v36 = vpop.f32.mrf.mxu0  ;;  %v7127_v8 = vld [vmem:[#allocation7 + $0x3b0] ss:$8 sps:$4 sm:$0xff]   ;;  %v7174_v54 = vld [vmem:[#allocation7 + $0x4c4] ss:$8 sps:$4 sm:$0xff]   ;;  %v7135_v23 = vld [vmem:[#allocation7 + $0x394] ss:$8 sps:$4 sm:$0xff]  }
 0x5f7   : > { %6090 = vmatprep.subr.bf16.mxu0 %v7090_v49  ;;  %v2793_v22 = vadd.f32 %v2792_v36, %v2560_v10  ;;  %v2798_v59 = vmax.f32 %v2791_v48, 0.0  ;;  %v7169_v49 = vld [vmem:[#allocation7 + $0x4d0] ss:$8 sps:$4 sm:$0xff]   ;;  %v7130_v10 = vld [vmem:[#allocation7 + $0x3a0] ss:$8 sps:$4 sm:$0xff]  }
 0x5f8   : > { %v2794_v38 = vpop.f32.mrf.mxu0  ;;  %v7133_v36 = vld [vmem:[#allocation7 + $0x390] ss:$8 sps:$4 sm:$0xff]   ;;  %v7177_v48 = vld [vmem:[#allocation7 + $0x4b4] ss:$8 sps:$4 sm:$0xff]  }
 0x5f9   : > { %v2795_v32 = vadd.f32 %v2794_v38, %v2564_v39  ;;  %v2799_v20 = vmax.f32 %v2793_v22, 0.0  ;;  %v7132_v39 = vld [vmem:[#allocation7 + $0x3a4] ss:$8 sps:$4 sm:$0xff]  }
 0x5fa   : > { %6091 = vmatpush1.bf16.msra.mxu0 %v7088_v58  ;;  %v7172_v58 = vld [vmem:[#allocation7 + $0x4c0] ss:$8 sps:$4 sm:$0xff]   ;;  %v7138_v22 = vld [vmem:[#allocation7 + $0x384] ss:$8 sps:$4 sm:$0xff]  }
 0x5fb   : > { %v2800_v52 = vmax.f32 %v2795_v32, 0.0  ;;  %6092 = vmatprep.subr.bf16.mxu0 %v7096_v35  ;;  %v6650_v21 = vpack.c.bf16 %v2799_v20, %v2797_v47  ;;  %v7175_v35 = vld [vmem:[#allocation7 + $0x4b0] ss:$8 sps:$4 sm:$0xff]   ;;  %v7180_v38 = vld [vmem:[#allocation7 + $0x4a4] ss:$8 sps:$4 sm:$0xff]  }
 0x5fc   : > { %v7178_v32 = vld [vmem:[#allocation7 + $0x4a0] ss:$8 sps:$4 sm:$0xff]   ;;  %v7183_v20 = vld [vmem:[#allocation7 + $0x494] ss:$8 sps:$4 sm:$0xff]   ;;  %v6425_v47 = vld [vmem:[%s9897_s8 + $0x6] sm:$0x3] }
 0x5fd   : > { %v6651_v50 = vpack.c.bf16 %v2800_v52, %v2798_v59  ;;  %v7181_v59 = vld [vmem:[#allocation7 + $0x490] ss:$8 sps:$4 sm:$0xff]   ;;  %v7186_v52 = vld [vmem:[#allocation7 + $0x484] ss:$8 sps:$4 sm:$0xff]  }
 0x5fe   : > { %6093 = vmatpush1.bf16.msra.mxu0 %v7094_v44  ;;  %v10064_v44 = vpack.c.bf16 %v9428_v55, %v9407_v53 }
 0x5ff   : > { %6094 = vmatprep.subr.bf16.mxu0 %v7102_v40  ;;  %6077 = vmatprep.mubr.bf16.mxu1 %v6651_v50  ;;  %v7184_v40 = vld [vmem:[#allocation7 + $0x480] ss:$8 sps:$4 sm:$0xff]  }
 0x600   : > { %6078 = vmatmul.mubr.bf16.vlgmr.msra.gmra.mxu1 %v6650_v21  ;;  %v4636_v21 = vrot.slane %v6425_v47, %v10045_v12 }
 0x601   : > { %6132 = vmatpush1.bf16.msra.mxu1 %v7139_v11  ;;  %v4640_v11 = vrot.slane %v6425_v47, %v10047_v24 }
 0x602   : > { %6095 = vmatpush1.bf16.msra.mxu0 %v7100_v5  ;;  %6133 = vmatprep.subr.bf16.mxu1 %v7144_v62 }
 0x603   : > { %6096 = vmatprep.subr.bf16.mxu0 %v7105_v34 }
 0x605   : > { %6134 = vmatpush1.bf16.msra.mxu1 %v7142_v60 }
 0x606   : > { %6097 = vmatpush1.bf16.msra.mxu0 %v7103_v0  ;;  %6135 = vmatprep.subr.bf16.mxu1 %v7147_v17 }
 0x607   : > { %6098 = vmatprep.subr.bf16.mxu0 %v7108_v29 }
 0x609   : > { %6136 = vmatpush1.bf16.msra.mxu1 %v7145_v51 }
 0x60a   : > { %6099 = vmatpush1.bf16.msra.mxu0 %v7106_v4  ;;  %6137 = vmatprep.subr.bf16.mxu1 %v7150_v46 }
 0x60b   : > { %6100 = vmatprep.subr.bf16.mxu0 %v7111_v42 }
 0x60d   : > { %6138 = vmatpush1.bf16.msra.mxu1 %v7148_v43  ;;  %v5993_v43 = vpop.f32.mrf.mxu1 }
 0x60e   : > { %6101 = vmatpush1.bf16.msra.mxu0 %v7109_v1  ;;  %6139 = vmatprep.subr.bf16.mxu1 %v7153_v25 }
 0x60f   : > { %6102 = vmatprep.subr.bf16.mxu0 %v7114_v19  ;;  %v5995_v1 = vpop.f32.mrf.mxu1 }
 0x611   : > { %6140 = vmatpush1.bf16.msra.mxu1 %v7151_v56  ;;  %v5997_v19 = vpop.f32.mrf.mxu1 }
 0x612   : > { %6103 = vmatpush1.bf16.msra.mxu0 %v7112_v26  ;;  %6141 = vmatprep.subr.bf16.mxu1 %v7156_v14 }
 0x613   : > { %6104 = vmatprep.subr.bf16.mxu0 %v7117_v9  ;;  %v5999_v26 = vpop.f32.mrf.mxu1  ;;  %v5097_v9 = vld [vmem:[%s9899_s10] sm:$0x3] }
 0x615   : > { %6142 = vmatpush1.bf16.msra.mxu1 %v7154_v31 }
 0x616   : > { %6105 = vmatpush2.bf16.msra.mxu0 %v7115_v13  ;;  %6143 = vmatprep.subr.bf16.mxu1 %v7159_v27  ;;  %v5102_v27 = vrot.slane %v5097_v9, %v10045_v12 }
 0x617   : > { %6106 = vmatprep.subr.bf16.mxu0 %v7120_v6 }
 0x619   : > { %6144 = vmatpush1.bf16.msra.mxu1 %v7157_v33 }
 0x61a   : > { %6107 = vmatpush2.bf16.msra.mxu0 %v7118_v63  ;;  %6145 = vmatprep.subr.bf16.mxu1 %v7162_v37  ;;  %v5106_v63 = vrot.slane %v5097_v9, %v10047_v24  ;;  %v5994_v37 = vadd.f32 %v5993_v43, %v5102_v27 }
 0x61b   : > { %6108 = vmatprep.subr.bf16.mxu0 %v7123_v18 }
 0x61d   : > { %6146 = vmatpush1.bf16.msra.mxu1 %v7160_v41 }
 0x61e   : > { %6109 = vmatpush2.bf16.msra.mxu0 %v7121_v15  ;;  %6147 = vmatprep.subr.bf16.mxu1 %v7165_v2  ;;  %v5996_v15 = vadd.f32 %v5995_v1, %v5106_v63 }
 0x61f   : > { %6110 = vmatprep.subr.bf16.mxu0 %v7126_v28  ;;  %v5998_v28 = vadd.f32 %v5997_v19, %v5102_v27 }
 0x621   : > { %6148 = vmatpush2.bf16.msra.mxu1 %v7163_v7 }
 0x622   : > { %6111 = vmatpush2.bf16.msra.mxu0 %v7124_v45  ;;  %6149 = vmatprep.subr.bf16.mxu1 %v7168_v57 }
 0x623   : > { %6112 = vmatprep.subr.bf16.mxu0 %v7129_v3 }
 0x625   : > { %6150 = vmatpush2.bf16.msra.mxu1 %v7166_v30  ;;  %v6000_v30 = vadd.f32 %v5999_v26, %v5106_v63 }
 0x626   : > { %6113 = vmatpush2.bf16.msra.mxu0 %v7127_v8  ;;  %6151 = vmatprep.subr.bf16.mxu1 %v7171_v61 }
 0x627   : > { %6114 = vmatprep.subr.bf16.mxu0 %v7132_v39 }
 0x629   : > { %6152 = vmatpush2.bf16.msra.mxu1 %v7169_v49 }
 0x62a   : > { %6115 = vmatpush2.bf16.msra.mxu0 %v7130_v10  ;;  %6153 = vmatprep.subr.bf16.mxu1 %v7174_v54 }
 0x62b   : > { %6116 = vmatprep.subr.bf16.mxu0 %v7135_v23 }
 0x62d   : > { %6154 = vmatpush2.bf16.msra.mxu1 %v7172_v58 }
 0x62e   : > { %6117 = vmatpush2.bf16.msra.mxu0 %v7133_v36  ;;  %6155 = vmatprep.subr.bf16.mxu1 %v7177_v48 }
 0x62f   : > { %6118 = vmatprep.subr.bf16.mxu0 %v7138_v22 }
 0x631   : > { %6156 = vmatpush2.bf16.msra.mxu1 %v7175_v35 }
 0x632   : > { %6119 = vmatpush2.bf16.msra.mxu0 %v7136_v16  ;;  %6157 = vmatprep.subr.bf16.mxu1 %v7180_v38 }
 0x635   : > { %6121 = vmatmul.mubr.bf16.vlgmr.msra.gmra.mxu0 %v10064_v44  ;;  %6158 = vmatpush2.bf16.msra.mxu1 %v7178_v32 }
 0x636   : > { %6159 = vmatprep.subr.bf16.mxu1 %v7183_v20 }
 0x639   : > { %6160 = vmatpush2.bf16.msra.mxu1 %v7181_v59 }
 0x63a   : > { %6161 = vmatprep.subr.bf16.mxu1 %v7186_v52 }
 0x63d   : > { %6162 = vmatpush2.bf16.msra.mxu1 %v7184_v40 }
 0x675   : > { %v4900_v50 = vpop.f32.mrf.mxu0 }
 0x676   : > { %v4901_v34 = vadd.f32 %v4900_v50, %v4636_v21 }
 0x677   : > { %v4902_v5 = vpop.f32.mrf.mxu0 }
 0x678   : > { %v4903_v55 = vadd.f32 %v4902_v5, %v4640_v11  ;;  %v4909_v4 = vmax.f32 %v4901_v34, 0.0 }
 0x679   : > { %v4904_v53 = vpop.f32.mrf.mxu0 }
 0x67a   : > { %v4905_v62 = vadd.f32 %v4904_v53, %v4636_v21  ;;  %v4910_v29 = vmax.f32 %v4903_v55, 0.0 }
 0x67b   : > { %v4906_v60 = vpop.f32.mrf.mxu0 }
 0x67c   : > { %v4907_v0 = vadd.f32 %v4906_v60, %v4640_v11  ;;  %v4911_v17 = vmax.f32 %v4905_v62, 0.0 }
 0x67e   : > { %v4912_v51 = vmax.f32 %v4907_v0, 0.0  ;;  %v6654_v42 = vpack.c.bf16 %v4911_v17, %v4909_v4 }
 0x680   : > { %v6655_v46 = vpack.c.bf16 %v4912_v51, %v4910_v29 }
 0x682   : > { %6163 = vmatprep.mubr.bf16.mxu1 %v6655_v46 }
 0x683   : > { %6164 = vmatmul.mubr.bf16.vlgmr.msra.gmra.mxu1 %v6654_v42 }
 0x6b5   : > { %v6036_v25 = vpop.f32.mrf.mxu0 }
 0x6b6   : > { %v6037_v2 = vadd.f32 %v6036_v25, %v5994_v37 }
 0x6b7   : > { %v6038_v56 = vpop.f32.mrf.mxu0 }
 0x6b8   : > { %v6039_v7 = vadd.f32 %v6038_v56, %v5996_v15 }
 0x6b9   : > { %v6040_v14 = vpop.f32.mrf.mxu0 }
 0x6ba   : > { %v6041_v8 = vadd.f32 %v6040_v14, %v5998_v28 }
 0x6bb   : > { %v6042_v13 = vpop.f32.mrf.mxu0 }
 0x6bc   : > { %v6043_v24 = vadd.f32 %v6042_v13, %v6000_v30 }
 0x6c0   : > { %v6079_v31 = vpop.f32.mrf.mxu1 }
 0x6c1   : > { %v6080_v45 = vadd.f32 %v6079_v31, %v6037_v2 }
 0x6c2   : > { %v6081_v6 = vpop.f32.mrf.mxu1 }
 0x6c3   : > { %v6082_v61 = vadd.f32 %v6081_v6, %v6039_v7 }
 0x6c4   : > { %v6083_v18 = vpop.f32.mrf.mxu1 }
 0x6c5   : > { %v6084_v49 = vadd.f32 %v6083_v18, %v6041_v8 }
 0x6c6   : > { %v6085_v57 = vpop.f32.mrf.mxu1 }
 0x6c7   : > { %v6086_v36 = vadd.f32 %v6085_v57, %v6043_v24 }
 0x6f5   : > { %v6122_v33 = vpop.f32.mrf.mxu0 }
 0x6f6   : > { %v6123_v12 = vadd.f32 %v6122_v33, %v6080_v45 }
 0x6f7   : > { %v6124_v41 = vpop.f32.mrf.mxu0 }
 0x6f8   : > { %v6125_v10 = vadd.f32 %v6124_v41, %v6082_v61 }
 0x6f9   : > { %v6126_v3 = vpop.f32.mrf.mxu0 }
 0x6fa   : > { %v6127_v48 = vadd.f32 %v6126_v3, %v6084_v49 }
 0x6fb   : > { %v6128_v23 = vpop.f32.mrf.mxu0 }
 0x6fc   : > { %v6129_v38 = vadd.f32 %v6128_v23, %v6086_v36 }
 0x743   : > { %v6165_v39 = vpop.f32.mrf.mxu1 }
 0x744   : > { %v6166_v54 = vadd.f32 %v6165_v39, %v6123_v12 }
 0x745   : > { %v6167_v58 = vpop.f32.mrf.mxu1 }
 0x746   : > { %v6174_v22 = vmax.f32 %v6166_v54, 0.0  ;;  %v6168_v35 = vadd.f32 %v6167_v58, %v6125_v10 }
 0x747   : > { %v6169_v16 = vpop.f32.mrf.mxu1 }
 0x748   : > { %6178 = vst [vmem:[%s409_s24] sm:$0xff] %v6174_v22  ;;  %v6175_v32 = vmax.f32 %v6168_v35, 0.0  ;;  %v6170_v20 = vadd.f32 %v6169_v16, %v6127_v48 }
 0x749   : > { %v6171_v44 = vpop.f32.mrf.mxu1 }
 0x74a   : > { %6179 = vst [vmem:[%s409_s24 + $0x8] sm:$0xff] %v6175_v32  ;;  %v6176_v59 = vmax.f32 %v6170_v20, 0.0  ;;  %v6172_v52 = vadd.f32 %v6171_v44, %v6129_v38 }
 0x74c   : > { %6180 = vst [vmem:[%s409_s24 + $0x10] sm:$0xff] %v6176_v59  ;;  %v6177_v40 = vmax.f32 %v6172_v52, 0.0 }
 0x74e   : > { %6181 = vst [vmem:[%s409_s24 + $0x18] sm:$0xff] %v6177_v40 }
 0x74f   : > { %7269 = shalt.err (!%p7266_p3)
}
 0x750   : > { %s7270_s22 = scalar_lea.hbm %s9844_s26, 512  ;;  %s7274_s12 = scalar_lea.hbm %s9900_s11, 1024 }
 0x751   : > { %p7271_p2 = scmp.ne.s32.totalorder %s9844_s26, %s7270_s22  ;;  %p7275_p7 = scmp.lt.s32.totalorder %s9844_s26, %s9900_s11 }
 0x752   : > { %p7276_p6 = scmp.lt.s32.totalorder %s7274_s12, %s7270_s22 }
 0x753   : > { %p7272_p4 = pnand %p7271_p2, %p7441_p5 }
 0x754   : > { %p7277_p9 = por %p7276_p6, %p7275_p7 }
 0x755   : > { %p7273_p13 = pneg %p7272_p4 }
 0x757   : > { %p7278_p10 = pnand %p7277_p9, %p7273_p13 }
 0x759   : > { %7281 = shalt.err (!%p7278_p10)
}
 0x75a   : > { %s7342_s25 = smov 256   ;;  %s10065_s21 = smov 16  }
 0x75b   : > { %6665 = dma.vmem_to_hbm [thread:$0]  (%p7441_p5), %s9839_s30, 512, %s9844_s26, %s9848_s14, %s7342_s25, %s7342_s25, %s10065_s21  }
 0x75c PF: > { %p6682_p12 = scmp.ge.s32.totalorder %s7324_s20, 2  ;;  %s6211_s29 = sand.u32 1, %s7312_s17  }
 0x75d   : > { %p10066_p8 = scmp.ne.s32.totalorder %s9960_s28, 0  ;;  %s6212_s22 = scalar_lea.sflag [#allocation6], %s6211_s29 }
 0x75f   : > { %p6675_p11 = pnand %p6682_p12, %p10066_p8 }
 0x761   : > { %p6676_p0 = pneg %p6675_p11 }
 0x763   : > { %7307 = dma.done.wait (%p6676_p0), %s6212_s22, 512  }
 0x764   : > { %7309 = vsyncadd (%p6676_p0), %s6212_s22, 4294966784  ;;  %s10067_s27 = sld [smem:[#allocation13_spill]]  ;;  %p23_p1 = scmp.ge.s32.totalorder %s7428_s23, 4  }
 0x765   : > { %s10068_s17 = smov %s7316_s18  ;;  %s10069_s18 = smov %s7320_s19 }
 0x766   : > { %s10071_s20 = smov %s7428_s23  ;;  %25 = sbr.rel (!%p23_p1) target bundleno = 5 (0x5), region = 120 }
 0x76a   : > { %s10070_s19 = smov %s10067_s27 }
 0x76b   :  { %6217 = vsyncpa [#allocation5], 1 }
 0x76c   :  { %6219 = vsyncpa [#allocation5 + $0x1], 1 }
 0x76d   :  { %6220 = vsyncpa [#allocation8], 1 }
 0x76e   :  { %6221 = vsyncpa [#allocation6], 1 }
 0x76f   :  { %6223 = vsyncpa [#allocation6 + $0x1], 1 }

</bundles_post_ra>
